<compile_context>
chip_gen: v5e
topology: v5e:2x2
jax: 0.10.0
libtpu: 0.0.40
codegen_flags: <defaults>
</compile_context>

<pallas_src>
import math

import jax
import jax.numpy as jnp
from jax import lax
from jax.experimental import pallas as pl
from jax.experimental.pallas import tpu as pltpu

F32 = jnp.float32
BF16 = jnp.bfloat16

_LOG_LO = math.log(1e-4)          # log of torch _sigmoid lower clamp
_LOG_HI = math.log(1.0 - 1e-4)    # log of torch _sigmoid upper clamp

_NUM_SUMS = 10
# SMEM accumulator layout:
#  0: focal pos-loss sum        1: focal neg-loss sum      2: num_pos
#  3: cls BCE sum               4: cosine pos sum          5: cosine neg sum
#  6: offset masked sq-err sum  7: offset mask count
#  8: consistency BCE sum       9: HSIC value


def _pick_lane_tile(n, target=512):
    """Largest multiple-of-128 divisor of n that is <= target, else full n."""
    best = n
    for t in range(128, min(n, target) + 1, 128):
        if n % t == 0:
            best = t
    return best


def _full_spec(arr):
    zeros = (0,) * arr.ndim
    return pl.BlockSpec(tuple(arr.shape), lambda r, _z=zeros: _z)


def _build_kernel(*, b, epsilon, noise, half, dst_on, off_on, off_tiled,
                  cst_on, cst_dim, hsic_on, s_x, s_y):
    """Builds kernel(*in_refs, out_ref, acc_smem[, gram_vmem])."""
    pos_scale = (1.0 - epsilon) + epsilon * noise   # noise is a fixed scalar

    def kernel(*refs):
        it = iter(refs)
        hm_x_ref = next(it)
        hm_g_ref = next(it)
        cls_p_ref = next(it)
        cls_g_ref = next(it)
        off_p_ref = next(it) if off_on else None
        off_g_ref = next(it) if off_on else None
        cst_p_ref = next(it) if cst_on else None
        cst_g_ref = next(it) if cst_on else None
        fh_ref = next(it) if hsic_on else None
        fl_ref = next(it) if hsic_on else None
        out_ref = next(it)
        acc_ref = next(it)                       # SMEM (10,) f32 accumulator
        gram_ref = next(it) if dst_on else None  # VMEM (B,B) f32 Gram accum

        r = pl.program_id(0)
        nr = pl.num_programs(0)

        # -------------------- init (first reduction step) --------------------
        @pl.when(r == 0)
        def _init():
            for i in range(_NUM_SUMS):
                acc_ref[i] = jnp.float32(0.0)
            if dst_on:
                gram_ref[...] = jnp.zeros_like(gram_ref)

        # -------- streamed every step: focal + Gram on the hm chunk ----------
        x = hm_x_ref[...].astype(F32)                   # (B, tile)
        g = hm_g_ref[...].astype(F32)
        t = jnp.exp(-jnp.abs(x))                        # reused: softplus + sigmoid
        sp = jnp.maximum(x, 0.0) + jnp.log(1.0 + t)     # softplus(x)
        logp = jnp.clip(x - sp, _LOG_LO, _LOG_HI)       # log(clamp(sigmoid x))
        log1mp = jnp.clip(-sp, _LOG_LO, _LOG_HI)        # log(1 - clamp(sigmoid x))
        inv = 1.0 / (1.0 + t)
        p = jnp.clip(jnp.where(x >= 0.0, inv, t * inv), 1e-4, 1.0 - 1e-4)
        omp = 1.0 - p
        omg2 = (1.0 - g) * (1.0 - g)
        pos_mask = (g == 1.0)
        pos_term = jnp.where(pos_mask, logp * (omp * omp), 0.0)
        neg_term = jnp.where(g < 1.0, log1mp * (p * p) * (omg2 * omg2), 0.0)
        acc_ref[0] = acc_ref[0] + pos_scale * jnp.sum(pos_term)
        acc_ref[1] = acc_ref[1] + jnp.sum(neg_term)
        acc_ref[2] = acc_ref[2] + jnp.sum(pos_mask.astype(F32))

        if dst_on:
            # Unnormalized Gram accumulated across feature chunks (bf16 -> MXU).
            xb = x.astype(BF16)
            gram_ref[...] = gram_ref[...] + lax.dot_general(
                xb, xb, (((1,), (1,)), ((), ())), preferred_element_type=F32)

        if off_on and off_tiled:
            op = off_p_ref[...].astype(F32)
            og = off_g_ref[...].astype(F32)
            c = (og > 0.0).astype(F32)
            d = (op - og) * c
            acc_ref[6] = acc_ref[6] + jnp.sum(d * d)
            acc_ref[7] = acc_ref[7] + jnp.sum(c)

        # ----------- one-shot small losses (first grid step only) ------------
        @pl.when(r == 0)
        def _one_shot():
            # cls BCE (torch BCELoss clamps log at -100)
            cp = cls_p_ref[...].astype(F32)
            cg = cls_g_ref[...].astype(F32)
            clogp = jnp.maximum(jnp.log(cp), -100.0)
            clog1mp = jnp.maximum(jnp.log(1.0 - cp), -100.0)
            acc_ref[3] = jnp.sum(-(cg * clogp + (1.0 - cg) * clog1mp))

            if off_on and not off_tiled:
                op = off_p_ref[...].astype(F32)
                og = off_g_ref[...].astype(F32)
                c = (og > 0.0).astype(F32)
                d = (op - og) * c
                acc_ref[6] = jnp.sum(d * d)
                acc_ref[7] = jnp.sum(c)

            if cst_on:
                pred = cst_p_ref[...].astype(F32)        # (B, D, HW)
                gt3 = cst_g_ref[...].astype(F32)         # (B, 1, HW)
                hw = gt3.shape[-1]
                maxv = jnp.max(gt3, axis=-1, keepdims=True)
                io3 = lax.broadcasted_iota(jnp.int32, gt3.shape, 2)
                idx3 = jnp.min(jnp.where(gt3 == maxv, io3, hw),
                               axis=-1, keepdims=True)                   # (B,1,1)
                onehot = (io3 == idx3).astype(F32)                       # (B,1,HW)
                # gather on the VPU (masked sum) instead of an M=1 one-hot matmul
                sel = jnp.sum(pred * onehot, axis=-1, keepdims=True)     # (B,D,1)
                # the real (1,D)x(D,HW) matmul, bf16 operands on the MXU
                mat = lax.dot_general(sel.astype(BF16), pred.astype(BF16),
                                      (((1,), (1,)), ((0,), (0,))),
                                      preferred_element_type=F32)        # (B,1,HW)
                z = mat * (1.0 / math.sqrt(cst_dim))
                spz = jnp.maximum(z, 0.0) + jnp.log(1.0 + jnp.exp(-jnp.abs(z)))
                elogp = jnp.maximum(z - spz, -100.0)       # log(sigmoid(z))
                elog1mp = jnp.maximum(-spz, -100.0)        # log(1-sigmoid(z))
                acc_ref[8] = jnp.sum(-(gt3 * elogp + (1.0 - gt3) * elog1mp))

            if hsic_on:
                fx = fh_ref[...].astype(F32)               # (m, dx)
                fy = fl_ref[...].astype(F32)               # (m, dy)
                m = fx.shape[0]
                one11 = jnp.ones((1, 1), F32)

                def gauss_gram(v, sigma):
                    vb = v.astype(BF16)
                    g2 = lax.dot_general(vb, vb, (((1,), (1,)), ((), ())),
                                         preferred_element_type=F32)    # (m,m)
                    n2 = jnp.sum(v * v, axis=-1, keepdims=True)         # (m,1)
                    # transpose-free row vector: (1,1)x(m,1) contraction -> (1,m)
                    n2r = lax.dot_general(one11, n2, (((1,), (1,)), ((), ())),
                                          preferred_element_type=F32)   # (1,m)
                    dist = n2 + n2r - 2.0 * g2
                    return jnp.exp(-dist * (1.0 / sigma))

                K = gauss_gram(fx, s_x)
                L = gauss_gram(fy, s_y)
                # trace(L.HKH) == sum(L * (K - rowmean - colmean + grandmean))
                km_row = jnp.mean(K, axis=1, keepdims=True)
                km_col = jnp.mean(K, axis=0, keepdims=True)
                km_all = jnp.mean(K)
                kc = K - km_row - km_col + km_all
                acc_ref[9] = jnp.sum(L * kc) * (1.0 / float((m - 1) ** 2))

        # -------------------- finalize (last reduction step) -----------------
        @pl.when(r == nr - 1)
        def _finalize():
            if dst_on:
                gram = gram_ref[...]                                    # (B,B)
                row = lax.broadcasted_iota(jnp.int32, (b, b), 0)
                col = lax.broadcasted_iota(jnp.int32, (b, b), 1)
                diag = jnp.where(row == col, gram, 0.0)
                nsq_col = jnp.sum(diag, axis=1, keepdims=True)          # (B,1)
                nsq_row = jnp.sum(diag, axis=0, keepdims=True)          # (1,B)
                denom = jnp.maximum(jnp.sqrt(nsq_col * nsq_row), 1e-6)
                v = 0.5 * (1.0 - gram / denom)
                pos_m = (row < half) & (col < half)
                neg_m = (row < half) & (col >= half)
                acc_ref[4] = jnp.sum(jnp.where(pos_m, v, 0.0))
                acc_ref[5] = jnp.sum(jnp.where(neg_m, v, 0.0))
            for i in range(_NUM_SUMS):
                out_ref[i] = acc_ref[i]

    return kernel


# --------------------------------------------------------------- forward ----
class Cfg:
    mse_reduction = "mean"
    ce_reduction = "mean"
    offset_lmda = 1.0
    cls_lmda = 1.0
    dst_hm_cls_lmda = 0.1
    hm_lmda = 1.0
    cstency_lmda = 1.0
    hsic_lmda = 1.0


def combined_hsic_loss_forward(hm_outputs, hm_targets, cls_preds, cls_gts,
                               offset_preds=None, offset_gts=None,
                               cstency_preds=None, cstency_gts=None,
                               features_high=None, features_low=None,
                               cfg=Cfg()):
    if hm_targets.ndim == 3:
        hm_targets = hm_targets[:, None]
    b = hm_outputs.shape[0]

    dst_on = cfg.dst_hm_cls_lmda > 0
    off_on = cfg.offset_lmda > 0 and offset_preds is not None
    cst_on = cfg.cstency_lmda > 0 and cstency_preds is not None
    hsic_on = features_high is not None and features_low is not None

    # Flatten only; native dtypes stream in, the f32 cast is per-tile inside.
    hm_x = hm_outputs.reshape(b, -1)
    hm_g = hm_targets.reshape(b, -1)
    n_hm = hm_x.shape[1]
    tile_hm = _pick_lane_tile(n_hm, target=512)
    n_steps = n_hm // tile_hm

    cls_p2 = cls_preds.reshape(b, -1)
    cls_g2 = cls_gts.reshape(b, -1)

    inputs = [hm_x, hm_g, cls_p2, cls_g2]
    in_specs = [pl.BlockSpec((b, tile_hm), lambda r: (0, r)),
                pl.BlockSpec((b, tile_hm), lambda r: (0, r)),
                _full_spec(cls_p2), _full_spec(cls_g2)]
    blocked_bytes = 2 * b * tile_hm * hm_x.dtype.itemsize
    full_bytes = cls_p2.nbytes + cls_g2.nbytes

    off_tiled = False
    if off_on:
        off_p2 = offset_preds.reshape(b, -1)
        off_g2 = offset_gts.reshape(b, -1)
        n_off = off_p2.shape[1]
        off_tiled = (n_off % n_steps == 0 and
                     (n_steps == 1 or (n_off // n_steps) % 128 == 0))
        if off_tiled:
            tile_off = n_off // n_steps
            in_specs += [pl.BlockSpec((b, tile_off), lambda r: (0, r)),
                         pl.BlockSpec((b, tile_off), lambda r: (0, r))]
            blocked_bytes += 2 * b * tile_off * off_p2.dtype.itemsize
        else:
            in_specs += [_full_spec(off_p2), _full_spec(off_g2)]
            full_bytes += off_p2.nbytes + off_g2.nbytes
        inputs += [off_p2, off_g2]

    cst_dim, cst_hw = 1, 1
    if cst_on:
        _, cst_dim, ch, cw = cstency_preds.shape
        cst_hw = ch * cw
        cst_p3 = cstency_preds.reshape(b, cst_dim, cst_hw)
        cst_g3 = cstency_gts.reshape(b, 1, cst_hw)
        in_specs += [_full_spec(cst_p3), _full_spec(cst_g3)]
        full_bytes += cst_p3.nbytes + cst_g3.nbytes
        inputs += [cst_p3, cst_g3]

    if hsic_on:
        fh2 = features_high.reshape(b, -1)
        fl2 = features_low.reshape(b, -1)
        in_specs += [_full_spec(fh2), _full_spec(fl2)]
        full_bytes += fh2.nbytes + fl2.nbytes
        inputs += [fh2, fl2]

    scratch = [pltpu.SMEM((_NUM_SUMS,), F32)]
    if dst_on:
        scratch.append(pltpu.VMEM((b, b), F32))

    # VMEM budget: double-buffered blocks + one-shot full inputs, x3 headroom
    # for in-kernel f32 casts / temporaries, capped for v7x's 64 MiB.
    vmem_limit = int(min(max(2 * blocked_bytes * 3 + full_bytes * 3
                             + b * b * 4 + (8 << 20), 16 << 20), 64 << 20))

    kernel = _build_kernel(
        b=b, epsilon=0.35, noise=0.2, half=b // 2,
        dst_on=dst_on, off_on=off_on, off_tiled=off_tiled,
        cst_on=cst_on, cst_dim=cst_dim, hsic_on=hsic_on, s_x=1.0, s_y=1.0)

    sums = pl.pallas_call(
        kernel,
        out_shape=jax.ShapeDtypeStruct((_NUM_SUMS,), F32),
        grid_spec=pltpu.PrefetchScalarGridSpec(
            num_scalar_prefetch=0,
            grid=(n_steps,),
            in_specs=in_specs,
            out_specs=pl.BlockSpec((_NUM_SUMS,), lambda r: (0,),
                                   memory_space=pltpu.MemorySpace.SMEM),
            scratch_shapes=scratch),
        compiler_params=pltpu.CompilerParams(
            dimension_semantics=("arbitrary",),
            vmem_limit_bytes=vmem_limit),
    )(*inputs)

    loss_return = {}

    # heatmap focal loss
    pos_s, neg_s, num_pos = sums[0], sums[1], sums[2]
    hm_loss = jnp.where(num_pos == 0, -neg_s,
                        -(pos_s + neg_s) / jnp.maximum(num_pos, 1.0))
    loss_return["hm"] = hm_loss * cfg.hm_lmda

    # classification BCE (mean)
    loss_return["cls"] = (sums[3] / cls_preds.size) * cfg.cls_lmda

    # cosine pos/neg heatmap distance loss
    if dst_on:
        half = b // 2
        loss_return["dst_hm_cls"] = ((sums[4] - sums[5]) / (half ** 2)
                                     ) * cfg.dst_hm_cls_lmda

    # offset loss: 0.5 * MSE(mean) / (num_coefs + 1e-6)   (matches torch ref)
    if off_on:
        mse = sums[6] / offset_preds.size
        loss_return["offset"] = (0.5 * mse / (sums[7] + 1e-6)) * cfg.offset_lmda

    # consistency loss: BCE(mean over B*H*W)
    if cst_on:
        loss_return["cstency"] = (sums[8] / (b * cst_hw)) * cfg.cstency_lmda

    # HSIC between high / low features
    if hsic_on:
        loss_return["hsic"] = cfg.hsic_lmda * sums[9]

    return loss_return


# ------------------------------------------------------------------- main ---
if __name__ == "__main__":
    key = jax.random.PRNGKey(0)
    ks = jax.random.split(key, 10)

    B, C, H, W = 4, 1, 32, 32          # B even (needed by the distance loss)
    D = 8                              # consistency embedding dim
    # n_hm = 1024 -> lane tile 512 -> 2-step pipelined grid (exercised here)

    hm_outputs = jax.random.normal(ks[0], (B, C, H, W), F32)
    hm_targets = 0.9 * jax.random.uniform(ks[1], (B, C, H, W), dtype=F32)
    hm_targets = hm_targets.at[:, 0, H // 2, W // 2].set(1.0)   # exact peaks

    cls_preds = jax.nn.sigmoid(jax.random.normal(ks[2], (B, 1), F32))
    cls_gts = (jax.random.uniform(ks[3], (B, 1)) > 0.5).astype(F32)

    offset_preds = jax.random.normal(ks[4], (B, 2, H, W), F32)
    offset_gts = jax.random.normal(ks[5], (B, 2, H, W), F32)

    cstency_preds = 0.1 * jax.random.normal(ks[6], (B, D, H, W), F32)
    cstency_gts = jax.random.uniform(ks[7], (B, 1, H, W), dtype=F32)

    features_high = jax.random.normal(ks[8], (B, 2, 4, 4), F32)
    features_low = jax.random.normal(ks[9], (B, 2, 4, 4), F32)

    losses = combined_hsic_loss_forward(
        hm_outputs, hm_targets, cls_preds, cls_gts,
        offset_preds=offset_preds, offset_gts=offset_gts,
        cstency_preds=cstency_preds, cstency_gts=cstency_gts,
        features_high=features_high, features_low=features_low)

    for name, val in losses.items():
        val = jax.block_until_ready(val)
        if not bool(jnp.isfinite(val)):
            raise RuntimeError(f"non-finite loss '{name}': {val}")

    print("KERNEL_OK")
</pallas_src>

<mosaic_0001>
module attributes {stable_mosaic.version = 11 : i64} {
  func.func @kernel(%arg0: i32, %arg1: memref<4x512xf32, #tpu.memory_space<vmem>>, %arg2: memref<4x512xf32, #tpu.memory_space<vmem>>, %arg3: memref<4x1xf32, #tpu.memory_space<vmem>>, %arg4: memref<4x1xf32, #tpu.memory_space<vmem>>, %arg5: memref<4x1024xf32, #tpu.memory_space<vmem>>, %arg6: memref<4x1024xf32, #tpu.memory_space<vmem>>, %arg7: memref<4x8x1024xf32, #tpu.memory_space<vmem>>, %arg8: memref<4x1x1024xf32, #tpu.memory_space<vmem>>, %arg9: memref<4x32xf32, #tpu.memory_space<vmem>>, %arg10: memref<4x32xf32, #tpu.memory_space<vmem>>, %arg11: memref<10xf32, #tpu.memory_space<smem>>, %arg12: memref<10xf32, #tpu.memory_space<smem>>, %arg13: memref<4x4xf32, #tpu.memory_space<vmem>>) attributes {dimension_semantics = [#tpu.dimension_semantics<arbitrary>], iteration_bounds = array<i64: 2>, scalar_prefetch = 0 : i64, scratch_operands = 2 : i64, tpu.core_type = #tpu.core_type<tc>, window_params = [{transform_indices = @transform_0, window_bounds = array<i64: 4, 512>}, {transform_indices = @transform_1, window_bounds = array<i64: 4, 512>}, {pipeline_mode = #tpu.pipeline_mode<synchronous>, transform_indices = @transform_2, window_bounds = array<i64: 4, 1>}, {pipeline_mode = #tpu.pipeline_mode<synchronous>, transform_indices = @transform_3, window_bounds = array<i64: 4, 1>}, {transform_indices = @transform_4, window_bounds = array<i64: 4, 1024>}, {transform_indices = @transform_5, window_bounds = array<i64: 4, 1024>}, {pipeline_mode = #tpu.pipeline_mode<synchronous>, transform_indices = @transform_6, window_bounds = array<i64: 4, 8, 1024>}, {pipeline_mode = #tpu.pipeline_mode<synchronous>, transform_indices = @transform_7, window_bounds = array<i64: 4, 1, 1024>}, {pipeline_mode = #tpu.pipeline_mode<synchronous>, transform_indices = @transform_8, window_bounds = array<i64: 4, 32>}, {pipeline_mode = #tpu.pipeline_mode<synchronous>, transform_indices = @transform_9, window_bounds = array<i64: 4, 32>}, {transform_indices = @transform_10, window_bounds = array<i64: 10>}]} {
    %c0_i32 = arith.constant 0 : i32
    %0 = arith.cmpi eq, %arg0, %c0_i32 : i32
    %1 = arith.extui %0 : i1 to i32
    %c0_i32_0 = arith.constant 0 : i32
    %2 = arith.cmpi ne, %1, %c0_i32_0 : i32
    scf.if %2 {
      %cst_48 = arith.constant 0.000000e+00 : f32
      %c0_49 = arith.constant 0 : index
      %117 = memref.load %arg12[%c0_49] : memref<10xf32, #tpu.memory_space<smem>>
      memref.store %cst_48, %arg12[%c0_49] : memref<10xf32, #tpu.memory_space<smem>>
      %cst_50 = arith.constant 0.000000e+00 : f32
      %c1_51 = arith.constant 1 : index
      %118 = memref.load %arg12[%c1_51] : memref<10xf32, #tpu.memory_space<smem>>
      memref.store %cst_50, %arg12[%c1_51] : memref<10xf32, #tpu.memory_space<smem>>
      %cst_52 = arith.constant 0.000000e+00 : f32
      %c2_53 = arith.constant 2 : index
      %119 = memref.load %arg12[%c2_53] : memref<10xf32, #tpu.memory_space<smem>>
      memref.store %cst_52, %arg12[%c2_53] : memref<10xf32, #tpu.memory_space<smem>>
      %cst_54 = arith.constant 0.000000e+00 : f32
      %c3 = arith.constant 3 : index
      %120 = memref.load %arg12[%c3] : memref<10xf32, #tpu.memory_space<smem>>
      memref.store %cst_54, %arg12[%c3] : memref<10xf32, #tpu.memory_space<smem>>
      %cst_55 = arith.constant 0.000000e+00 : f32
      %c4 = arith.constant 4 : index
      %121 = memref.load %arg12[%c4] : memref<10xf32, #tpu.memory_space<smem>>
      memref.store %cst_55, %arg12[%c4] : memref<10xf32, #tpu.memory_space<smem>>
      %cst_56 = arith.constant 0.000000e+00 : f32
      %c5 = arith.constant 5 : index
      %122 = memref.load %arg12[%c5] : memref<10xf32, #tpu.memory_space<smem>>
      memref.store %cst_56, %arg12[%c5] : memref<10xf32, #tpu.memory_space<smem>>
      %cst_57 = arith.constant 0.000000e+00 : f32
      %c6_58 = arith.constant 6 : index
      %123 = memref.load %arg12[%c6_58] : memref<10xf32, #tpu.memory_space<smem>>
      memref.store %cst_57, %arg12[%c6_58] : memref<10xf32, #tpu.memory_space<smem>>
      %cst_59 = arith.constant 0.000000e+00 : f32
      %c7_60 = arith.constant 7 : index
      %124 = memref.load %arg12[%c7_60] : memref<10xf32, #tpu.memory_space<smem>>
      memref.store %cst_59, %arg12[%c7_60] : memref<10xf32, #tpu.memory_space<smem>>
      %cst_61 = arith.constant 0.000000e+00 : f32
      %c8 = arith.constant 8 : index
      %125 = memref.load %arg12[%c8] : memref<10xf32, #tpu.memory_space<smem>>
      memref.store %cst_61, %arg12[%c8] : memref<10xf32, #tpu.memory_space<smem>>
      %cst_62 = arith.constant 0.000000e+00 : f32
      %c9 = arith.constant 9 : index
      %126 = memref.load %arg12[%c9] : memref<10xf32, #tpu.memory_space<smem>>
      memref.store %cst_62, %arg12[%c9] : memref<10xf32, #tpu.memory_space<smem>>
      %cst_63 = arith.constant 0.000000e+00 : f32
      %127 = vector.broadcast %cst_63 : f32 to vector<4x4xf32>
      %c0_64 = arith.constant 0 : index
      %c0_65 = arith.constant 0 : index
      %128 = vector.load %arg13[%c0_64, %c0_65] : memref<4x4xf32, #tpu.memory_space<vmem>>, vector<4x4xf32>
      tpu.vector_store %arg13[%c0_64, %c0_65], %127 {strides = array<i32>} : memref<4x4xf32, #tpu.memory_space<vmem>>, vector<4x4xf32>,
    } else {
    }
    %c0 = arith.constant 0 : index
    %c0_1 = arith.constant 0 : index
    %3 = vector.load %arg1[%c0, %c0_1] : memref<4x512xf32, #tpu.memory_space<vmem>>, vector<4x512xf32>
    %c0_2 = arith.constant 0 : index
    %c0_3 = arith.constant 0 : index
    %4 = vector.load %arg2[%c0_2, %c0_3] : memref<4x512xf32, #tpu.memory_space<vmem>>, vector<4x512xf32>
    %5 = math.absf %3 : vector<4x512xf32>
    %cst = arith.constant 0.000000e+00 : f32
    %6 = vector.broadcast %cst : f32 to vector<4x512xf32>
    %7 = arith.subf %6, %5 : vector<4x512xf32>
    %8 = math.exp %7 : vector<4x512xf32>
    %cst_4 = arith.constant 0.000000e+00 : f32
    %9 = vector.broadcast %cst_4 : f32 to vector<4x512xf32>
    %10 = arith.maximumf %3, %9 : vector<4x512xf32>
    %cst_5 = arith.constant 1.000000e+00 : f32
    %11 = vector.broadcast %cst_5 : f32 to vector<4x512xf32>
    %12 = arith.addf %11, %8 : vector<4x512xf32>
    %13 = math.log %12 : vector<4x512xf32>
    %14 = arith.addf %10, %13 : vector<4x512xf32>
    %15 = arith.subf %3, %14 : vector<4x512xf32>
    %cst_6 = arith.constant -9.21034049 : f32
    %cst_7 = arith.constant -1.000050e-04 : f32
    %16 = vector.broadcast %cst_6 : f32 to vector<4x512xf32>
    %17 = arith.maximumf %16, %15 : vector<4x512xf32>
    %18 = vector.broadcast %cst_7 : f32 to vector<4x512xf32>
    %19 = arith.minimumf %18, %17 : vector<4x512xf32>
    %cst_8 = arith.constant 0.000000e+00 : f32
    %20 = vector.broadcast %cst_8 : f32 to vector<4x512xf32>
    %21 = arith.subf %20, %14 : vector<4x512xf32>
    %cst_9 = arith.constant -9.21034049 : f32
    %cst_10 = arith.constant -1.000050e-04 : f32
    %22 = vector.broadcast %cst_9 : f32 to vector<4x512xf32>
    %23 = arith.maximumf %22, %21 : vector<4x512xf32>
    %24 = vector.broadcast %cst_10 : f32 to vector<4x512xf32>
    %25 = arith.minimumf %24, %23 : vector<4x512xf32>
    %cst_11 = arith.constant 1.000000e+00 : f32
    %26 = vector.broadcast %cst_11 : f32 to vector<4x512xf32>
    %27 = arith.addf %26, %8 : vector<4x512xf32>
    %cst_12 = arith.constant 1.000000e+00 : f32
    %28 = vector.broadcast %cst_12 : f32 to vector<4x512xf32>
    %29 = arith.divf %28, %27 : vector<4x512xf32>
    %cst_13 = arith.constant 0.000000e+00 : f32
    %30 = vector.broadcast %cst_13 : f32 to vector<4x512xf32>
    %31 = arith.cmpf oge, %3, %30 : vector<4x512xf32>
    %32 = arith.mulf %8, %29 : vector<4x512xf32>
    %33 = arith.select %31, %29, %32 : vector<4x512xi1>, vector<4x512xf32>
    %cst_14 = arith.constant 9.99999974E-5 : f32
    %cst_15 = arith.constant 0.999899983 : f32
    %34 = vector.broadcast %cst_14 : f32 to vector<4x512xf32>
    %35 = arith.maximumf %34, %33 : vector<4x512xf32>
    %36 = vector.broadcast %cst_15 : f32 to vector<4x512xf32>
    %37 = arith.minimumf %36, %35 : vector<4x512xf32>
    %cst_16 = arith.constant 1.000000e+00 : f32
    %38 = vector.broadcast %cst_16 : f32 to vector<4x512xf32>
    %39 = arith.subf %38, %37 : vector<4x512xf32>
    %cst_17 = arith.constant 1.000000e+00 : f32
    %40 = vector.broadcast %cst_17 : f32 to vector<4x512xf32>
    %41 = arith.subf %40, %4 : vector<4x512xf32>
    %cst_18 = arith.constant 1.000000e+00 : f32
    %42 = vector.broadcast %cst_18 : f32 to vector<4x512xf32>
    %43 = arith.subf %42, %4 : vector<4x512xf32>
    %44 = arith.mulf %41, %43 : vector<4x512xf32>
    %cst_19 = arith.constant 1.000000e+00 : f32
    %45 = vector.broadcast %cst_19 : f32 to vector<4x512xf32>
    %46 = arith.cmpf oeq, %4, %45 : vector<4x512xf32>
    %47 = arith.mulf %39, %39 : vector<4x512xf32>
    %48 = arith.mulf %19, %47 : vector<4x512xf32>
    %cst_20 = arith.constant 0.000000e+00 : f32
    %49 = vector.broadcast %cst_20 : f32 to vector<4x512xf32>
    %50 = arith.select %46, %48, %49 : vector<4x512xi1>, vector<4x512xf32>
    %cst_21 = arith.constant 1.000000e+00 : f32
    %51 = vector.broadcast %cst_21 : f32 to vector<4x512xf32>
    %52 = arith.cmpf olt, %4, %51 : vector<4x512xf32>
    %53 = arith.mulf %37, %37 : vector<4x512xf32>
    %54 = arith.mulf %25, %53 : vector<4x512xf32>
    %55 = arith.mulf %44, %44 : vector<4x512xf32>
    %56 = arith.mulf %54, %55 : vector<4x512xf32>
    %cst_22 = arith.constant 0.000000e+00 : f32
    %57 = vector.broadcast %cst_22 : f32 to vector<4x512xf32>
    %58 = arith.select %52, %56, %57 : vector<4x512xi1>, vector<4x512xf32>
    %c0_23 = arith.constant 0 : index
    %59 = memref.load %arg12[%c0_23] : memref<10xf32, #tpu.memory_space<smem>>
    %60 = vector.shape_cast %50 : vector<4x512xf32> to vector<1x4x512xf32>
    %cst_24 = arith.constant dense<0.000000e+00> : vector<1xf32>
    %61 = vector.multi_reduction <add>, %60, %cst_24 [1, 2] : vector<1x4x512xf32> to vector<1xf32>
    %62 = vector.shape_cast %61 : vector<1xf32> to vector<1x1x1xf32>
    %63 = vector.extract %62[0, 0, 0] : f32 from vector<1x1x1xf32>
    %cst_25 = arith.constant 7.200000e-01 : f32
    %64 = arith.mulf %cst_25, %63 : f32
    %65 = arith.addf %59, %64 : f32
    %c0_26 = arith.constant 0 : index
    %66 = memref.load %arg12[%c0_26] : memref<10xf32, #tpu.memory_space<smem>>
    memref.store %65, %arg12[%c0_26] : memref<10xf32, #tpu.memory_space<smem>>
    %c1 = arith.constant 1 : index
    %67 = memref.load %arg12[%c1] : memref<10xf32, #tpu.memory_space<smem>>
    %68 = vector.shape_cast %58 : vector<4x512xf32> to vector<1x4x512xf32>
    %cst_27 = arith.constant dense<0.000000e+00> : vector<1xf32>
    %69 = vector.multi_reduction <add>, %68, %cst_27 [1, 2] : vector<1x4x512xf32> to vector<1xf32>
    %70 = vector.shape_cast %69 : vector<1xf32> to vector<1x1x1xf32>
    %71 = vector.extract %70[0, 0, 0] : f32 from vector<1x1x1xf32>
    %72 = arith.addf %67, %71 : f32
    %c1_28 = arith.constant 1 : index
    %73 = memref.load %arg12[%c1_28] : memref<10xf32, #tpu.memory_space<smem>>
    memref.store %72, %arg12[%c1_28] : memref<10xf32, #tpu.memory_space<smem>>
    %c2 = arith.constant 2 : index
    %74 = memref.load %arg12[%c2] : memref<10xf32, #tpu.memory_space<smem>>
    %75 = arith.extui %46 : vector<4x512xi1> to vector<4x512xi32>
    %76 = arith.sitofp %75 : vector<4x512xi32> to vector<4x512xf32>
    %77 = vector.shape_cast %76 : vector<4x512xf32> to vector<1x4x512xf32>
    %cst_29 = arith.constant dense<0.000000e+00> : vector<1xf32>
    %78 = vector.multi_reduction <add>, %77, %cst_29 [1, 2] : vector<1x4x512xf32> to vector<1xf32>
    %79 = vector.shape_cast %78 : vector<1xf32> to vector<1x1x1xf32>
    %80 = vector.extract %79[0, 0, 0] : f32 from vector<1x1x1xf32>
    %81 = arith.addf %74, %80 : f32
    %c2_30 = arith.constant 2 : index
    %82 = memref.load %arg12[%c2_30] : memref<10xf32, #tpu.memory_space<smem>>
    memref.store %81, %arg12[%c2_30] : memref<10xf32, #tpu.memory_space<smem>>
    %83 = arith.truncf %3 : vector<4x512xf32> to vector<4x512xbf16>
    %c0_31 = arith.constant 0 : index
    %c0_32 = arith.constant 0 : index
    %84 = vector.load %arg13[%c0_31, %c0_32] : memref<4x4xf32, #tpu.memory_space<vmem>>, vector<4x4xf32>
    %cst_33 = arith.constant dense<0.000000e+00> : vector<4x4xf32>
    %85 = tpu.matmul %83, %83, %cst_33 {dimension_numbers = #tpu.dot_dimension_numbers<[1], [1], [0], [0], [0, 0, 1, 0], [], []>} : vector<4x512xbf16>, vector<4x512xbf16>, vector<4x4xf32> -> vector<4x4xf32>
    %86 = arith.addf %84, %85 : vector<4x4xf32>
    %c0_34 = arith.constant 0 : index
    %c0_35 = arith.constant 0 : index
    %87 = vector.load %arg13[%c0_34, %c0_35] : memref<4x4xf32, #tpu.memory_space<vmem>>, vector<4x4xf32>
    tpu.vector_store %arg13[%c0_34, %c0_35], %86 {strides = array<i32>} : memref<4x4xf32, #tpu.memory_space<vmem>>, vector<4x4xf32>,
    %c0_36 = arith.constant 0 : index
    %c0_37 = arith.constant 0 : index
    %88 = vector.load %arg5[%c0_36, %c0_37] : memref<4x1024xf32, #tpu.memory_space<vmem>>, vector<4x1024xf32>
    %c0_38 = arith.constant 0 : index
    %c0_39 = arith.constant 0 : index
    %89 = vector.load %arg6[%c0_38, %c0_39] : memref<4x1024xf32, #tpu.memory_space<vmem>>, vector<4x1024xf32>
    %cst_40 = arith.constant 0.000000e+00 : f32
    %90 = vector.broadcast %cst_40 : f32 to vector<4x1024xf32>
    %91 = arith.cmpf ogt, %89, %90 : vector<4x1024xf32>
    %92 = arith.extui %91 : vector<4x1024xi1> to vector<4x1024xi32>
    %93 = arith.sitofp %92 : vector<4x1024xi32> to vector<4x1024xf32>
    %94 = arith.subf %88, %89 : vector<4x1024xf32>
    %95 = arith.mulf %94, %93 : vector<4x1024xf32>
    %c6 = arith.constant 6 : index
    %96 = memref.load %arg12[%c6] : memref<10xf32, #tpu.memory_space<smem>>
    %97 = arith.mulf %95, %95 : vector<4x1024xf32>
    %98 = vector.shape_cast %97 : vector<4x1024xf32> to vector<1x4x1024xf32>
    %cst_41 = arith.constant dense<0.000000e+00> : vector<1xf32>
    %99 = vector.multi_reduction <add>, %98, %cst_41 [1, 2] : vector<1x4x1024xf32> to vector<1xf32>
    %100 = vector.shape_cast %99 : vector<1xf32> to vector<1x1x1xf32>
    %101 = vector.extract %100[0, 0, 0] : f32 from vector<1x1x1xf32>
    %102 = arith.addf %96, %101 : f32
    %c6_42 = arith.constant 6 : index
    %103 = memref.load %arg12[%c6_42] : memref<10xf32, #tpu.memory_space<smem>>
    memref.store %102, %arg12[%c6_42] : memref<10xf32, #tpu.memory_space<smem>>
    %c7 = arith.constant 7 : index
    %104 = memref.load %arg12[%c7] : memref<10xf32, #tpu.memory_space<smem>>
    %105 = vector.shape_cast %93 : vector<4x1024xf32> to vector<1x4x1024xf32>
    %cst_43 = arith.constant dense<0.000000e+00> : vector<1xf32>
    %106 = vector.multi_reduction <add>, %105, %cst_43 [1, 2] : vector<1x4x1024xf32> to vector<1xf32>
    %107 = vector.shape_cast %106 : vector<1xf32> to vector<1x1x1xf32>
    %108 = vector.extract %107[0, 0, 0] : f32 from vector<1x1x1xf32>
    %109 = arith.addf %104, %108 : f32
    %c7_44 = arith.constant 7 : index
    %110 = memref.load %arg12[%c7_44] : memref<10xf32, #tpu.memory_space<smem>>
    memref.store %109, %arg12[%c7_44] : memref<10xf32, #tpu.memory_space<smem>>
    %c0_i32_45 = arith.constant 0 : i32
    %111 = arith.cmpi eq, %arg0, %c0_i32_45 : i32
    %112 = arith.extui %111 : i1 to i32
    %c0_i32_46 = arith.constant 0 : i32
    %113 = arith.cmpi ne, %112, %c0_i32_46 : i32
    scf.if %113 {
      %c0_48 = arith.constant 0 : index
      %c0_49 = arith.constant 0 : index
      %117 = vector.load %arg3[%c0_48, %c0_49] : memref<4x1xf32, #tpu.memory_space<vmem>>, vector<4x1xf32>
      %c0_50 = arith.constant 0 : index
      %c0_51 = arith.constant 0 : index
      %118 = vector.load %arg4[%c0_50, %c0_51] : memref<4x1xf32, #tpu.memory_space<vmem>>, vector<4x1xf32>
      %119 = math.log %117 : vector<4x1xf32>
      %cst_52 = arith.constant -1.000000e+02 : f32
      %120 = vector.broadcast %cst_52 : f32 to vector<4x1xf32>
      %121 = arith.maximumf %119, %120 : vector<4x1xf32>
      %cst_53 = arith.constant 1.000000e+00 : f32
      %122 = vector.broadcast %cst_53 : f32 to vector<4x1xf32>
      %123 = arith.subf %122, %117 : vector<4x1xf32>
      %124 = math.log %123 : vector<4x1xf32>
      %cst_54 = arith.constant -1.000000e+02 : f32
      %125 = vector.broadcast %cst_54 : f32 to vector<4x1xf32>
      %126 = arith.maximumf %124, %125 : vector<4x1xf32>
      %127 = arith.mulf %118, %121 : vector<4x1xf32>
      %cst_55 = arith.constant 1.000000e+00 : f32
      %128 = vector.broadcast %cst_55 : f32 to vector<4x1xf32>
      %129 = arith.subf %128, %118 : vector<4x1xf32>
      %130 = arith.mulf %129, %126 : vector<4x1xf32>
      %131 = arith.addf %127, %130 : vector<4x1xf32>
      %cst_56 = arith.constant 0.000000e+00 : f32
      %132 = vector.broadcast %cst_56 : f32 to vector<4x1xf32>
      %133 = arith.subf %132, %131 : vector<4x1xf32>
      %134 = vector.shape_cast %133 : vector<4x1xf32> to vector<1x4x1xf32>
      %cst_57 = arith.constant dense<0.000000e+00> : vector<1xf32>
      %135 = vector.multi_reduction <add>, %134, %cst_57 [1, 2] : vector<1x4x1xf32> to vector<1xf32>
      %136 = vector.shape_cast %135 : vector<1xf32> to vector<1x1x1xf32>
      %137 = vector.extract %136[0, 0, 0] : f32 from vector<1x1x1xf32>
      %c3 = arith.constant 3 : index
      %138 = memref.load %arg12[%c3] : memref<10xf32, #tpu.memory_space<smem>>
      memref.store %137, %arg12[%c3] : memref<10xf32, #tpu.memory_space<smem>>
      %c0_58 = arith.constant 0 : index
      %c0_59 = arith.constant 0 : index
      %c0_60 = arith.constant 0 : index
      %139 = vector.load %arg7[%c0_58, %c0_59, %c0_60] : memref<4x8x1024xf32, #tpu.memory_space<vmem>>, vector<4x8x1024xf32>
      %c0_61 = arith.constant 0 : index
      %c0_62 = arith.constant 0 : index
      %c0_63 = arith.constant 0 : index
      %140 = vector.load %arg8[%c0_61, %c0_62, %c0_63] : memref<4x1x1024xf32, #tpu.memory_space<vmem>>, vector<4x1x1024xf32>
      %cst_64 = arith.constant dense<0xFF800000> : vector<4x1xf32>
      %141 = vector.multi_reduction <maximumf>, %140, %cst_64 [2] : vector<4x1x1024xf32> to vector<4x1xf32>
      %142 = vector.shape_cast %141 : vector<4x1xf32> to vector<4x1x1xf32>
      %143 = tpu.iota {dimensions = array<i32: 2>} : vector<4x1x1024xi32>
      %144 = vector.broadcast %142 : vector<4x1x1xf32> to vector<4x1x1024xf32>
      %145 = arith.cmpf oeq, %140, %144 : vector<4x1x1024xf32>
      %c1024_i32 = arith.constant 1024 : i32
      %146 = vector.broadcast %c1024_i32 : i32 to vector<4x1x1024xi32>
      %147 = arith.select %145, %143, %146 : vector<4x1x1024xi1>, vector<4x1x1024xi32>
      %cst_65 = arith.constant dense<2147483647> : vector<4x1xi32>
      %148 = vector.multi_reduction <minsi>, %147, %cst_65 [2] : vector<4x1x1024xi32> to vector<4x1xi32>
      %149 = vector.shape_cast %148 : vector<4x1xi32> to vector<4x1x1xi32>
      %150 = vector.broadcast %149 : vector<4x1x1xi32> to vector<4x1x1024xi32>
      %151 = arith.cmpi eq, %143, %150 : vector<4x1x1024xi32>
      %152 = arith.extui %151 : vector<4x1x1024xi1> to vector<4x1x1024xi32>
      %153 = arith.sitofp %152 : vector<4x1x1024xi32> to vector<4x1x1024xf32>
      %154 = vector.broadcast %153 : vector<4x1x1024xf32> to vector<4x8x1024xf32>
      %155 = arith.mulf %139, %154 : vector<4x8x1024xf32>
      %cst_66 = arith.constant dense<0.000000e+00> : vector<4x8xf32>
      %156 = vector.multi_reduction <add>, %155, %cst_66 [2] : vector<4x8x1024xf32> to vector<4x8xf32>
      %157 = vector.shape_cast %156 : vector<4x8xf32> to vector<4x8x1xf32>
      %158 = arith.truncf %157 : vector<4x8x1xf32> to vector<4x8x1xbf16>
      %159 = arith.truncf %139 : vector<4x8x1024xf32> to vector<4x8x1024xbf16>
      %cst_67 = arith.constant dense<0.000000e+00> : vector<4x1x1024xf32>
      %160 = tpu.matmul %158, %159, %cst_67 {dimension_numbers = #tpu.dot_dimension_numbers<[1], [1], [2], [2], [0, 0, 0, 2, 1, 2], [0], [0]>} : vector<4x8x1xbf16>, vector<4x8x1024xbf16>, vector<4x1x1024xf32> -> vector<4x1x1024xf32>
      %cst_68 = arith.constant 0.353553385 : f32
      %161 = vector.broadcast %cst_68 : f32 to vector<4x1x1024xf32>
      %162 = arith.mulf %160, %161 : vector<4x1x1024xf32>
      %cst_69 = arith.constant 0.000000e+00 : f32
      %163 = vector.broadcast %cst_69 : f32 to vector<4x1x1024xf32>
      %164 = arith.maximumf %162, %163 : vector<4x1x1024xf32>
      %165 = math.absf %162 : vector<4x1x1024xf32>
      %cst_70 = arith.constant 0.000000e+00 : f32
      %166 = vector.broadcast %cst_70 : f32 to vector<4x1x1024xf32>
      %167 = arith.subf %166, %165 : vector<4x1x1024xf32>
      %168 = math.exp %167 : vector<4x1x1024xf32>
      %cst_71 = arith.constant 1.000000e+00 : f32
      %169 = vector.broadcast %cst_71 : f32 to vector<4x1x1024xf32>
      %170 = arith.addf %169, %168 : vector<4x1x1024xf32>
      %171 = math.log %170 : vector<4x1x1024xf32>
      %172 = arith.addf %164, %171 : vector<4x1x1024xf32>
      %173 = arith.subf %162, %172 : vector<4x1x1024xf32>
      %cst_72 = arith.constant -1.000000e+02 : f32
      %174 = vector.broadcast %cst_72 : f32 to vector<4x1x1024xf32>
      %175 = arith.maximumf %173, %174 : vector<4x1x1024xf32>
      %cst_73 = arith.constant 0.000000e+00 : f32
      %176 = vector.broadcast %cst_73 : f32 to vector<4x1x1024xf32>
      %177 = arith.subf %176, %172 : vector<4x1x1024xf32>
      %cst_74 = arith.constant -1.000000e+02 : f32
      %178 = vector.broadcast %cst_74 : f32 to vector<4x1x1024xf32>
      %179 = arith.maximumf %177, %178 : vector<4x1x1024xf32>
      %180 = arith.mulf %140, %175 : vector<4x1x1024xf32>
      %cst_75 = arith.constant 1.000000e+00 : f32
      %181 = vector.broadcast %cst_75 : f32 to vector<4x1x1024xf32>
      %182 = arith.subf %181, %140 : vector<4x1x1024xf32>
      %183 = arith.mulf %182, %179 : vector<4x1x1024xf32>
      %184 = arith.addf %180, %183 : vector<4x1x1024xf32>
      %cst_76 = arith.constant 0.000000e+00 : f32
      %185 = vector.broadcast %cst_76 : f32 to vector<4x1x1024xf32>
      %186 = arith.subf %185, %184 : vector<4x1x1024xf32>
      %187 = vector.shape_cast %186 : vector<4x1x1024xf32> to vector<1x4x1x1024xf32>
      %cst_77 = arith.constant dense<0.000000e+00> : vector<1xf32>
      %188 = vector.multi_reduction <add>, %187, %cst_77 [1, 2, 3] : vector<1x4x1x1024xf32> to vector<1xf32>
      %189 = vector.shape_cast %188 : vector<1xf32> to vector<1x1x1x1xf32>
      %190 = vector.extract %189[0, 0, 0, 0] : f32 from vector<1x1x1x1xf32>
      %c8 = arith.constant 8 : index
      %191 = memref.load %arg12[%c8] : memref<10xf32, #tpu.memory_space<smem>>
      memref.store %190, %arg12[%c8] : memref<10xf32, #tpu.memory_space<smem>>
      %c0_78 = arith.constant 0 : index
      %c0_79 = arith.constant 0 : index
      %192 = vector.load %arg9[%c0_78, %c0_79] : memref<4x32xf32, #tpu.memory_space<vmem>>, vector<4x32xf32>
      %c0_80 = arith.constant 0 : index
      %c0_81 = arith.constant 0 : index
      %193 = vector.load %arg10[%c0_80, %c0_81] : memref<4x32xf32, #tpu.memory_space<vmem>>, vector<4x32xf32>
      %cst_82 = arith.constant 1.000000e+00 : f32
      %194 = vector.broadcast %cst_82 : f32 to vector<1x1xf32>
      %195 = arith.truncf %192 : vector<4x32xf32> to vector<4x32xbf16>
      %cst_83 = arith.constant dense<0.000000e+00> : vector<4x4xf32>
      %196 = tpu.matmul %195, %195, %cst_83 {dimension_numbers = #tpu.dot_dimension_numbers<[1], [1], [0], [0], [0, 0, 1, 0], [], []>} : vector<4x32xbf16>, vector<4x32xbf16>, vector<4x4xf32> -> vector<4x4xf32>
      %197 = arith.mulf %192, %192 : vector<4x32xf32>
      %cst_84 = arith.constant dense<0.000000e+00> : vector<4xf32>
      %198 = vector.multi_reduction <add>, %197, %cst_84 [1] : vector<4x32xf32> to vector<4xf32>
      %199 = vector.shape_cast %198 : vector<4xf32> to vector<4x1xf32>
      %cst_85 = arith.constant dense<0.000000e+00> : vector<1x4xf32>
      %200 = tpu.matmul %194, %199, %cst_85 {dimension_numbers = #tpu.dot_dimension_numbers<[1], [1], [0], [0], [0, 0, 1, 0], [], []>} : vector<1x1xf32>, vector<4x1xf32>, vector<1x4xf32> -> vector<1x4xf32>
      %201 = vector.broadcast %199 : vector<4x1xf32> to vector<4x4xf32>
      %202 = vector.broadcast %200 : vector<1x4xf32> to vector<4x4xf32>
      %203 = arith.addf %201, %202 : vector<4x4xf32>
      %cst_86 = arith.constant 2.000000e+00 : f32
      %204 = vector.broadcast %cst_86 : f32 to vector<4x4xf32>
      %205 = arith.mulf %204, %196 : vector<4x4xf32>
      %206 = arith.subf %203, %205 : vector<4x4xf32>
      %cst_87 = arith.constant 0.000000e+00 : f32
      %207 = vector.broadcast %cst_87 : f32 to vector<4x4xf32>
      %208 = arith.subf %207, %206 : vector<4x4xf32>
      %cst_88 = arith.constant 1.000000e+00 : f32
      %209 = vector.broadcast %cst_88 : f32 to vector<4x4xf32>
      %210 = arith.mulf %208, %209 : vector<4x4xf32>
      %211 = math.exp %210 : vector<4x4xf32>
      %212 = arith.truncf %193 : vector<4x32xf32> to vector<4x32xbf16>
      %cst_89 = arith.constant dense<0.000000e+00> : vector<4x4xf32>
      %213 = tpu.matmul %212, %212, %cst_89 {dimension_numbers = #tpu.dot_dimension_numbers<[1], [1], [0], [0], [0, 0, 1, 0], [], []>} : vector<4x32xbf16>, vector<4x32xbf16>, vector<4x4xf32> -> vector<4x4xf32>
      %214 = arith.mulf %193, %193 : vector<4x32xf32>
      %cst_90 = arith.constant dense<0.000000e+00> : vector<4xf32>
      %215 = vector.multi_reduction <add>, %214, %cst_90 [1] : vector<4x32xf32> to vector<4xf32>
      %216 = vector.shape_cast %215 : vector<4xf32> to vector<4x1xf32>
      %cst_91 = arith.constant dense<0.000000e+00> : vector<1x4xf32>
      %217 = tpu.matmul %194, %216, %cst_91 {dimension_numbers = #tpu.dot_dimension_numbers<[1], [1], [0], [0], [0, 0, 1, 0], [], []>} : vector<1x1xf32>, vector<4x1xf32>, vector<1x4xf32> -> vector<1x4xf32>
      %218 = vector.broadcast %216 : vector<4x1xf32> to vector<4x4xf32>
      %219 = vector.broadcast %217 : vector<1x4xf32> to vector<4x4xf32>
      %220 = arith.addf %218, %219 : vector<4x4xf32>
      %cst_92 = arith.constant 2.000000e+00 : f32
      %221 = vector.broadcast %cst_92 : f32 to vector<4x4xf32>
      %222 = arith.mulf %221, %213 : vector<4x4xf32>
      %223 = arith.subf %220, %222 : vector<4x4xf32>
      %cst_93 = arith.constant 0.000000e+00 : f32
      %224 = vector.broadcast %cst_93 : f32 to vector<4x4xf32>
      %225 = arith.subf %224, %223 : vector<4x4xf32>
      %cst_94 = arith.constant 1.000000e+00 : f32
      %226 = vector.broadcast %cst_94 : f32 to vector<4x4xf32>
      %227 = arith.mulf %225, %226 : vector<4x4xf32>
      %228 = math.exp %227 : vector<4x4xf32>
      %cst_95 = arith.constant dense<0.000000e+00> : vector<4xf32>
      %229 = vector.multi_reduction <add>, %211, %cst_95 [1] : vector<4x4xf32> to vector<4xf32>
      %230 = vector.shape_cast %229 : vector<4xf32> to vector<4x1xf32>
      %cst_96 = arith.constant 4.000000e+00 : f32
      %231 = vector.broadcast %cst_96 : f32 to vector<4x1xf32>
      %232 = arith.divf %230, %231 : vector<4x1xf32>
      %cst_97 = arith.constant dense<0.000000e+00> : vector<4xf32>
      %233 = vector.multi_reduction <add>, %211, %cst_97 [0] : vector<4x4xf32> to vector<4xf32>
      %234 = vector.shape_cast %233 : vector<4xf32> to vector<1x4xf32>
      %cst_98 = arith.constant 4.000000e+00 : f32
      %235 = vector.broadcast %cst_98 : f32 to vector<1x4xf32>
      %236 = arith.divf %234, %235 : vector<1x4xf32>
      %237 = vector.shape_cast %211 : vector<4x4xf32> to vector<1x4x4xf32>
      %cst_99 = arith.constant dense<0.000000e+00> : vector<1xf32>
      %238 = vector.multi_reduction <add>, %237, %cst_99 [1, 2] : vector<1x4x4xf32> to vector<1xf32>
      %239 = vector.shape_cast %238 : vector<1xf32> to vector<1x1x1xf32>
      %240 = vector.extract %239[0, 0, 0] : f32 from vector<1x1x1xf32>
      %cst_100 = arith.constant 1.600000e+01 : f32
      %241 = arith.divf %240, %cst_100 : f32
      %242 = vector.broadcast %232 : vector<4x1xf32> to vector<4x4xf32>
      %243 = arith.subf %211, %242 : vector<4x4xf32>
      %244 = vector.broadcast %236 : vector<1x4xf32> to vector<4x4xf32>
      %245 = arith.subf %243, %244 : vector<4x4xf32>
      %246 = vector.broadcast %241 : f32 to vector<4x4xf32>
      %247 = arith.addf %245, %246 : vector<4x4xf32>
      %248 = arith.mulf %228, %247 : vector<4x4xf32>
      %249 = vector.shape_cast %248 : vector<4x4xf32> to vector<1x4x4xf32>
      %cst_101 = arith.constant dense<0.000000e+00> : vector<1xf32>
      %250 = vector.multi_reduction <add>, %249, %cst_101 [1, 2] : vector<1x4x4xf32> to vector<1xf32>
      %251 = vector.shape_cast %250 : vector<1xf32> to vector<1x1x1xf32>
      %252 = vector.extract %251[0, 0, 0] : f32 from vector<1x1x1xf32>
      %cst_102 = arith.constant 0.111111112 : f32
      %253 = arith.mulf %252, %cst_102 : f32
      %c9 = arith.constant 9 : index
      %254 = memref.load %arg12[%c9] : memref<10xf32, #tpu.memory_space<smem>>
      memref.store %253, %arg12[%c9] : memref<10xf32, #tpu.memory_space<smem>>
    } else {
    }
    %c1_i32 = arith.constant 1 : i32
    %114 = arith.cmpi eq, %arg0, %c1_i32 : i32
    %115 = arith.extui %114 : i1 to i32
    %c0_i32_47 = arith.constant 0 : i32
    %116 = arith.cmpi ne, %115, %c0_i32_47 : i32
    scf.if %116 {
      %c0_48 = arith.constant 0 : index
      %c0_49 = arith.constant 0 : index
      %117 = vector.load %arg13[%c0_48, %c0_49] : memref<4x4xf32, #tpu.memory_space<vmem>>, vector<4x4xf32>
      %118 = tpu.iota {dimensions = array<i32: 0>} : vector<4x4xi32>
      %119 = tpu.iota {dimensions = array<i32: 1>} : vector<4x4xi32>
      %120 = arith.cmpi eq, %118, %119 : vector<4x4xi32>
      %cst_50 = arith.constant 0.000000e+00 : f32
      %121 = vector.broadcast %cst_50 : f32 to vector<4x4xf32>
      %122 = arith.select %120, %117, %121 : vector<4x4xi1>, vector<4x4xf32>
      %cst_51 = arith.constant dense<0.000000e+00> : vector<4xf32>
      %123 = vector.multi_reduction <add>, %122, %cst_51 [1] : vector<4x4xf32> to vector<4xf32>
      %124 = vector.shape_cast %123 : vector<4xf32> to vector<4x1xf32>
      %cst_52 = arith.constant dense<0.000000e+00> : vector<4xf32>
      %125 = vector.multi_reduction <add>, %122, %cst_52 [0] : vector<4x4xf32> to vector<4xf32>
      %126 = vector.shape_cast %125 : vector<4xf32> to vector<1x4xf32>
      %127 = vector.broadcast %124 : vector<4x1xf32> to vector<4x4xf32>
      %128 = vector.broadcast %126 : vector<1x4xf32> to vector<4x4xf32>
      %129 = arith.mulf %127, %128 : vector<4x4xf32>
      %130 = math.sqrt %129 : vector<4x4xf32>
      %cst_53 = arith.constant 9.99999997E-7 : f32
      %131 = vector.broadcast %cst_53 : f32 to vector<4x4xf32>
      %132 = arith.maximumf %130, %131 : vector<4x4xf32>
      %133 = arith.divf %117, %132 : vector<4x4xf32>
      %cst_54 = arith.constant 1.000000e+00 : f32
      %134 = vector.broadcast %cst_54 : f32 to vector<4x4xf32>
      %135 = arith.subf %134, %133 : vector<4x4xf32>
      %cst_55 = arith.constant 5.000000e-01 : f32
      %136 = vector.broadcast %cst_55 : f32 to vector<4x4xf32>
      %137 = arith.mulf %136, %135 : vector<4x4xf32>
      %c2_i32 = arith.constant 2 : i32
      %138 = vector.broadcast %c2_i32 : i32 to vector<4x4xi32>
      %139 = arith.cmpi slt, %118, %138 : vector<4x4xi32>
      %c2_i32_56 = arith.constant 2 : i32
      %140 = vector.broadcast %c2_i32_56 : i32 to vector<4x4xi32>
      %141 = arith.cmpi slt, %119, %140 : vector<4x4xi32>
      %142 = arith.andi %139, %141 : vector<4x4xi1>
      %c2_i32_57 = arith.constant 2 : i32
      %143 = vector.broadcast %c2_i32_57 : i32 to vector<4x4xi32>
      %144 = arith.cmpi slt, %118, %143 : vector<4x4xi32>
      %c2_i32_58 = arith.constant 2 : i32
      %145 = vector.broadcast %c2_i32_58 : i32 to vector<4x4xi32>
      %146 = arith.cmpi sge, %119, %145 : vector<4x4xi32>
      %147 = arith.andi %144, %146 : vector<4x4xi1>
      %cst_59 = arith.constant 0.000000e+00 : f32
      %148 = vector.broadcast %cst_59 : f32 to vector<4x4xf32>
      %149 = arith.select %142, %137, %148 : vector<4x4xi1>, vector<4x4xf32>
      %150 = vector.shape_cast %149 : vector<4x4xf32> to vector<1x4x4xf32>
      %cst_60 = arith.constant dense<0.000000e+00> : vector<1xf32>
      %151 = vector.multi_reduction <add>, %150, %cst_60 [1, 2] : vector<1x4x4xf32> to vector<1xf32>
      %152 = vector.shape_cast %151 : vector<1xf32> to vector<1x1x1xf32>
      %153 = vector.extract %152[0, 0, 0] : f32 from vector<1x1x1xf32>
      %c4 = arith.constant 4 : index
      %154 = memref.load %arg12[%c4] : memref<10xf32, #tpu.memory_space<smem>>
      memref.store %153, %arg12[%c4] : memref<10xf32, #tpu.memory_space<smem>>
      %cst_61 = arith.constant 0.000000e+00 : f32
      %155 = vector.broadcast %cst_61 : f32 to vector<4x4xf32>
      %156 = arith.select %147, %137, %155 : vector<4x4xi1>, vector<4x4xf32>
      %157 = vector.shape_cast %156 : vector<4x4xf32> to vector<1x4x4xf32>
      %cst_62 = arith.constant dense<0.000000e+00> : vector<1xf32>
      %158 = vector.multi_reduction <add>, %157, %cst_62 [1, 2] : vector<1x4x4xf32> to vector<1xf32>
      %159 = vector.shape_cast %158 : vector<1xf32> to vector<1x1x1xf32>
      %160 = vector.extract %159[0, 0, 0] : f32 from vector<1x1x1xf32>
      %c5 = arith.constant 5 : index
      %161 = memref.load %arg12[%c5] : memref<10xf32, #tpu.memory_space<smem>>
      memref.store %160, %arg12[%c5] : memref<10xf32, #tpu.memory_space<smem>>
      %c0_63 = arith.constant 0 : index
      %162 = memref.load %arg12[%c0_63] : memref<10xf32, #tpu.memory_space<smem>>
      %c0_64 = arith.constant 0 : index
      %163 = memref.load %arg11[%c0_64] : memref<10xf32, #tpu.memory_space<smem>>
      memref.store %162, %arg11[%c0_64] : memref<10xf32, #tpu.memory_space<smem>>
      %c1_65 = arith.constant 1 : index
      %164 = memref.load %arg12[%c1_65] : memref<10xf32, #tpu.memory_space<smem>>
      %c1_66 = arith.constant 1 : index
      %165 = memref.load %arg11[%c1_66] : memref<10xf32, #tpu.memory_space<smem>>
      memref.store %164, %arg11[%c1_66] : memref<10xf32, #tpu.memory_space<smem>>
      %c2_67 = arith.constant 2 : index
      %166 = memref.load %arg12[%c2_67] : memref<10xf32, #tpu.memory_space<smem>>
      %c2_68 = arith.constant 2 : index
      %167 = memref.load %arg11[%c2_68] : memref<10xf32, #tpu.memory_space<smem>>
      memref.store %166, %arg11[%c2_68] : memref<10xf32, #tpu.memory_space<smem>>
      %c3 = arith.constant 3 : index
      %168 = memref.load %arg12[%c3] : memref<10xf32, #tpu.memory_space<smem>>
      %c3_69 = arith.constant 3 : index
      %169 = memref.load %arg11[%c3_69] : memref<10xf32, #tpu.memory_space<smem>>
      memref.store %168, %arg11[%c3_69] : memref<10xf32, #tpu.memory_space<smem>>
      %c4_70 = arith.constant 4 : index
      %170 = memref.load %arg12[%c4_70] : memref<10xf32, #tpu.memory_space<smem>>
      %c4_71 = arith.constant 4 : index
      %171 = memref.load %arg11[%c4_71] : memref<10xf32, #tpu.memory_space<smem>>
      memref.store %170, %arg11[%c4_71] : memref<10xf32, #tpu.memory_space<smem>>
      %c5_72 = arith.constant 5 : index
      %172 = memref.load %arg12[%c5_72] : memref<10xf32, #tpu.memory_space<smem>>
      %c5_73 = arith.constant 5 : index
      %173 = memref.load %arg11[%c5_73] : memref<10xf32, #tpu.memory_space<smem>>
      memref.store %172, %arg11[%c5_73] : memref<10xf32, #tpu.memory_space<smem>>
      %c6_74 = arith.constant 6 : index
      %174 = memref.load %arg12[%c6_74] : memref<10xf32, #tpu.memory_space<smem>>
      %c6_75 = arith.constant 6 : index
      %175 = memref.load %arg11[%c6_75] : memref<10xf32, #tpu.memory_space<smem>>
      memref.store %174, %arg11[%c6_75] : memref<10xf32, #tpu.memory_space<smem>>
      %c7_76 = arith.constant 7 : index
      %176 = memref.load %arg12[%c7_76] : memref<10xf32, #tpu.memory_space<smem>>
      %c7_77 = arith.constant 7 : index
      %177 = memref.load %arg11[%c7_77] : memref<10xf32, #tpu.memory_space<smem>>
      memref.store %176, %arg11[%c7_77] : memref<10xf32, #tpu.memory_space<smem>>
      %c8 = arith.constant 8 : index
      %178 = memref.load %arg12[%c8] : memref<10xf32, #tpu.memory_space<smem>>
      %c8_78 = arith.constant 8 : index
      %179 = memref.load %arg11[%c8_78] : memref<10xf32, #tpu.memory_space<smem>>
      memref.store %178, %arg11[%c8_78] : memref<10xf32, #tpu.memory_space<smem>>
      %c9 = arith.constant 9 : index
      %180 = memref.load %arg12[%c9] : memref<10xf32, #tpu.memory_space<smem>>
      %c9_79 = arith.constant 9 : index
      %181 = memref.load %arg11[%c9_79] : memref<10xf32, #tpu.memory_space<smem>>
      memref.store %180, %arg11[%c9_79] : memref<10xf32, #tpu.memory_space<smem>>
    } else {
    }
    return
  }
  func.func @transform_0(%arg0: i32) -> (i32, i32) {
    %c0_i32 = arith.constant 0 : i32
    %c0_i32_0 = arith.constant 0 : i32
    return %c0_i32, %arg0 : i32, i32
  }
  func.func @transform_1(%arg0: i32) -> (i32, i32) {
    %c0_i32 = arith.constant 0 : i32
    %c0_i32_0 = arith.constant 0 : i32
    return %c0_i32, %arg0 : i32, i32
  }
  func.func @transform_2(%arg0: i32) -> (i32, i32) {
    %c0_i32 = arith.constant 0 : i32
    %c0_i32_0 = arith.constant 0 : i32
    %c0_i32_1 = arith.constant 0 : i32
    return %c0_i32, %c0_i32_0 : i32, i32
  }
  func.func @transform_3(%arg0: i32) -> (i32, i32) {
    %c0_i32 = arith.constant 0 : i32
    %c0_i32_0 = arith.constant 0 : i32
    %c0_i32_1 = arith.constant 0 : i32
    return %c0_i32, %c0_i32_0 : i32, i32
  }
  func.func @transform_4(%arg0: i32) -> (i32, i32) {
    %c0_i32 = arith.constant 0 : i32
    %c0_i32_0 = arith.constant 0 : i32
    return %c0_i32, %arg0 : i32, i32
  }
  func.func @transform_5(%arg0: i32) -> (i32, i32) {
    %c0_i32 = arith.constant 0 : i32
    %c0_i32_0 = arith.constant 0 : i32
    return %c0_i32, %arg0 : i32, i32
  }
  func.func @transform_6(%arg0: i32) -> (i32, i32, i32) {
    %c0_i32 = arith.constant 0 : i32
    %c0_i32_0 = arith.constant 0 : i32
    %c0_i32_1 = arith.constant 0 : i32
    %c0_i32_2 = arith.constant 0 : i32
    return %c0_i32, %c0_i32_0, %c0_i32_1 : i32, i32, i32
  }
  func.func @transform_7(%arg0: i32) -> (i32, i32, i32) {
    %c0_i32 = arith.constant 0 : i32
    %c0_i32_0 = arith.constant 0 : i32
    %c0_i32_1 = arith.constant 0 : i32
    %c0_i32_2 = arith.constant 0 : i32
    return %c0_i32, %c0_i32_0, %c0_i32_1 : i32, i32, i32
  }
  func.func @transform_8(%arg0: i32) -> (i32, i32) {
    %c0_i32 = arith.constant 0 : i32
    %c0_i32_0 = arith.constant 0 : i32
    %c0_i32_1 = arith.constant 0 : i32
    return %c0_i32, %c0_i32_0 : i32, i32
  }
  func.func @transform_9(%arg0: i32) -> (i32, i32) {
    %c0_i32 = arith.constant 0 : i32
    %c0_i32_0 = arith.constant 0 : i32
    %c0_i32_1 = arith.constant 0 : i32
    return %c0_i32, %c0_i32_0 : i32, i32
  }
  func.func @transform_10(%arg0: i32) -> i32 {
    %c0_i32 = arith.constant 0 : i32
    %c0_i32_0 = arith.constant 0 : i32
    return %c0_i32 : i32
  }
}

</mosaic_0001>

<bundles_post_ra>
// kernel: tpu_custom_call.1
= control target key start
LH: loop header
LB: loop body
LE: loop exit
PB: predicated region body
PF: predicated region fallthrough
CT: control target
= control target key end

     0   :  { %s5380_s0 = inlined_call_operand.hbm [shape: f32[4,1024], index: 0, kind: input, shape index: {}]   ;;  %s5381_s1 = inlined_call_operand.hbm [shape: f32[4,1024], index: 1, kind: input, shape index: {}]   ;;  %s5382_s2 = inlined_call_operand.vmem [shape: f32[4,1], index: 2, kind: input, shape index: {}]   ;;  %s5383_s3 = inlined_call_operand.vmem [shape: f32[4,1], index: 3, kind: input, shape index: {}]   ;;  %s5384_s4 = inlined_call_operand.hbm [shape: f32[4,2048], index: 4, kind: input, shape index: {}]   ;;  %s5385_s5 = inlined_call_operand.hbm [shape: f32[4,2048], index: 5, kind: input, shape index: {}]   ;;  %s5386_s6 = inlined_call_operand.hbm [shape: f32[4,8,1024], index: 6, kind: input, shape index: {}]   ;;  %s5387_s7 = inlined_call_operand.hbm [shape: f32[4,1,1024], index: 7, kind: input, shape index: {}]   ;;  %s5388_s8 = inlined_call_operand.vmem [shape: f32[4,32], index: 8, kind: input, shape index: {}]   ;;  %s5389_s9 = inlined_call_operand.vmem [shape: f32[4,32], index: 9, kind: input, shape index: {}]   ;;  %s5390_s10 = inlined_call_operand.hbm [shape: f32[10], index: 10, kind: output, shape index: {}]  }
   0x1   :  { %5398 = sst [smem:[#allocation25_spill]] %s5381_s1 }
   0x2   :  { %5399 = sst [smem:[#allocation26_spill]] %s5383_s3 }
   0x3   :  { %5400 = sst [smem:[#allocation27_spill]] %s5386_s6 }
   0x4   :  { %5401 = sst [smem:[#allocation28_spill]] %s5387_s7 }
   0x5   :  { %5402 = sst [smem:[#allocation29_spill]] %s5390_s10 }
   0x6   :  { %15 = vsyncpa [#allocation5], 0 }
   0x7   :  { %17 = vsyncpa [#allocation5 + $0x1], 0 }
   0x8   :  { %18 = vsyncpa [#allocation8], 0 }
   0x9   :  { %20 = vsyncpa [#allocation8 + $0x1], 0 }
   0xa   :  { %21 = vsyncpa [#allocation11], 0 }
   0xb   :  { %23 = vsyncpa [#allocation11 + $0x1], 0 }
   0xc   :  { %24 = vsyncpa [#allocation14], 0 }
   0xd   :  { %25 = vsyncpa [#allocation6], 0  ;;  %s4214_s13 = smov 0   ;;  %s4216_s14 = smov 0  }
   0xe   :  { %s4218_s15 = smov 0   ;;  %s4220_s16 = smov 0  }
   0xf LB: > { %5403 = sst [smem:[#allocation22_spill]] %s4139_s15  ;;  %s4233_s17 = sadd.s32 4294967295, %s4143_s16   ;;  %s4143_s16 = sphi %s4220_s16, %s5425_s16   ;;  %s4139_s15 = sphi %s4218_s15, %s5427_s15   ;;  %s4135_s14 = sphi %s4216_s14, %s5429_s14   ;;  %s4131_s13 = sphi %s4214_s13, %s5428_s13  }
  0x10   : > { %p51_p0 = scmp.ne.s32.totalorder %s4135_s14, %s4131_s13  ;;  %p52_p1 = scmp.eq.s32.totalorder %s4233_s17, 0 }
  0x11   : > { %p3491_p2 = scmp.ge.s32.totalorder %s4143_s16, 1  ;;  %p287_p3 = scmp.lt.s32.totalorder %s4143_s16, 3 }
  0x12   : > { %p3492_p4 = scmp.ne.s32.totalorder %s4233_s17, 0  ;;  %p4242_p5 = por %p52_p1, %p51_p0 }
  0x13   : > { %s5405_s6 = sld [smem:[#allocation27_spill]]  ;;  %p4249_p6 = pnand %p3491_p2, %p287_p3 }
  0x14   : > { %s4145_s23 = smov [#allocation12]   ;;  %s4262_s26 = sadd.s32 1, %s4143_s16  }
  0x15   : > { %p3658_p7 = pneg %p4249_p6  ;;  %s306_s24 = sshll.u32 %s4145_s23, 4  ;;  %s307_s24 = int_to_ptr.vmem [resolvable:$true] %s306_s24 }
  0x16   : > { %5408 = sst [smem:[#allocation23_spill]] %s4262_s26  ;;  %s4146_s27 = smov 1024  }
  0x17   : > { %p4257_p8 = pnand %p3658_p7, %p52_p1  ;;  %s4147_s28 = smov 64  }
  0x18   : > { %s35_s29 = ssub.s32 %s4143_s16, %s4262_s26  ;;  %s38_s30 = sadd.s32 1, %s4139_s15 }
  0x19   : > { %s304_s21 = sshll.u32 %s5405_s6, 4  ;;  %p36_p9 = scmp.eq.s32.totalorder %s35_s29, 0  ;;  %s305_s21 = int_to_ptr.hbm [resolvable:$true] %s304_s21 }
  0x1a   : > { %3661 = dma.hbm_to_vmem [thread:$0]  (!%p4257_p8), %s305_s21, 4096, %s307_s24, [#allocation11], %s4146_s27, %s4146_s27, %s4147_s28  }
  0x1b   : > { %p45_p10 = scmp.ne.s32.totalorder %s4139_s15, %s4135_s14  ;;  %p46_p11 = scmp.eq.s32.totalorder %s4143_s16, 0 }
  0x1c   : > { %p3680_p12 = scmp.lt.s32.totalorder %s4143_s16, 2  ;;  %s4277_s12 = sand.u32 1, %s4139_s15  }
  0x1d   : > { %s4274_s11 = scalar_select %p36_p9, %s4139_s15, %s38_s30  }
  0x1e   : > { %p47_p13 = por %p46_p11, %p45_p10  ;;  %s5392_s13 = sshll.u32 %s4277_s12, 4 }
  0x1f   : > { %5409 = sst [smem:[#allocation24_spill]] %s4274_s11  ;;  %s5394_s19 = sshll.u32 %s4143_s16, 4 }
  0x20   : > { %p4281_p0 = pnand %p3680_p12, %p47_p13  ;;  %s5393_s21 = sand.u32 1, %s4143_s16  }
  0x21   : > { %s5411_s1 = sld [smem:[#allocation25_spill]]  ;;  %s364_s29 = scalar_lea.vmem [#allocation7], %s5392_s13 }
  0x22   : > { %s373_s30 = sshll.u32 %s364_s29, 4  ;;  %s4295_s6 = scalar_lea.sflag [#allocation8], %s5393_s21  ;;  %s374_s30 = int_to_ptr.vmem [resolvable:$true] %s373_s30 }
  0x23   : > { %p3929_p3 = pneg %p4281_p0 }
  0x27   : > { %s369_s27 = scalar_lea.hbm %s5411_s1, %s5394_s19 }
  0x28   : > { %s371_s28 = sshll.u32 %s369_s27, 4  ;;  %s3932_s27 = scalar_lea.hbm %s5411_s1, 32  ;;  %s372_s28 = int_to_ptr.hbm [resolvable:$true] %s371_s28 }
  0x29   : > { %s3925_s11 = sshra.s32 %s372_s28, 4  ;;  %s3926_s11 = int_to_ptr.hbm [resolvable:$true] %s3925_s11 }
  0x2a   : > { %s3927_s15 = scalar_lea.hbm %s3926_s11, 16  ;;  %p3933_p10 = scmp.lt.s32.totalorder %s3926_s11, %s5411_s1 }
  0x2b   : > { %p3928_p2 = scmp.ne.s32.totalorder %s3926_s11, %s3927_s15  ;;  %p3934_p11 = scmp.lt.s32.totalorder %s3932_s27, %s3927_s15 }
  0x2d   : > { %p3930_p7 = pnand %p3929_p3, %p3928_p2  ;;  %p3935_p12 = por %p3934_p11, %p3933_p10 }
  0x2f   : > { %p3931_p9 = pneg %p3930_p7 }
  0x31   : > { %p3936_p13 = pnand %p3935_p12, %p3931_p9 }
  0x33   : > { %3939 = shalt.err (!%p3936_p13)
}
  0x34   : > { %3671 = dma.hbm_to_vmem [thread:$0]  (!%p4281_p0), %s372_s28, 256, %s374_s30, %s4295_s6  }
  0x35   : > { %s5412_s7 = sld [smem:[#allocation28_spill]]  ;;  %s4148_s13 = smov [#allocation13]  }
  0x36   : > { %s320_s11 = sshll.u32 %s4148_s13, 4  ;;  %s4149_s15 = smov 128   ;;  %s321_s11 = int_to_ptr.vmem [resolvable:$true] %s320_s11 }
  0x37   : > { %s4150_s24 = smov 8   ;;  %s5413_s27 = sshll.u32 %s4143_s16, 4 }
  0x38   : > { %s349_s26 = scalar_lea.hbm %s5380_s0, %s5413_s27  ;;  %s5414_s28 = sshll.u32 %s4277_s12, 4 }
  0x39   : > { %s344_s30 = scalar_lea.vmem [#allocation4], %s5414_s28  ;;  %s351_s19 = sshll.u32 %s349_s26, 4  ;;  %s352_s19 = int_to_ptr.hbm [resolvable:$true] %s351_s19 }
  0x3a   : > { %s353_s10 = sshll.u32 %s344_s30, 4  ;;  %s3501_s21 = sshll.u32 %s4277_s12, 5  ;;  %s354_s10 = int_to_ptr.vmem [resolvable:$true] %s353_s10 }
  0x3b   : > { %s318_s23 = sshll.u32 %s5412_s7, 4  ;;  %s341_s7 = scalar_lea.sflag [#allocation5], %s4277_s12  ;;  %s319_s23 = int_to_ptr.hbm [resolvable:$true] %s318_s23 }
  0x3c   : > { %3664 = dma.hbm_to_vmem [thread:$0]  (!%p4257_p8), %s319_s23, 512, %s321_s11, [#allocation14], %s4149_s15, %s4149_s15, %s4150_s24  }
  0x3d   : > { %s3985_s13 = sshra.s32 %s352_s19, 4  ;;  %s3992_s1 = scalar_lea.hbm %s5380_s0, 32  ;;  %s3986_s13 = int_to_ptr.hbm [resolvable:$true] %s3985_s13 }
  0x3e   : > { %s3987_s3 = scalar_lea.hbm %s3986_s13, 16  ;;  %p3993_p9 = scmp.lt.s32.totalorder %s3986_s13, %s5380_s0 }
  0x3f   : > { %p3988_p2 = scmp.ne.s32.totalorder %s3986_s13, %s3987_s3  ;;  %p3994_p10 = scmp.lt.s32.totalorder %s3992_s1, %s3987_s3 }
  0x41   : > { %p3990_p8 = pnand %p3988_p2, %p3929_p3  ;;  %p3995_p11 = por %p3994_p10, %p3993_p9 }
  0x43   : > { %p3991_p7 = pneg %p3990_p8 }
  0x45   : > { %p3996_p12 = pnand %p3995_p11, %p3991_p7 }
  0x47   : > { %3999 = shalt.err (!%p3996_p12)
}
  0x48   : > { %3668 = dma.hbm_to_vmem [thread:$0]  (!%p4281_p0), %s352_s19, 256, %s354_s10, %s341_s7  }
  0x49   : > { %s3612_s26 = sshll.u32 %s4143_s16, 5  ;;  %s384_s28 = scalar_lea.vmem [#allocation9], %s3501_s21 }
  0x4a   : > { %s389_s29 = scalar_lea.hbm %s5384_s4, %s3612_s26  ;;  %s393_s30 = sshll.u32 %s384_s28, 4  ;;  %s394_s30 = int_to_ptr.vmem [resolvable:$true] %s393_s30 }
  0x4b   : > { %s391_s25 = sshll.u32 %s389_s29, 4  ;;  %s4022_s19 = scalar_lea.hbm %s5384_s4, 64  ;;  %s392_s25 = int_to_ptr.hbm [resolvable:$true] %s391_s25 }
  0x4c   : > { %s4015_s3 = sshra.s32 %s392_s25, 4  ;;  %s4016_s3 = int_to_ptr.hbm [resolvable:$true] %s4015_s3 }
  0x4d   : > { %s4017_s13 = scalar_lea.hbm %s4016_s3, 32  ;;  %p4023_p7 = scmp.lt.s32.totalorder %s4016_s3, %s5384_s4 }
  0x4e   : > { %p4018_p13 = scmp.ne.s32.totalorder %s4016_s3, %s4017_s13  ;;  %p4024_p9 = scmp.lt.s32.totalorder %s4022_s19, %s4017_s13 }
  0x50   : > { %p4020_p2 = pnand %p4018_p13, %p3929_p3  ;;  %p4025_p10 = por %p4024_p9, %p4023_p7 }
  0x52   : > { %p4021_p8 = pneg %p4020_p2 }
  0x54   : > { %p4026_p11 = pnand %p4025_p10, %p4021_p8 }
  0x56   : > { %4029 = shalt.err (!%p4026_p11)
}
  0x57   : > { %3674 = dma.hbm_to_vmem [thread:$0]  (!%p4281_p0), %s392_s25, 512, %s394_s30, %s4295_s6  }
  0x58   : > { %s409_s24 = scalar_lea.hbm %s5385_s5, %s3612_s26  ;;  %s404_s27 = scalar_lea.vmem [#allocation10], %s3501_s21 }
  0x59   : > { %s413_s29 = sshll.u32 %s404_s27, 4  ;;  %s411_s28 = sshll.u32 %s409_s24, 4  ;;  %s414_s29 = int_to_ptr.vmem [resolvable:$true] %s413_s29  ;;  %s412_s28 = int_to_ptr.hbm [resolvable:$true] %s411_s28 }
  0x5a   : > { %s5415_s3 = sand.u32 1, %s4143_s16   ;;  %s4045_s7 = sshra.s32 %s412_s28, 4  ;;  %s4046_s7 = int_to_ptr.hbm [resolvable:$true] %s4045_s7 }
  0x5b   : > { %s401_s13 = scalar_lea.sflag [#allocation11], %s5415_s3  ;;  %s4047_s10 = scalar_lea.hbm %s4046_s7, 32 }
  0x5c   : > { %p4048_p12 = scmp.ne.s32.totalorder %s4046_s7, %s4047_s10  ;;  %s4052_s26 = scalar_lea.hbm %s5385_s5, 64 }
  0x5d   : > { %p4053_p8 = scmp.lt.s32.totalorder %s4046_s7, %s5385_s5  ;;  %p4054_p7 = scmp.lt.s32.totalorder %s4052_s26, %s4047_s10 }
  0x5e   : > { %p4050_p13 = pnand %p4048_p12, %p3929_p3 }
  0x5f   : > { %p4055_p9 = por %p4054_p7, %p4053_p8 }
  0x60   : > { %p4051_p2 = pneg %p4050_p13 }
  0x62   : > { %p4056_p10 = pnand %p4055_p9, %p4051_p2 }
  0x64   : > { %4059 = shalt.err (!%p4056_p10)
}
  0x65   : > { %3677 = dma.hbm_to_vmem [thread:$0]  (!%p4281_p0), %s412_s28, 512, %s414_s29, %s401_s13  }
  0x66   : > { %422 = sbr.rel (%p4249_p6) target bundleno = 2231 (0x8b7), region = 60  ;;  %s424_s16 = sand.u32 (!%p4249_p6), 1, %s4135_s14  }
  0x67   : > { %s3508_s25 = sshll.u32 (!%p4249_p6), %s424_s16, 4  ;;  %s425_s19 = scalar_lea.sflag (!%p4249_p6), [#allocation5], %s424_s16 }
  0x68   : > { %s4375_s23 = scalar_lea.vmem (!%p4249_p6), [#allocation4], %s3508_s25 }
  0x6b   : > { %4106 = dma.done.wait (%p4242_p5), %s425_s19, 256  }
  0x6c   : > { %4108 = vsyncadd (%p4242_p5), %s425_s19, 4294967040  ;;  %s434_s1 = sand.u32 1, %s4233_s17   ;;  %s4382_s11 = scalar_lea.vmem [#allocation7], %s3508_s25 }
  0x6d   : > { %s435_s20 = scalar_lea.sflag [#allocation8], %s434_s1 }
  0x6e   : > { %4110 = dma.done.wait (%p4242_p5), %s435_s20, 768  }
  0x6f   : > { %4112 = vsyncadd (%p4242_p5), %s435_s20, 4294966528  ;;  %s3510_s22 = sshll.u32 %s424_s16, 5  ;;  %s455_s24 = scalar_lea.sflag [#allocation11], %s434_s1 }
  0x70   : > { %s4388_s15 = scalar_lea.vmem [#allocation9], %s3510_s22  ;;  %s4390_s27 = scalar_lea.vmem [#allocation10], %s3510_s22 }
  0x71   : > { %4114 = dma.done.wait (%p4242_p5), %s455_s24, 512  }
  0x72   : > { %4116 = vsyncadd (%p4242_p5), %s455_s24, 4294966784 }
  0x73   : > { %4118 = dma.done.wait (%p52_p1), [#allocation11], 4096  }
  0x74   : > { %4120 = vsyncadd (%p52_p1), [#allocation11], 4294963200 }
  0x75   : > { %4122 = dma.done.wait (%p52_p1), [#allocation14], 512  }
  0x76   : > { %4124 = vsyncadd (%p52_p1), [#allocation14], 4294966784  ;;  %524 = sbr.rel (%p3492_p4) target bundleno = 129 (0x81), region = 88  ;;  %s4151_s29 = smov (!%p3492_p4), 0.0  }
  0x77   : > { %526 = sst [smem:[#allocation2]] (!%p3492_p4), %s4151_s29 }
  0x78   : > { %528 = sst [smem:[#allocation2 + $0x1]] (!%p3492_p4), %s4151_s29 }
  0x79   : > { %530 = sst [smem:[#allocation2 + $0x2]] (!%p3492_p4), %s4151_s29 }
  0x7a   : > { %532 = sst [smem:[#allocation2 + $0x3]] (!%p3492_p4), %s4151_s29 }
  0x7b   : > { %vm545_vm0 = vcmask 27648   ;;  %v4152_v0 = vmov 0.0   ;;  %534 = sst [smem:[#allocation2 + $0x4]] %s4151_s29 }
  0x7c   : > { %546 = vst.msk [vmem:[#allocation3] sm:$0xf] %vm545_vm0, %v4152_v0  ;;  %536 = sst [smem:[#allocation2 + $0x5]] %s4151_s29 }
  0x7d   : > { %538 = sst [smem:[#allocation2 + $0x6]] %s4151_s29 }
  0x7e   : > { %540 = sst [smem:[#allocation2 + $0x7]] %s4151_s29 }
  0x7f   : > { %542 = sst [smem:[#allocation2 + $0x8]] %s4151_s29 }
  0x80   : > { %544 = sst [smem:[#allocation2 + $0x9]] %s4151_s29 }
  0x81 PF: > { %v4407_v1 = vld [vmem:[%s4375_s23] sm:$0xff]  ;;  %v4410_v2 = vld [vmem:[%s4375_s23 + $0x8] sm:$0xff]  ;;  %vm661_vm0 = vcmask 1043456   ;;  %s647_s18 = sld [smem:[#allocation2]] }
  0x82   : > { %v551_v3 = vand.u32 2147483647, %v4407_v1  ;;  %v552_v4 = vand.u32 2147483647, %v4410_v2  ;;  %v559_v17 = vmax.f32 %v4407_v1, 0.0  ;;  %v560_v18 = vmax.f32 %v4410_v2, 0.0 }
  0x83   : > { %vm611_vm9 = vcmp.ge.f32.partialorder %v4407_v1, 0.0  ;;  %v4425_v40 = vld [vmem:[%s4382_s11] sm:$0xff]  ;;  %v4428_v41 = vld [vmem:[%s4382_s11 + $0x8] sm:$0xff]  ;;  %vm612_vm10 = vcmp.ge.f32.partialorder %v4410_v2, 0.0  ;;  %s3515_s28 = sld [smem:[#allocation2 + $0x1]] }
  0x84   : > { %v553_v5 = vsub.f32 0.0, %v551_v3  ;;  %v554_v6 = vsub.f32 0.0, %v552_v4  ;;  %v623_v52 = vsub.f32 1.0, %v4425_v40  ;;  %v624_v53 = vsub.f32 1.0, %v4428_v41  ;;  %s3516_s7 = sld [smem:[#allocation2 + $0x2]] }
  0x85   : > { %vm627_vm11 = vcmp.eq.f32.partialorder %v4425_v40, 1.0  ;;  %vm628_vm12 = vcmp.eq.f32.partialorder %v4428_v41, 1.0  ;;  %vm635_vm13 = vcmp.lt.f32.partialorder %v4425_v40, 1.0  ;;  %vm636_vm14 = vcmp.lt.f32.partialorder %v4428_v41, 1.0  ;;  %s3523_s21 = sld [smem:[#allocation2 + $0x6]] }
  0x86   : > { %v555_v7 = vmul.f32 1.442695, %v553_v5  ;;  %v557_v8 = vmul.f32 1.442695, %v554_v6  ;;  %v625_v63 = vmul.f32 %v623_v52, %v623_v52  ;;  %v626_v5 = vmul.f32 %v624_v53, %v624_v53  ;;  %s3524_s19 = sld [smem:[#allocation2 + $0x7]] }
  0x88   : > { %3732 = vpow2.f32 %v555_v7 }
  0x89   : > { %3734 = vpow2.f32 %v557_v8 }
  0x8e   : > { %v3733_v9 = vpop.eup %3732 }
  0x8f   : > { %v3735_v10 = vpop.eup %3734  ;;  %v561_v11 = vadd.f32 1.0, %v3733_v9 }
  0x90   : > { %v562_v12 = vadd.f32 1.0, %v3735_v10 }
  0x91   : > { %3736 = vlog2.f32 %v561_v11  ;;  %vm586_vm1 = vweird.f32 %v561_v11  ;;  %v592_v22 = vand.u32 2147483648, %v561_v11  ;;  %v590_v25 = vand.u32 2147483647, %v561_v11 }
  0x92   : > { %3738 = vlog2.f32 %v562_v12  ;;  %v607_v26 = vand.u32 2147483648, %v562_v12  ;;  %vm601_vm3 = vweird.f32 %v562_v12  ;;  %v605_v28 = vand.u32 2147483647, %v562_v12 }
  0x93   : > { %3740 = vrcp.f32 %v561_v11  ;;  %v593_v33 = vor.u32 1.1754944e-38, %v592_v22  ;;  %vm591_vm6 = vcmp.eq.f32.partialorder %v590_v25, 8.507059e+37  ;;  %v827_v22 = vld [vmem:[%s4388_s15 + $0x10] sm:$0xff]  ;;  %v828_v25 = vld [vmem:[%s4388_s15 + $0x18] sm:$0xff] }
  0x94   : > { %3742 = vrcp.f32 %v562_v12  ;;  %v608_v36 = vor.u32 1.1754944e-38, %v607_v26  ;;  %vm606_vm8 = vcmp.eq.f32.partialorder %v605_v28, 8.507059e+37  ;;  %v832_v26 = vld [vmem:[%s4390_s27 + $0x18] sm:$0xff] }
  0x97   : > { %v3737_v13 = vpop.eup %3736 }
  0x98   : > { %v3739_v14 = vpop.eup %3738  ;;  %v564_v19 = vmul.f32 0.6931472, %v3737_v13  ;;  %v641_v13 = vmul.f32 %v625_v63, %v625_v63  ;;  %v825_v63 = vld [vmem:[%s4388_s15] sm:$0xff] }
  0x99   : > { %v3741_v15 = vpop.eup %3740  ;;  %v566_v21 = vmul.f32 0.6931472, %v3739_v14 }
  0x9a   : > { %v3743_v16 = vpop.eup %3742  ;;  %v582_v20 = vmul.f32 %v3741_v15, %v561_v11  ;;  %vm587_vm2 = vweird.f32 %v3741_v15  ;;  %v567_v29 = vadd.f32 %v564_v19, %v559_v17  ;;  %v642_v17 = vmul.f32 %v626_v5, %v626_v5 }
  0x9b   : > { %v597_v23 = vmul.f32 %v3743_v16, %v562_v12  ;;  %vm602_vm4 = vweird.f32 %v3743_v16  ;;  %v568_v31 = vadd.f32 %v566_v21, %v560_v18  ;;  %vm4416_vm5 = vmor %vm586_vm1, %vm587_vm2  ;;  %vm836_vm1 = vcmp.gt.f32.partialorder %v832_v26, 0.0 }
  0x9c   : > { %v583_v24 = vsub.f32 1.0, %v582_v20  ;;  %vm603_vm7 = vmor %vm601_vm3, %vm602_vm4  ;;  %v569_v38 = vsub.f32 %v4407_v1, %v567_v29  ;;  %v575_v43 = vsub.f32 0.0, %v567_v29  ;;  %vm5397_vm4 = vcmask 27648  }
  0x9d   : > { %v598_v27 = vsub.f32 1.0, %v597_v23  ;;  %v570_v42 = vsub.f32 %v4410_v2, %v568_v31  ;;  %v576_v46 = vsub.f32 0.0, %v568_v31  ;;  %v831_v23 = vld [vmem:[%s4390_s27 + $0x10] sm:$0xff] }
  0x9e   : > { %v584_v30 = vmul.f32 %v3741_v15, %v583_v24  ;;  %v571_v50 = vmax.f32 %v569_v38, -9.2103405  ;;  %v577_v55 = vmax.f32 %v575_v43, -9.2103405  ;;  %vm835_vm15 = vcmp.gt.f32.partialorder %v831_v23, 0.0 }
  0x9f   : > { %v599_v34 = vmul.f32 %v3743_v16, %v598_v27  ;;  %v572_v54 = vmax.f32 %v570_v42, -9.2103405  ;;  %v578_v58 = vmax.f32 %v576_v46, -9.2103405  ;;  %v847_v24 = vsub.f32 %v827_v22, %v831_v23 }
  0xa0   : > { %v585_v35 = vadd.f32 %v3741_v15, %v584_v30  ;;  %v573_v61 = vmin.f32 %v571_v50, -0.000100005  ;;  %v579_v3 = vmin.f32 %v577_v55, -0.000100005  ;;  %v4153_v27 = vmov 0.0  }
  0xa1   : > { %v600_v37 = vadd.f32 %v3743_v16, %v599_v34  ;;  %v574_v0 = vmin.f32 %v572_v54, -0.000100005  ;;  %v580_v6 = vmin.f32 %v578_v58, -0.000100005  ;;  %v3521_v28 = vsel %vm835_vm15, 1.0, %v4153_v27  ;;  %v829_v54 = vld [vmem:[%s4390_s27] sm:$0xff] }
  0xa2   : > { %v589_v39 = vsel %vm4416_vm5, %v3741_v15, %v585_v35  ;;  %v851_v31 = vmul.f32 %v3521_v28, %v847_v24  ;;  %v848_v34 = vsub.f32 %v828_v25, %v832_v26  ;;  %v3517_v50 = vsel %vm627_vm11, 1.0, %v4153_v27 }
  0xa3   : > { %v594_v44 = vsel %vm591_vm6, %v593_v33, %v589_v39  ;;  %v604_v45 = vsel %vm603_vm7, %v3743_v16, %v600_v37  ;;  %vm833_vm2 = vcmp.gt.f32.partialorder %v829_v54, 0.0 }
  0xa4   : > { %v609_v47 = vsel %vm606_vm8, %v608_v36, %v604_v45  ;;  %v613_v48 = vmul.f32 %v3733_v9, %v594_v44  ;;  %v856_v37 = vmul.f32 %v851_v31, %v851_v31 }
  0xa5   : > { %v614_v49 = vmul.f32 %v3735_v10, %v609_v47 }
  0xa6   : > { %v615_v51 = vsel %vm611_vm9, %v594_v44, %v613_v48  ;;  %v3522_v44 = vsel %vm836_vm1, 1.0, %v4153_v27  ;;  %866 = vst [vmem:[#allocation1 + $0x20] ss:$2 sm:$0xff] %v856_v37 }
  0xa7   : > { %v616_v56 = vsel %vm612_vm10, %v609_v47, %v614_v49  ;;  %v617_v57 = vmax.f32 %v615_v51, 0.0001  ;;  %v852_v46 = vmul.f32 %v3522_v44, %v848_v34  ;;  %v3518_v51 = vsel %vm628_vm12, 1.0, %v4153_v27 }
  0xa8   : > { %v618_v59 = vmax.f32 %v616_v56, 0.0001 }
  0xa9   : > { %v619_v60 = vmin.f32 %v617_v57, 0.9999  ;;  %v857_v48 = vmul.f32 %v852_v46, %v852_v46  ;;  %v830_v57 = vld [vmem:[%s4390_s27 + $0x8] sm:$0xff] }
  0xaa   : > { %v620_v62 = vmin.f32 %v618_v59, 0.9999  ;;  %vm834_vm3 = vcmp.gt.f32.partialorder %v830_v57, 0.0 }
  0xab   : > { %v621_v4 = vsub.f32 1.0, %v619_v60  ;;  %v637_v8 = vmul.f32 %v619_v60, %v619_v60  ;;  %868 = vst [vmem:[#allocation1 + $0x30] ss:$2 sm:$0xff] %v857_v48 }
  0xac   : > { %v622_v7 = vsub.f32 1.0, %v620_v62  ;;  %v638_v9 = vmul.f32 %v620_v62, %v620_v62 }
  0xad   : > { %v629_v10 = vmul.f32 %v621_v4, %v621_v4  ;;  %v639_v15 = vmul.f32 %v637_v8, %v579_v3  ;;  %v4459_v60 = vld.sshfl [vmem:[#allocation1 + $0x20] sm:$0xff pattern:$0x75316420]  ;;  %v4462_v62 = vld.sshfl [vmem:[#allocation1 + $0x28] sm:$0xff pattern:$0x75316420] }
  0xae   : > { %v630_v11 = vmul.f32 %v622_v7, %v622_v7  ;;  %v640_v16 = vmul.f32 %v638_v9, %v580_v6  ;;  %921 = vst [vmem:[#allocation1 + $0x20] ss:$2 sm:$0xff] %v3521_v28  ;;  %v3519_v7 = vsel %vm833_vm2, 1.0, %v4153_v27  ;;  %v3520_v8 = vsel %vm834_vm3, 1.0, %v4153_v27 }
  0xaf   : > { %v631_v12 = vmul.f32 %v629_v10, %v573_v61  ;;  %v643_v20 = vmul.f32 %v641_v13, %v639_v15  ;;  %v845_v9 = vsub.f32 %v825_v63, %v829_v54  ;;  %v894_v46 = vsel %vm661_vm0, %v4462_v62, 0.0 }
  0xb0   : > { %v632_v14 = vmul.f32 %v630_v11, %v574_v0  ;;  %v644_v21 = vmul.f32 %v642_v17, %v640_v16  ;;  %v826_v0 = vld [vmem:[%s4388_s15 + $0x8] sm:$0xff] }
  0xb1   : > { %v633_v18 = vsel %vm627_vm11, %v631_v12, 0.0  ;;  %v645_v29 = vsel %vm635_vm13, %v643_v20, 0.0  ;;  %v846_v10 = vsub.f32 %v826_v0, %v830_v57 }
  0xb2   : > { %v634_v19 = vsel %vm628_vm12, %v632_v14, 0.0  ;;  %650 = vst [vmem:[#allocation1] ss:$2 sm:$0xff] %v633_v18  ;;  %v646_v30 = vsel %vm636_vm14, %v644_v21, 0.0  ;;  %v849_v18 = vmul.f32 %v3519_v7, %v845_v9 }
  0xb3   : > { %652 = vst [vmem:[#allocation1 + $0x10] ss:$2 sm:$0xff] %v634_v19  ;;  %v875_v4 = vld.sshfl [vmem:[#allocation1 + $0x30] sm:$0xff pattern:$0x75316420]  ;;  %v850_v20 = vmul.f32 %v3520_v8, %v846_v10 }
  0xb4   : > { %v4466_v5 = vld.sshfl [vmem:[#allocation1 + $0x38] sm:$0xff pattern:$0x75316420]  ;;  %v854_v23 = vmul.f32 %v849_v18, %v849_v18 }
  0xb5   : > { %923 = vst [vmem:[#allocation1 + $0x30] ss:$2 sm:$0xff] %v3522_v44  ;;  %v855_v25 = vmul.f32 %v850_v20, %v850_v20  ;;  %v892_v44 = vsel %vm661_vm0, %v4459_v60, 0.0  ;;  %v898_v57 = vsel %vm661_vm0, %v4466_v5, 0.0 }
  0xb6   : > { %v929_v60 = vld.sshfl [vmem:[#allocation1 + $0x28] sm:$0xff pattern:$0x75316420] }
  0xb9   : > { %v653_v32 = vld.sshfl [vmem:[#allocation1] sm:$0xff pattern:$0x75316420]  ;;  %v654_v33 = vld.sshfl [vmem:[#allocation1 + $0x8] sm:$0xff pattern:$0x75316420] }
  0xba   : > { %v655_v35 = vld.sshfl [vmem:[#allocation1 + $0x10] sm:$0xff pattern:$0x75316420]  ;;  %v656_v36 = vld.sshfl [vmem:[#allocation1 + $0x18] sm:$0xff pattern:$0x75316420] }
  0xbb   : > { %v662_v38 = vsel %vm661_vm0, %v653_v32, 0.0  ;;  %v663_v39 = vsel %vm661_vm0, %v654_v33, 0.0  ;;  %v665_v42 = vsel %vm661_vm0, %v655_v35, 0.0  ;;  %685 = vst [vmem:[#allocation1] ss:$2 sm:$0xff] %v645_v29  ;;  %v667_v45 = vsel %vm661_vm0, %v656_v36, 0.0 }
  0xbc   : > { %v664_v43 = vadd.f32 %v663_v39, %v662_v38  ;;  %687 = vst [vmem:[#allocation1 + $0x10] ss:$2 sm:$0xff] %v646_v30  ;;  %v930_v0 = vld.sshfl [vmem:[#allocation1 + $0x30] sm:$0xff pattern:$0x75316420] }
  0xbe   : > { %v666_v47 = vadd.f32 %v665_v42, %v664_v43 }
  0xc0   : > { %v668_v49 = vadd.f32 %v667_v45, %v666_v47  ;;  %v896_v47 = vsel %vm661_vm0, %v875_v4, 0.0  ;;  %v949_v4 = vsel %vm661_vm0, %v929_v60, 0.0 }
  0xc2   : > { %v688_v52 = vld.sshfl [vmem:[#allocation1] sm:$0xff pattern:$0x75316420]  ;;  %v689_v53 = vld.sshfl [vmem:[#allocation1 + $0x8] sm:$0xff pattern:$0x75316420]  ;;  %669 = vadd.xlane.f32.xlu0 %v668_v49 }
  0xc3   : > { %v690_v55 = vld.sshfl [vmem:[#allocation1 + $0x10] sm:$0xff pattern:$0x75316420]  ;;  %v691_v56 = vld.sshfl [vmem:[#allocation1 + $0x18] sm:$0xff pattern:$0x75316420] }
  0xc4   : > { %722 = vst [vmem:[#allocation1] ss:$2 sm:$0xff] %v3517_v50  ;;  %v696_v58 = vsel %vm661_vm0, %v688_v52, 0.0  ;;  %v697_v59 = vsel %vm661_vm0, %v689_v53, 0.0  ;;  %v699_v40 = vsel %vm661_vm0, %v690_v55, 0.0  ;;  %v701_v61 = vsel %vm661_vm0, %v691_v56, 0.0 }
  0xc5   : > { %724 = vst [vmem:[#allocation1 + $0x10] ss:$2 sm:$0xff] %v3518_v51  ;;  %v698_v41 = vadd.f32 %v697_v59, %v696_v58  ;;  %v928_v58 = vld.sshfl [vmem:[#allocation1 + $0x20] sm:$0xff pattern:$0x75316420] }
  0xc6   : > { %v947_v63 = vsel %vm661_vm0, %v928_v58, 0.0 }
  0xc7   : > { %v700_v3 = vadd.f32 %v699_v40, %v698_v41 }
  0xc9   : > { %v702_v6 = vadd.f32 %v701_v61, %v700_v3 }
  0xcb   : > { %v725_v11 = vld.sshfl [vmem:[#allocation1] sm:$0xff pattern:$0x75316420]  ;;  %v726_v12 = vld.sshfl [vmem:[#allocation1 + $0x8] sm:$0xff pattern:$0x75316420]  ;;  %703 = vadd.xlane.f32.xlu0 %v702_v6 }
  0xcc   : > { %v727_v13 = vld.sshfl [vmem:[#allocation1 + $0x10] sm:$0xff pattern:$0x75316420]  ;;  %v728_v14 = vld.sshfl [vmem:[#allocation1 + $0x18] sm:$0xff pattern:$0x75316420] }
  0xcd   : > { %v733_v15 = vsel %vm661_vm0, %v725_v11, 0.0  ;;  %v734_v16 = vsel %vm661_vm0, %v726_v12, 0.0  ;;  %v736_v17 = vsel %vm661_vm0, %v727_v13, 0.0  ;;  %754 = vst [vmem:[#allocation1] ss:$2 sm:$0xff] %v4407_v1  ;;  %v738_v21 = vsel %vm661_vm0, %v728_v14, 0.0 }
  0xce   : > { %v735_v19 = vadd.f32 %v734_v16, %v733_v15  ;;  %756 = vst [vmem:[#allocation1 + $0x10] ss:$2 sm:$0xff] %v4410_v2  ;;  %v931_v6 = vld.sshfl [vmem:[#allocation1 + $0x38] sm:$0xff pattern:$0x75316420] }
  0xcf   : > { %v953_v9 = vsel %vm661_vm0, %v931_v6, 0.0 }
  0xd0   : > { %v737_v22 = vadd.f32 %v736_v17, %v735_v19 }
  0xd2   : > { %v739_v24 = vadd.f32 %v738_v21, %v737_v22 }
  0xd4   : > { %v757_v26 = vld.sshfl [vmem:[#allocation1] sm:$0xff pattern:$0x75316420]  ;;  %v758_v27 = vld.sshfl [vmem:[#allocation1 + $0x8] sm:$0xff pattern:$0x75316420]  ;;  %740 = vadd.xlane.f32.xlu1 %v739_v24 }
  0xd5   : > { %v759_v28 = vld.sshfl [vmem:[#allocation1 + $0x10] sm:$0xff pattern:$0x75316420]  ;;  %v760_v29 = vld.sshfl [vmem:[#allocation1 + $0x18] sm:$0xff pattern:$0x75316420]  ;;  %v765_v31 = vpack.c.bf16 %v757_v26, %v757_v26  ;;  %v766_v32 = vpack.c.bf16 %v758_v27, %v758_v27 }
  0xd6   : > { %862 = vst [vmem:[#allocation1] ss:$2 sm:$0xff] %v854_v23  ;;  %v767_v30 = vpack.c.bf16 %v759_v28, %v759_v28  ;;  %v768_v1 = vpack.c.bf16 %v760_v29, %v760_v29 }
  0xd7   : > { %864 = vst [vmem:[#allocation1 + $0x10] ss:$2 sm:$0xff] %v855_v25  ;;  %777 = vmatpush.bf16.xpose.msra.mxu0 %v765_v31  ;;  %790 = vmatpush.bf16.xpose.msra.mxu1 %v766_v32 }
  0xd8   : > { %803 = vmatpush.bf16.xpose.msra.mxu2 %v767_v30  ;;  %816 = vmatpush.bf16.xpose.msra.mxu3 %v768_v1 }
  0xdd   : > { %v869_v2 = vld.sshfl [vmem:[#allocation1] sm:$0xff pattern:$0x75316420]  ;;  %v870_v33 = vld.sshfl [vmem:[#allocation1 + $0x8] sm:$0xff pattern:$0x75316420] }
  0xde   : > { %v871_v34 = vld.sshfl [vmem:[#allocation1 + $0x10] sm:$0xff pattern:$0x75316420]  ;;  %v872_v35 = vld.sshfl [vmem:[#allocation1 + $0x18] sm:$0xff pattern:$0x75316420]  ;;  %778 = vmatmul.bf16.vlgmr.msra.gmra.mxu0 %v765_v31  ;;  %791 = vmatmul.bf16.vlgmr.msra.gmra.mxu1 %v766_v32 }
  0xdf   : > { %v885_v36 = vsel %vm661_vm0, %v869_v2, 0.0  ;;  %v886_v37 = vsel %vm661_vm0, %v870_v33, 0.0  ;;  %v888_v38 = vsel %vm661_vm0, %v871_v34, 0.0  ;;  %917 = vst [vmem:[#allocation1] ss:$2 sm:$0xff] %v3519_v7  ;;  %804 = vmatmul.bf16.vlgmr.msra.gmra.mxu2 %v767_v30  ;;  %817 = vmatmul.bf16.vlgmr.msra.gmra.mxu3 %v768_v1  ;;  %v890_v42 = vsel %vm661_vm0, %v872_v35, 0.0 }
  0xe0   : > { %v887_v39 = vadd.f32 %v886_v37, %v885_v36  ;;  %919 = vst [vmem:[#allocation1 + $0x10] ss:$2 sm:$0xff] %v3520_v8  ;;  %v951_v8 = vsel %vm661_vm0, %v930_v0, 0.0 }
  0xe2   : > { %v889_v43 = vadd.f32 %v888_v38, %v887_v39 }
  0xe4   : > { %v891_v45 = vadd.f32 %v890_v42, %v889_v43 }
  0xe6   : > { %v893_v48 = vadd.f32 %v892_v44, %v891_v45  ;;  %v924_v49 = vld.sshfl [vmem:[#allocation1] sm:$0xff pattern:$0x75316420]  ;;  %v925_v50 = vld.sshfl [vmem:[#allocation1 + $0x8] sm:$0xff pattern:$0x75316420] }
  0xe7   : > { %v926_v51 = vld.sshfl [vmem:[#allocation1 + $0x10] sm:$0xff pattern:$0x75316420]  ;;  %v927_v52 = vld.sshfl [vmem:[#allocation1 + $0x18] sm:$0xff pattern:$0x75316420] }
  0xe8   : > { %v895_v53 = vadd.f32 %v894_v46, %v893_v48  ;;  %v940_v54 = vsel %vm661_vm0, %v924_v49, 0.0  ;;  %v941_v55 = vsel %vm661_vm0, %v925_v50, 0.0  ;;  %v943_v56 = vsel %vm661_vm0, %v926_v51, 0.0  ;;  %v769_v48 = vld [vmem:[#allocation3] sm:$0xf] }
  0xe9   : > { %v942_v59 = vadd.f32 %v941_v55, %v940_v54  ;;  %v945_v41 = vsel %vm661_vm0, %v927_v52, 0.0 }
  0xea   : > { %v897_v40 = vadd.f32 %v896_v47, %v895_v53 }
  0xeb   : > { %v944_v61 = vadd.f32 %v943_v56, %v942_v59 }
  0xec   : > { %v899_v62 = vadd.f32 %v898_v57, %v897_v40 }
  0xed   : > { %v946_v3 = vadd.f32 %v945_v41, %v944_v61 }
  0xee   : > { %900 = vadd.xlane.f32.xlu1 %v899_v62 }
  0xef   : > { %v948_v7 = vadd.f32 %v947_v63, %v946_v3 }
  0xf1   : > { %v950_v5 = vadd.f32 %v949_v4, %v948_v7 }
  0xf3   : > { %v952_v10 = vadd.f32 %v951_v8, %v950_v5 }
  0xf5   : > { %v954_v11 = vadd.f32 %v953_v9, %v952_v10 }
  0xf7   : > { %955 = vadd.xlane.f32.xlu2 %v954_v11 }
 0x135   : > { %v670_v12 = vpop.xlane.xlu0 %669 }
 0x136   : > { %v671_v13 = vrot.slane %v670_v12, 4 }
 0x138   : > { %v672_v14 = vadd.f32 %v671_v13, %v670_v12 }
 0x13a   : > { %v673_v16 = vrot.slane %v672_v14, 2 }
 0x13c   : > { %v674_v20 = vadd.f32 %v673_v16, %v672_v14 }
 0x13e   : > { %v704_v15 = vpop.xlane.xlu0 %703  ;;  %v675_v22 = vrot.slane %v674_v20, 1 }
 0x13f   : > { %v705_v17 = vrot.slane %v704_v15, 4 }
 0x140   : > { %v676_v24 = vadd.f32 %v675_v22, %v674_v20 }
 0x141   : > { %v706_v18 = vadd.f32 %v705_v17, %v704_v15 }
 0x142   : > { %3614 = vpush %v676_v24 }
 0x143   : > { %v707_v19 = vrot.slane %v706_v18, 2 }
 0x145   : > { %v708_v21 = vadd.f32 %v707_v19, %v706_v18 }
 0x147   : > { %v741_v23 = vpop.xlane.xlu1 %740  ;;  %v709_v25 = vrot.slane %v708_v21, 1 }
 0x148   : > { %v742_v26 = vrot.slane %v741_v23, 4 }
 0x149   : > { %v710_v27 = vadd.f32 %v709_v25, %v708_v21 }
 0x14a   : > { %v743_v28 = vadd.f32 %v742_v26, %v741_v23 }
 0x14b   : > { %3616 = vpush %v710_v27 }
 0x14c   : > { %v744_v29 = vrot.slane %v743_v28, 2 }
 0x14e   : > { %v745_v30 = vadd.f32 %v744_v29, %v743_v28 }
 0x150   : > { %v746_v1 = vrot.slane %v745_v30, 1 }
 0x152   : > { %v747_v31 = vadd.f32 %v746_v1, %v745_v30 }
 0x154   : > { %3618 = vpush %v747_v31 }
 0x15b   : > { %v779_v36 = vpop.f32.mrf.mxu0  ;;  %v792_v37 = vpop.f32.mrf.mxu1 }
 0x15c   : > { %v793_v38 = vadd.f32 %v792_v37, %v779_v36 }
 0x161   : > { %v901_v32 = vpop.xlane.xlu1 %900 }
 0x162   : > { %v902_v2 = vrot.slane %v901_v32, 4  ;;  %v805_v39 = vpop.f32.mrf.mxu2  ;;  %v818_v42 = vpop.f32.mrf.mxu3 }
 0x163   : > { %v806_v46 = vadd.f32 %v805_v39, %v793_v38  ;;  %v781_v53 = vpop.f32.mrf.mxu0  ;;  %v794_v54 = vpop.f32.mrf.mxu1 }
 0x164   : > { %v903_v33 = vadd.f32 %v902_v2, %v901_v32 }
 0x165   : > { %v819_v50 = vadd.f32 %v818_v42, %v806_v46 }
 0x166   : > { %v904_v34 = vrot.slane %v903_v33, 2 }
 0x167   : > { %v822_v52 = vadd.f32 %v819_v50, %v769_v48 }
 0x168   : > { %v905_v35 = vadd.f32 %v904_v34, %v903_v33 }
 0x169   : > { %824 = vst.msk [vmem:[#allocation3] sm:$0xf] %vm5397_vm4, %v822_v52 }
 0x16a   : > { %v956_v43 = vpop.xlane.xlu2 %955  ;;  %v906_v44 = vrot.slane %v905_v35, 1  ;;  %v807_v56 = vpop.f32.mrf.mxu2 }
 0x16b   : > { %v957_v45 = vrot.slane %v956_v43, 4  ;;  %v820_v57 = vpop.f32.mrf.mxu3 }
 0x16c   : > { %v907_v47 = vadd.f32 %v906_v44, %v905_v35 }
 0x16d   : > { %v958_v49 = vadd.f32 %v957_v45, %v956_v43 }
 0x16e   : > { %3620 = vpush %v907_v47 }
 0x16f   : > { %v959_v51 = vrot.slane %v958_v49, 2 }
 0x171   : > { %v960_v55 = vadd.f32 %v959_v51, %v958_v49 }
 0x173   : > { %v961_v58 = vrot.slane %v960_v55, 1  ;;  %s3615_s3 = spop %3614 }
 0x174   : > { %s678_s13 = smul.f32 0.72, %s3615_s3 }
 0x175   : > { %v962_v59 = vadd.f32 %v961_v58, %v960_v55 }
 0x176   : > { %s679_s10 = sadd.f32 %s678_s13, %s647_s18 }
 0x177   : > { %3622 = vpush %v962_v59 }
 0x178   : > { %681 = sst [smem:[#allocation2]] %s679_s10 }
 0x17c   : > { %s3617_s6 = spop %3616 }
 0x17d   : > { %s712_s30 = sadd.f32 %s3617_s6, %s3515_s28 }
 0x17e   : > { %s5418_s28 = sld [smem:[#allocation26_spill]] (!%p3492_p4) }
 0x17f   : > { %714 = sst [smem:[#allocation2 + $0x1]] %s712_s30 }
 0x185   : > { %s3619_s26 = spop %3618 }
 0x186   : > { %s749_s12 = sadd.f32 %s3619_s26, %s3516_s7 }
 0x188   : > { %751 = sst [smem:[#allocation2 + $0x2]] %s749_s12 }
 0x19f   : > { %s3621_s16 = spop %3620 }
 0x1a0   : > { %s909_s25 = sadd.f32 %s3621_s16, %s3523_s21 }
 0x1a2   : > { %911 = sst [smem:[#allocation2 + $0x6]] %s909_s25 }
 0x1a7   : > { %969 = sbr.rel (%p3492_p4) target bundleno = 1858 (0x742), region = 92 }
 0x1a8   : > { %s3623_s23 = spop %3622 }
 0x1a9   : > { %s964_s1 = sadd.f32 %s3623_s23, %s3524_s19 }
 0x1ab   : > { %966 = sst [smem:[#allocation2 + $0x7]] %s964_s1 }
 0x1ac   : > { %v4496_v40 = vld [vmem:[#allocation13] sm:$0xff]  ;;  %vm1101_vm5 = vcmask 1040384   ;;  %v4502_v63 = vld [vmem:[#allocation13 + $0x10] sm:$0xff]  ;;  %v4520_v20 = vld [vmem:[#allocation13 + $0x8] sm:$0xff]  ;;  %vm1203_vm6 = vcmask 1042434   ;;  %vm1207_vm7 = vcmask 1044484  }
 0x1ad   : > { %v1037_v41 = vperm.slane %v4496_v40, 0  ;;  %v1038_v60 = vperm.slane %v4496_v40, 1  ;;  %v1039_v61 = vperm.slane %v4496_v40, 2  ;;  %v1040_v62 = vperm.slane %v4496_v40, 3  ;;  %v4536_v39 = vld [vmem:[#allocation13 + $0x18] sm:$0xff] }
 0x1ae   : > { %v1041_v0 = vperm.slane %v4496_v40, 4  ;;  %v1042_v7 = vperm.slane %v4496_v40, 5  ;;  %v1043_v8 = vperm.slane %v4496_v40, 6  ;;  %v1053_v10 = vperm.slane %v4502_v63, 0 }
 0x1af   : > { %v1102_v3 = vsel %vm1101_vm5, %v1037_v41, -inf  ;;  %v1103_v4 = vsel %vm1101_vm5, %v1038_v60, -inf  ;;  %v1105_v6 = vsel %vm1101_vm5, %v1039_v61, -inf  ;;  %v1107_v9 = vsel %vm1101_vm5, %v1040_v62, -inf }
 0x1b0   : > { %v1104_v5 = vmax.f32 %v1102_v3, %v1103_v4  ;;  %v1054_v11 = vperm.slane %v4502_v63, 1  ;;  %v1055_v12 = vperm.slane %v4502_v63, 2  ;;  %v1044_v13 = vperm.slane %v4496_v40, 7 }
 0x1b1   : > { %v1056_v15 = vperm.slane %v4502_v63, 3  ;;  %v1109_v16 = vsel %vm1101_vm5, %v1041_v0, -inf  ;;  %v1057_v17 = vperm.slane %v4502_v63, 4  ;;  %v1136_v18 = vsel %vm1101_vm5, %v1053_v10, -inf }
 0x1b2   : > { %v1106_v14 = vmax.f32 %v1104_v5, %v1105_v6  ;;  %v1137_v19 = vsel %vm1101_vm5, %v1054_v11, -inf  ;;  %v1058_v22 = vperm.slane %v4502_v63, 5  ;;  %v1139_v24 = vsel %vm1101_vm5, %v1055_v12, -inf }
 0x1b3   : > { %v1138_v23 = vmax.f32 %v1136_v18, %v1137_v19  ;;  %v1111_v25 = vsel %vm1101_vm5, %v1042_v7, -inf  ;;  %v1113_v26 = vsel %vm1101_vm5, %v1043_v8, -inf  ;;  %v1059_v27 = vperm.slane %v4502_v63, 6 }
 0x1b4   : > { %v1108_v21 = vmax.f32 %v1106_v14, %v1107_v9  ;;  %v1141_v28 = vsel %vm1101_vm5, %v1056_v15, -inf  ;;  %v1045_v1 = vperm.slane %v4520_v20, 0  ;;  %v1046_v31 = vperm.slane %v4520_v20, 1 }
 0x1b5   : > { %v1140_v30 = vmax.f32 %v1138_v23, %v1139_v24  ;;  %v1060_v32 = vperm.slane %v4502_v63, 7  ;;  %v1143_v2 = vsel %vm1101_vm5, %v1057_v17, -inf  ;;  %v1047_v33 = vperm.slane %v4520_v20, 2 }
 0x1b6   : > { %v1110_v29 = vmax.f32 %v1108_v21, %v1109_v16  ;;  %v1048_v34 = vperm.slane %v4520_v20, 3  ;;  %v1115_v36 = vsel %vm1101_vm5, %v1044_v13, -inf  ;;  %v1145_v38 = vsel %vm1101_vm5, %v1058_v22, -inf }
 0x1b7   : > { %v1142_v37 = vmax.f32 %v1140_v30, %v1141_v28  ;;  %v1049_v42 = vperm.slane %v4520_v20, 4  ;;  %v1119_v43 = vsel %vm1101_vm5, %v1045_v1, -inf  ;;  %v1120_v44 = vsel %vm1101_vm5, %v1046_v31, -inf }
 0x1b8   : > { %v1112_v35 = vmax.f32 %v1110_v29, %v1111_v25  ;;  %v1122_v45 = vsel %vm1101_vm5, %v1047_v33, -inf  ;;  %v1050_v48 = vperm.slane %v4520_v20, 5  ;;  %v1121_v49 = vmax.f32 %v1119_v43, %v1120_v44 }
 0x1b9   : > { %v1144_v47 = vmax.f32 %v1142_v37, %v1143_v2  ;;  %v1147_v50 = vsel %vm1101_vm5, %v1059_v27, -inf  ;;  %v1149_v51 = vsel %vm1101_vm5, %v1060_v32, -inf  ;;  %v1124_v52 = vsel %vm1101_vm5, %v1048_v34, -inf }
 0x1ba   : > { %v1114_v46 = vmax.f32 %v1112_v35, %v1113_v26  ;;  %v1061_v53 = vperm.slane %v4536_v39, 0  ;;  %v1123_v56 = vmax.f32 %v1121_v49, %v1122_v45  ;;  %v1062_v57 = vperm.slane %v4536_v39, 1 }
 0x1bb   : > { %v1146_v55 = vmax.f32 %v1144_v47, %v1145_v38  ;;  %v1051_v58 = vperm.slane %v4520_v20, 6  ;;  %v1126_v59 = vsel %vm1101_vm5, %v1049_v42, -inf  ;;  %v1063_v41 = vperm.slane %v4536_v39, 2 }
 0x1bc   : > { %v1116_v54 = vmax.f32 %v1114_v46, %v1115_v36  ;;  %v1064_v60 = vperm.slane %v4536_v39, 3  ;;  %v1052_v62 = vperm.slane %v4520_v20, 7  ;;  %v1125_v0 = vmax.f32 %v1123_v56, %v1124_v52 }
 0x1bd   : > { %v1148_v61 = vmax.f32 %v1146_v55, %v1147_v50  ;;  %v1128_v3 = vsel %vm1101_vm5, %v1050_v48, -inf  ;;  %v1065_v4 = vperm.slane %v4536_v39, 4  ;;  %v1153_v6 = vsel %vm1101_vm5, %v1061_v53, -inf }
 0x1be   : > { %1117 = vmax.xlane.f32.xlu0 %v1116_v54  ;;  %v1154_v7 = vsel %vm1101_vm5, %v1062_v57, -inf  ;;  %v1156_v8 = vsel %vm1101_vm5, %v1063_v41, -inf  ;;  %v1127_v9 = vmax.f32 %v1125_v0, %v1126_v59  ;;  %v1130_v11 = vsel %vm1101_vm5, %v1051_v58, -inf }
 0x1bf   : > { %v1150_v5 = vmax.f32 %v1148_v61, %v1149_v51  ;;  %v1155_v10 = vmax.f32 %v1153_v6, %v1154_v7  ;;  %v1066_v12 = vperm.slane %v4536_v39, 5  ;;  %v1158_v13 = vsel %vm1101_vm5, %v1064_v60, -inf }
 0x1c0   : > { %v1129_v14 = vmax.f32 %v1127_v9, %v1128_v3  ;;  %v1132_v16 = vsel %vm1101_vm5, %v1052_v62, -inf  ;;  %v1067_v17 = vperm.slane %v4536_v39, 6  ;;  %v1160_v18 = vsel %vm1101_vm5, %v1065_v4, -inf }
 0x1c1   : > { %1151 = vmax.xlane.f32.xlu1 %v1150_v5  ;;  %v1157_v15 = vmax.f32 %v1155_v10, %v1156_v8  ;;  %v1068_v22 = vperm.slane %v4536_v39, 7  ;;  %v1162_v23 = vsel %vm1101_vm5, %v1066_v12, -inf  ;;  %v1170_v1 = vlaneseq }
 0x1c2   : > { %v1131_v19 = vmax.f32 %v1129_v14, %v1130_v11  ;;  %v1164_v26 = vsel %vm1101_vm5, %v1067_v17, -inf  ;;  %vm1209_vm8 = vcmask 1046534   ;;  %vm1205_vm9 = vcmask 1041408  }
 0x1c3   : > { %v1159_v21 = vmax.f32 %v1157_v15, %v1158_v13  ;;  %v1166_v28 = vsel %vm1101_vm5, %v1068_v22, -inf  ;;  %v4568_v31 = vand.u32 127, %v1170_v1  ;;  %vm1211_vm10 = vcmask 1045508  }
 0x1c4   : > { %v1133_v24 = vmax.f32 %v1131_v19, %v1132_v16 }
 0x1c5   : > { %v1161_v25 = vmax.f32 %v1159_v21, %v1160_v18  ;;  %v4571_v32 = vadd.s32 128, %v4568_v31  ;;  %v4574_v2 = vadd.s32 256, %v4568_v31  ;;  %v4577_v33 = vadd.s32 384, %v4568_v31 }
 0x1c6   : > { %1134 = vmax.xlane.f32.xlu0 %v1133_v24  ;;  %v4580_v34 = vadd.s32 512, %v4568_v31  ;;  %v4583_v35 = vadd.s32 640, %v4568_v31  ;;  %v4586_v36 = vadd.s32 768, %v4568_v31  ;;  %v4589_v37 = vadd.s32 896, %v4568_v31 }
 0x1c7   : > { %v1163_v27 = vmax.f32 %v1161_v25, %v1162_v23  ;;  %v1195_v38 = vrot.slane %v4571_v32, 7  ;;  %v1196_v42 = vrot.slane %v4574_v2, 6  ;;  %v1197_v43 = vrot.slane %v4577_v33, 5 }
 0x1c8   : > { %v1198_v44 = vrot.slane %v4580_v34, 4  ;;  %v1199_v45 = vrot.slane %v4583_v35, 3  ;;  %v1200_v46 = vrot.slane %v4586_v36, 2  ;;  %v1201_v47 = vrot.slane %v4589_v37, 1 }
 0x1c9   : > { %v1165_v29 = vmax.f32 %v1163_v27, %v1164_v26  ;;  %v1202_v48 = vsel %vm1101_vm5, %v4568_v31, %v1195_v38  ;;  %v1204_v49 = vsel %vm1203_vm6, %v1196_v42, %v1197_v43 }
 0x1ca   : > { %v1208_v50 = vsel %vm1207_vm7, %v1198_v44, %v1199_v45  ;;  %v1210_v51 = vsel %vm1209_vm8, %v1200_v46, %v1201_v47  ;;  %v1206_v52 = vsel %vm1205_vm9, %v1202_v48, %v1204_v49 }
 0x1cb   : > { %v1167_v30 = vmax.f32 %v1165_v29, %v1166_v28  ;;  %v1212_v53 = vsel %vm1211_vm10, %v1208_v50, %v1210_v51 }
 0x1cc   : > { %v4606_v55 = vsel %vm661_vm0, %v1206_v52, %v1212_v53 }
 0x1cd   : > { %1168 = vmax.xlane.f32.xlu2 %v1167_v30 }
 0x231   : > { %v1118_v54 = vpop.xlane.xlu0 %1117 }
 0x232   : > { %v1183_v56 = vperm.slane %v1118_v54, 0 }
 0x234   : > { %vm1191_vm11 = vcmp.eq.f32.partialorder %v4496_v40, %v1183_v56  ;;  %v1152_v58 = vpop.xlane.xlu1 %1151 }
 0x235   : > { %v1214_v57 = vsel %vm1191_vm11, %v4606_v55, 1024  ;;  %v1185_v60 = vperm.slane %v1152_v58, 0 }
 0x236   : > { %v1218_v59 = vperm.slane %v1214_v57, 0  ;;  %v1219_v41 = vperm.slane %v1214_v57, 1  ;;  %v1220_v61 = vperm.slane %v1214_v57, 2  ;;  %v1221_v62 = vperm.slane %v1214_v57, 3 }
 0x237   : > { %vm1193_vm12 = vcmp.eq.f32.partialorder %v4502_v63, %v1185_v60  ;;  %v1222_v0 = vperm.slane %v1214_v57, 4  ;;  %v1223_v7 = vperm.slane %v1214_v57, 5  ;;  %v1224_v8 = vperm.slane %v1214_v57, 6 }
 0x238   : > { %v1250_v3 = vsel %vm1101_vm5, %v1218_v59, 2147483647  ;;  %v1251_v4 = vsel %vm1101_vm5, %v1219_v41, 2147483647  ;;  %v1216_v6 = vsel %vm1193_vm12, %v4606_v55, 1024  ;;  %v1225_v12 = vperm.slane %v1214_v57, 7 }
 0x239   : > { %vm1252_vm13 = vcmp.lt.s32.totalorder %v1250_v3, %v1251_v4  ;;  %v1234_v40 = vperm.slane %v1216_v6, 0  ;;  %v1254_v9 = vsel %vm1101_vm5, %v1220_v61, 2147483647  ;;  %v1235_v10 = vperm.slane %v1216_v6, 1  ;;  %v1135_v11 = vpop.xlane.xlu0 %1134 }
 0x23a   : > { %v1253_v5 = vsel %vm1252_vm13, %v1250_v3, %v1251_v4  ;;  %v1257_v63 = vsel %vm1101_vm5, %v1221_v62, 2147483647  ;;  %v1184_v13 = vperm.slane %v1135_v11, 0  ;;  %v1260_v15 = vsel %vm1101_vm5, %v1222_v0, 2147483647 }
 0x23b   : > { %vm1255_vm14 = vcmp.lt.s32.totalorder %v1253_v5, %v1254_v9  ;;  %v1236_v16 = vperm.slane %v1216_v6, 2  ;;  %v1263_v17 = vsel %vm1101_vm5, %v1223_v7, 2147483647  ;;  %v1266_v18 = vsel %vm1101_vm5, %v1224_v8, 2147483647 }
 0x23c   : > { %v1256_v14 = vsel %vm1255_vm14, %v1253_v5, %v1254_v9  ;;  %v1237_v19 = vperm.slane %v1216_v6, 3  ;;  %vm1192_vm1 = vcmp.eq.f32.partialorder %v4520_v20, %v1184_v13  ;;  %v1238_v22 = vperm.slane %v1216_v6, 4 }
 0x23d   : > { %vm1258_vm15 = vcmp.lt.s32.totalorder %v1256_v14, %v1257_v63  ;;  %v1322_v23 = vsel %vm1101_vm5, %v1234_v40, 2147483647  ;;  %v4622_v24 = vsel %vm1192_vm1, %v4606_v55, 1024  ;;  %v1323_v25 = vsel %vm1101_vm5, %v1235_v10, 2147483647 }
 0x23e   : > { %v1259_v21 = vsel %vm1258_vm15, %v1256_v14, %v1257_v63  ;;  %v1326_v26 = vsel %vm1101_vm5, %v1236_v16, 2147483647  ;;  %v1269_v28 = vsel %vm1101_vm5, %v1225_v12, 2147483647  ;;  %v1239_v29 = vperm.slane %v1216_v6, 5 }
 0x23f   : > { %vm1261_vm2 = vcmp.lt.s32.totalorder %v1259_v21, %v1260_v15  ;;  %vm1324_vm3 = vcmp.lt.s32.totalorder %v1322_v23, %v1323_v25  ;;  %v1240_v30 = vperm.slane %v1216_v6, 6  ;;  %v1329_v1 = vsel %vm1101_vm5, %v1237_v19, 2147483647 }
 0x240   : > { %v1262_v27 = vsel %vm1261_vm2, %v1259_v21, %v1260_v15  ;;  %v1325_v20 = vsel %vm1324_vm3, %v1322_v23, %v1323_v25  ;;  %v1226_v38 = vperm.slane %v4622_v24, 0  ;;  %v1227_v42 = vperm.slane %v4622_v24, 1 }
 0x241   : > { %vm1264_vm11 = vcmp.lt.s32.totalorder %v1262_v27, %v1263_v17  ;;  %vm1327_vm12 = vcmp.lt.s32.totalorder %v1325_v20, %v1326_v26  ;;  %v1332_v45 = vsel %vm1101_vm5, %v1238_v22, 2147483647  ;;  %v1228_v46 = vperm.slane %v4622_v24, 2  ;;  %v1169_v22 = vpop.xlane.xlu2 %1168 }
 0x242   : > { %v1265_v43 = vsel %vm1264_vm11, %v1262_v27, %v1263_v17  ;;  %v1328_v44 = vsel %vm1327_vm12, %v1325_v20, %v1326_v26  ;;  %v1241_v48 = vperm.slane %v1216_v6, 7  ;;  %v1335_v49 = vsel %vm1101_vm5, %v1239_v29, 2147483647 }
 0x243   : > { %vm1267_vm13 = vcmp.lt.s32.totalorder %v1265_v43, %v1266_v18  ;;  %vm1330_vm14 = vcmp.lt.s32.totalorder %v1328_v44, %v1329_v1  ;;  %v1338_v51 = vsel %vm1101_vm5, %v1240_v30, 2147483647  ;;  %v1229_v52 = vperm.slane %v4622_v24, 3 }
 0x244   : > { %v1268_v47 = vsel %vm1267_vm13, %v1265_v43, %v1266_v18  ;;  %v1331_v50 = vsel %vm1330_vm14, %v1328_v44, %v1329_v1  ;;  %v1230_v54 = vperm.slane %v4622_v24, 4  ;;  %v1286_v56 = vsel %vm1101_vm5, %v1226_v38, 2147483647 }
 0x245   : > { %vm1270_vm15 = vcmp.lt.s32.totalorder %v1268_v47, %v1269_v28  ;;  %vm1333_vm1 = vcmp.lt.s32.totalorder %v1331_v50, %v1332_v45  ;;  %v1287_v59 = vsel %vm1101_vm5, %v1227_v42, 2147483647  ;;  %v1290_v41 = vsel %vm1101_vm5, %v1228_v46, 2147483647 }
 0x246   : > { %v4635_v53 = vsel %vm1270_vm15, %v1268_v47, %v1269_v28  ;;  %v1334_v58 = vsel %vm1333_vm1, %v1331_v50, %v1332_v45  ;;  %v1341_v60 = vsel %vm1101_vm5, %v1241_v48, 2147483647  ;;  %v1231_v61 = vperm.slane %v4622_v24, 5 }
 0x247   : > { %v1273_v57 = vshra.s32 %v4635_v53, 16  ;;  %vm1336_vm2 = vcmp.lt.s32.totalorder %v1334_v58, %v1335_v49  ;;  %vm1288_vm3 = vcmp.lt.s32.totalorder %v1286_v56, %v1287_v59  ;;  %v1293_v4 = vsel %vm1101_vm5, %v1229_v52, 2147483647 }
 0x248   : > { %v1337_v0 = vsel %vm1336_vm2, %v1334_v58, %v1335_v49  ;;  %v1289_v3 = vsel %vm1288_vm3, %v1286_v56, %v1287_v59  ;;  %v1232_v7 = vperm.slane %v4622_v24, 6  ;;  %v1296_v40 = vsel %vm1101_vm5, %v1230_v54, 2147483647 }
 0x249   : > { %v4644_v62 = vcvt.s32.f32 %v1273_v57  ;;  %vm1339_vm11 = vcmp.lt.s32.totalorder %v1337_v0, %v1338_v51  ;;  %vm1291_vm12 = vcmp.lt.s32.totalorder %v1289_v3, %v1290_v41  ;;  %v1233_v9 = vperm.slane %v4622_v24, 7 }
 0x24a   : > { %v1340_v6 = vsel %vm1339_vm11, %v1337_v0, %v1338_v51  ;;  %v1292_v8 = vsel %vm1291_vm12, %v1289_v3, %v1290_v41  ;;  %v1299_v11 = vsel %vm1101_vm5, %v1231_v61, 2147483647  ;;  %v1302_v13 = vsel %vm1101_vm5, %v1232_v7, 2147483647 }
 0x24b   : > { %1276 = vmin.xlane.f32.xlu1 %v4644_v62  ;;  %vm1342_vm13 = vcmp.lt.s32.totalorder %v1340_v6, %v1341_v60  ;;  %vm1294_vm14 = vcmp.lt.s32.totalorder %v1292_v8, %v1293_v4  ;;  %v1305_v16 = vsel %vm1101_vm5, %v1233_v9, 2147483647  ;;  %v1186_v23 = vperm.slane %v1169_v22, 0 }
 0x24c   : > { %v4650_v5 = vsel %vm1342_vm13, %v1340_v6, %v1341_v60  ;;  %v1295_v10 = vsel %vm1294_vm14, %v1292_v8, %v1293_v4  ;;  %v1272_v51 = vand.u32 65535, %v4635_v53 }
 0x24d   : > { %v1345_v12 = vshra.s32 %v4650_v5, 16  ;;  %vm1297_vm15 = vcmp.lt.s32.totalorder %v1295_v10, %v1296_v40  ;;  %vm1194_vm11 = vcmp.eq.f32.partialorder %v4536_v39, %v1186_v23  ;;  %v1344_v41 = vand.u32 65535, %v4650_v5 }
 0x24e   : > { %v1298_v63 = vsel %vm1297_vm15, %v1295_v10, %v1296_v40  ;;  %v1217_v24 = vsel %vm1194_vm11, %v4606_v55, 1024  ;;  %v1274_v57 = vcvt.s32.f32 %v1272_v51  ;;  %v4715_v51 = vld [vmem:[#allocation12 + $0x20] sm:$0xff] }
 0x24f   : > { %v1347_v14 = vcvt.s32.f32 %v1345_v12  ;;  %vm1300_vm1 = vcmp.lt.s32.totalorder %v1298_v63, %v1299_v11  ;;  %v1242_v25 = vperm.slane %v1217_v24, 0  ;;  %v1243_v26 = vperm.slane %v1217_v24, 1 }
 0x250   : > { %v1301_v15 = vsel %vm1300_vm1, %v1298_v63, %v1299_v11  ;;  %v1244_v29 = vperm.slane %v1217_v24, 2  ;;  %v1245_v1 = vperm.slane %v1217_v24, 3  ;;  %v1246_v43 = vperm.slane %v1217_v24, 4  ;;  %v4670_v63 = vld [vmem:[#allocation12 + $0xb0] sm:$0xff] }
 0x251   : > { %vm1303_vm2 = vcmp.lt.s32.totalorder %v1301_v15, %v1302_v13  ;;  %v1358_v27 = vsel %vm1101_vm5, %v1242_v25, 2147483647  ;;  %v1359_v28 = vsel %vm1101_vm5, %v1243_v26, 2147483647  ;;  %v1247_v44 = vperm.slane %v1217_v24, 5 }
 0x252   : > { %v1304_v17 = vsel %vm1303_vm2, %v1301_v15, %v1302_v13  ;;  %vm1360_vm12 = vcmp.lt.s32.totalorder %v1358_v27, %v1359_v28  ;;  %v1362_v20 = vsel %vm1101_vm5, %v1244_v29, 2147483647  ;;  %v1365_v42 = vsel %vm1101_vm5, %v1245_v1, 2147483647  ;;  %v4672_v13 = vld [vmem:[#allocation12 + $0xb8] sm:$0xff] }
 0x253   : > { %1348 = vmin.xlane.f32.xlu1 %v1347_v14  ;;  %vm1306_vm3 = vcmp.lt.s32.totalorder %v1304_v17, %v1305_v16  ;;  %v1361_v30 = vsel %vm1360_vm12, %v1358_v27, %v1359_v28  ;;  %v1368_v55 = vsel %vm1101_vm5, %v1246_v43, 2147483647  ;;  %v1371_v46 = vsel %vm1101_vm5, %v1247_v44, 2147483647  ;;  %v4693_v27 = vld [vmem:[#allocation12] sm:$0xff]  ;;  %v4695_v28 = vld [vmem:[#allocation12 + $0x8] sm:$0xff] }
 0x254   : > { %v1307_v18 = vsel %vm1306_vm3, %v1304_v17, %v1305_v16  ;;  %vm1363_vm13 = vcmp.lt.s32.totalorder %v1361_v30, %v1362_v20  ;;  %v1248_v47 = vperm.slane %v1217_v24, 6  ;;  %v1249_v50 = vperm.slane %v1217_v24, 7 }
 0x255   : > { %v1309_v19 = vshra.s32 %v1307_v18, 16  ;;  %v1364_v38 = vsel %vm1363_vm13, %v1361_v30, %v1362_v20  ;;  %v1346_v0 = vcvt.s32.f32 %v1344_v41  ;;  %v1308_v53 = vand.u32 65535, %v1307_v18 }
 0x256   : > { %vm1366_vm14 = vcmp.lt.s32.totalorder %v1364_v38, %v1365_v42  ;;  %v1374_v49 = vsel %vm1101_vm5, %v1248_v47, 2147483647  ;;  %v1377_v54 = vsel %vm1101_vm5, %v1249_v50, 2147483647  ;;  %v4154_v17 = vmov 0.0  }
 0x257   : > { %v1311_v21 = vcvt.s32.f32 %v1309_v19  ;;  %v1367_v39 = vsel %vm1366_vm14, %v1364_v38, %v1365_v42  ;;  %v1310_v7 = vcvt.s32.f32 %v1308_v53 }
 0x258   : > { %vm1369_vm15 = vcmp.lt.s32.totalorder %v1367_v39, %v1368_v55 }
 0x259   : > { %1312 = vmin.xlane.f32.xlu2 %v1311_v21  ;;  %v1370_v45 = vsel %vm1369_vm15, %v1367_v39, %v1368_v55  ;;  %v4703_v39 = vld [vmem:[#allocation12 + $0x10] sm:$0xff] }
 0x25a   : > { %vm1372_vm1 = vcmp.lt.s32.totalorder %v1370_v45, %v1371_v46 }
 0x25b   : > { %v1373_v48 = vsel %vm1372_vm1, %v1370_v45, %v1371_v46  ;;  %v4708_v45 = vld [vmem:[#allocation12 + $0x18] sm:$0xff] }
 0x25c   : > { %vm1375_vm2 = vcmp.lt.s32.totalorder %v1373_v48, %v1374_v49 }
 0x25d   : > { %v1376_v52 = vsel %vm1375_vm2, %v1373_v48, %v1374_v49 }
 0x25e   : > { %vm1378_vm3 = vcmp.lt.s32.totalorder %v1376_v52, %v1377_v54 }
 0x25f   : > { %v1379_v59 = vsel %vm1378_vm3, %v1376_v52, %v1377_v54 }
 0x260   : > { %v1381_v60 = vshra.s32 %v1379_v59, 16  ;;  %v1380_v5 = vand.u32 65535, %v1379_v59  ;;  %v4719_v59 = vld [vmem:[#allocation12 + $0x28] sm:$0xff] }
 0x262   : > { %v1383_v3 = vcvt.s32.f32 %v1381_v60  ;;  %v1382_v16 = vcvt.s32.f32 %v1380_v5 }
 0x2be   : > { %v1277_v56 = vpop.xlane.xlu1 %1276 }
 0x2bf   : > { %vm1278_vm11 = vcmp.eq.f32.partialorder %v4644_v62, %v1277_v56  ;;  %v1283_v62 = vcvt.f32.s32 %v1277_v56 }
 0x2c0   : > { %v1279_v58 = vsel %vm1278_vm11, %v1274_v57, inf }
 0x2c1   : > { %1280 = vmin.xlane.f32.xlu0 %v1279_v58  ;;  %v1284_v9 = vshll.u32 %v1283_v62, 16 }
 0x2c6   : > { %v1349_v61 = vpop.xlane.xlu1 %1348 }
 0x2c7   : > { %vm1350_vm12 = vcmp.eq.f32.partialorder %v1347_v14, %v1349_v61  ;;  %v1355_v11 = vcvt.f32.s32 %v1349_v61  ;;  %v4676_v14 = vpack.c.bf16 %v4672_v13, %v4670_v63 }
 0x2c8   : > { %v1351_v4 = vsel %vm1350_vm12, %v1346_v0, inf }
 0x2c9   : > { %1352 = vmin.xlane.f32.xlu1 %v1351_v4  ;;  %1384 = vmin.xlane.f32.xlu0 %v1383_v3  ;;  %v1356_v15 = vshll.u32 %v1355_v11, 16 }
 0x2cc   : > { %v1313_v6 = vpop.xlane.xlu2 %1312 }
 0x2cd   : > { %vm1314_vm13 = vcmp.eq.f32.partialorder %v1311_v21, %v1313_v6  ;;  %v1319_v22 = vcvt.f32.s32 %v1313_v6 }
 0x2ce   : > { %v1315_v8 = vsel %vm1314_vm13, %v1310_v7, inf  ;;  %v4730_v7 = vld [vmem:[#allocation12 + $0x30] sm:$0xff] }
 0x2cf   : > { %1316 = vmin.xlane.f32.xlu2 %v1315_v8  ;;  %v1320_v50 = vshll.u32 %v1319_v22, 16  ;;  %v4749_v22 = vld [vmem:[#allocation12 + $0x90] sm:$0xff] }
 0x334   : > { %v1281_v40 = vpop.xlane.xlu0 %1280 }
 0x335   : > { %v1282_v10 = vcvt.f32.s32 %v1281_v40 }
 0x337   : > { %v1285_v12 = vadd.s32 %v1284_v9, %v1282_v10  ;;  %v4737_v9 = vld [vmem:[#allocation12 + $0x80] sm:$0xff]  ;;  %v4739_v10 = vld [vmem:[#allocation12 + $0x88] sm:$0xff] }
 0x339   : > { %vm1394_vm14 = vcmp.eq.s32.totalorder %v4568_v31, %v1285_v12  ;;  %vm1395_vm15 = vcmp.eq.s32.totalorder %v4571_v32, %v1285_v12  ;;  %vm1396_vm1 = vcmp.eq.s32.totalorder %v4574_v2, %v1285_v12  ;;  %vm1397_vm2 = vcmp.eq.s32.totalorder %v4577_v33, %v1285_v12 }
 0x33a   : > { %vm1398_vm3 = vcmp.eq.s32.totalorder %v4580_v34, %v1285_v12  ;;  %vm1399_vm11 = vcmp.eq.s32.totalorder %v4583_v35, %v1285_v12  ;;  %v3526_v18 = vsel %vm1394_vm14, 1.0, %v4154_v17  ;;  %v3527_v19 = vsel %vm1395_vm15, 1.0, %v4154_v17 }
 0x33b   : > { %v3528_v21 = vsel %vm1396_vm1, 1.0, %v4154_v17  ;;  %vm1400_vm12 = vcmp.eq.s32.totalorder %v4586_v36, %v1285_v12  ;;  %vm1401_vm13 = vcmp.eq.s32.totalorder %v4589_v37, %v1285_v12  ;;  %v3529_v25 = vsel %vm1397_vm2, 1.0, %v4154_v17  ;;  %v4743_v12 = vld [vmem:[#allocation12 + $0x38] sm:$0xff] }
 0x33c   : > { %v1353_v23 = vpop.xlane.xlu1 %1352  ;;  %v4687_v24 = vpop.xlane.xlu0 %1384  ;;  %v3530_v29 = vsel %vm1398_vm3, 1.0, %v4154_v17  ;;  %v1490_v30 = vperm.slane %v3526_v18, 0  ;;  %v3531_v1 = vsel %vm1399_vm11, 1.0, %v4154_v17  ;;  %v1491_v38 = vperm.slane %v3527_v19, 0 }
 0x33d   : > { %v1354_v26 = vcvt.f32.s32 %v1353_v23  ;;  %vm1386_vm4 = vcmp.eq.f32.partialorder %v1383_v3, %v4687_v24  ;;  %v1492_v42 = vperm.slane %v3528_v21, 0  ;;  %v3532_v55 = vsel %vm1400_vm12, 1.0, %v4154_v17 }
 0x33e   : > { %v1387_v20 = vsel %vm1386_vm4, %v1382_v16, inf  ;;  %v1493_v44 = vperm.slane %v3529_v25, 0  ;;  %v3533_v46 = vsel %vm1401_vm13, 1.0, %v4154_v17  ;;  %v1494_v47 = vperm.slane %v3530_v29, 0 }
 0x33f   : > { %v1357_v43 = vadd.s32 %v1356_v15, %v1354_v26  ;;  %1388 = vmin.xlane.f32.xlu0 %v1387_v20  ;;  %v1522_v48 = vmul.f32 %v1490_v30, %v4693_v27  ;;  %v1523_v49 = vmul.f32 %v1491_v38, %v4695_v28  ;;  %v1495_v52 = vperm.slane %v3531_v1, 0  ;;  %v4756_v38 = vld [vmem:[#allocation12 + $0x98] sm:$0xff] }
 0x340   : > { %v1496_v54 = vperm.slane %v3532_v55, 0  ;;  %v1524_v56 = vmul.f32 %v1492_v42, %v4703_v39  ;;  %v1497_v41 = vperm.slane %v3533_v46, 0  ;;  %v1525_v60 = vmul.f32 %v1493_v44, %v4708_v45 }
 0x341   : > { %v1554_v57 = vadd.f32 %v1523_v49, %v1522_v48  ;;  %vm1410_vm4 = vcmp.eq.s32.totalorder %v4568_v31, %v1357_v43  ;;  %vm1411_vm14 = vcmp.eq.s32.totalorder %v4571_v32, %v1357_v43  ;;  %vm1412_vm15 = vcmp.eq.s32.totalorder %v4574_v2, %v1357_v43  ;;  %v4764_v48 = vld [vmem:[#allocation12 + $0xa0] sm:$0xff] }
 0x342   : > { %v1317_v58 = vpop.xlane.xlu2 %1316  ;;  %v1526_v0 = vmul.f32 %v1494_v47, %v4715_v51  ;;  %vm1413_vm1 = vcmp.eq.s32.totalorder %v4577_v33, %v1357_v43  ;;  %vm1414_vm2 = vcmp.eq.s32.totalorder %v4580_v34, %v1357_v43  ;;  %v3542_v4 = vsel %vm1410_vm4, 1.0, %v4154_v17 }
 0x343   : > { %v1318_v61 = vcvt.f32.s32 %v1317_v58  ;;  %v1555_v3 = vadd.f32 %v1554_v57, %v1524_v56  ;;  %v3543_v53 = vsel %vm1411_vm14, 1.0, %v4154_v17  ;;  %v3544_v6 = vsel %vm1412_vm15, 1.0, %v4154_v17 }
 0x344   : > { %v1527_v8 = vmul.f32 %v1495_v52, %v4719_v59  ;;  %vm1415_vm3 = vcmp.eq.s32.totalorder %v4583_v35, %v1357_v43  ;;  %vm1416_vm11 = vcmp.eq.s32.totalorder %v4586_v36, %v1357_v43  ;;  %vm1417_vm12 = vcmp.eq.s32.totalorder %v4589_v37, %v1357_v43  ;;  %v4770_v52 = vld [vmem:[#allocation12 + $0xa8] sm:$0xff] }
 0x345   : > { %v1556_v62 = vadd.f32 %v1555_v3, %v1525_v60  ;;  %v4735_v40 = vadd.s32 %v1320_v50, %v1318_v61  ;;  %v3545_v11 = vsel %vm1413_vm1, 1.0, %v4154_v17  ;;  %v1506_v5 = vperm.slane %v3542_v4, 0  ;;  %v4781_v3 = vld [vmem:[#allocation12 + $0x40] sm:$0xff] }
 0x346   : > { %v3546_v16 = vsel %vm1414_vm2, 1.0, %v4154_v17  ;;  %v1507_v18 = vperm.slane %v3543_v53, 0  ;;  %v1508_v19 = vperm.slane %v3544_v6, 0  ;;  %v1528_v21 = vmul.f32 %v1496_v54, %v4730_v7  ;;  %v4784_v53 = vld [vmem:[#allocation12 + $0x48] sm:$0xff] }
 0x347   : > { %v1557_v15 = vadd.f32 %v1556_v62, %v1526_v0  ;;  %v3547_v23 = vsel %vm1415_vm3, 1.0, %v4154_v17  ;;  %v3548_v25 = vsel %vm1416_vm11, 1.0, %v4154_v17  ;;  %v1509_v29 = vperm.slane %v3545_v11, 0 }
 0x348   : > { %v1538_v30 = vmul.f32 %v1506_v5, %v4737_v9  ;;  %v1539_v20 = vmul.f32 %v1507_v18, %v4739_v10  ;;  %v1529_v1 = vmul.f32 %v1497_v41, %v4743_v12  ;;  %v3549_v42 = vsel %vm1417_vm12, 1.0, %v4154_v17  ;;  %v4794_v18 = vld [vmem:[#allocation12 + $0x50] sm:$0xff] }
 0x349   : > { %v1558_v26 = vadd.f32 %v1557_v15, %v1527_v8  ;;  %v1510_v55 = vperm.slane %v3546_v16, 0  ;;  %v1540_v46 = vmul.f32 %v1508_v19, %v4749_v22  ;;  %vm1402_vm13 = vcmp.eq.s32.totalorder %v4568_v31, %v4735_v40 }
 0x34a   : > { %v1572_v47 = vadd.f32 %v1539_v20, %v1538_v30  ;;  %v1511_v49 = vperm.slane %v3547_v23, 0  ;;  %v1512_v50 = vperm.slane %v3548_v25, 0  ;;  %vm1403_vm4 = vcmp.eq.s32.totalorder %v4571_v32, %v4735_v40  ;;  %v1011_v30 = vld [vmem:[#allocation12 + $0x70] sm:$0xff]  ;;  %v1012_v20 = vld [vmem:[#allocation12 + $0x78] sm:$0xff] }
 0x34b   : > { %v1559_v44 = vadd.f32 %v1558_v26, %v1528_v21  ;;  %vm1404_vm14 = vcmp.eq.s32.totalorder %v4574_v2, %v4735_v40  ;;  %v1541_v54 = vmul.f32 %v1509_v29, %v4756_v38  ;;  %vm1405_vm15 = vcmp.eq.s32.totalorder %v4577_v33, %v4735_v40  ;;  %v4801_v29 = vld [vmem:[#allocation12 + $0x58] sm:$0xff] }
 0x34c   : > { %v1573_v56 = vadd.f32 %v1572_v47, %v1540_v46  ;;  %vm1406_vm1 = vcmp.eq.s32.totalorder %v4580_v34, %v4735_v40  ;;  %v3534_v57 = vsel %vm1402_vm13, 1.0, %v4154_v17  ;;  %v3535_v58 = vsel %vm1403_vm4, 1.0, %v4154_v17  ;;  %v4809_v47 = vld [vmem:[#allocation12 + $0x60] sm:$0xff] }
 0x34d   : > { %v1560_v43 = vadd.f32 %v1559_v44, %v1529_v1  ;;  %v3536_v41 = vsel %vm1404_vm14, 1.0, %v4154_v17  ;;  %v1513_v60 = vperm.slane %v3549_v42, 0  ;;  %v1542_v61 = vmul.f32 %v1510_v55, %v4764_v48 }
 0x34e   : > { %v1574_v0 = vadd.f32 %v1573_v56, %v1541_v54  ;;  %v1543_v4 = vmul.f32 %v1511_v49, %v4770_v52  ;;  %v3537_v6 = vsel %vm1405_vm15, 1.0, %v4154_v17  ;;  %v1498_v8 = vperm.slane %v3534_v57, 0  ;;  %v4813_v56 = vld [vmem:[#allocation12 + $0x68] sm:$0xff] }
 0x34f   : > { %1561 = vadd.xlane.f32.xlu2 %v1560_v43  ;;  %v1499_v62 = vperm.slane %v3535_v58, 0  ;;  %vm1407_vm2 = vcmp.eq.s32.totalorder %v4583_v35, %v4735_v40  ;;  %v3538_v5 = vsel %vm1406_vm1, 1.0, %v4154_v17  ;;  %v1500_v15 = vperm.slane %v3536_v41, 0 }
 0x350   : > { %v1575_v11 = vadd.f32 %v1574_v0, %v1542_v61  ;;  %v1544_v16 = vmul.f32 %v1512_v50, %v4670_v63  ;;  %v1530_v19 = vmul.f32 %v1498_v8, %v4781_v3  ;;  %vm1408_vm3 = vcmp.eq.s32.totalorder %v4586_v36, %v4735_v40 }
 0x351   : > { %v1501_v23 = vperm.slane %v3537_v6, 0  ;;  %v1531_v25 = vmul.f32 %v1499_v62, %v4784_v53  ;;  %v1545_v26 = vmul.f32 %v1513_v60, %v4672_v13  ;;  %vm1409_vm11 = vcmp.eq.s32.totalorder %v4589_v37, %v4735_v40 }
 0x352   : > { %v1576_v21 = vadd.f32 %v1575_v11, %v1543_v4  ;;  %v3539_v63 = vsel %vm1407_vm2, 1.0, %v4154_v17  ;;  %v1502_v1 = vperm.slane %v3538_v5, 0  ;;  %v1532_v55 = vmul.f32 %v1500_v15, %v4794_v18 }
 0x353   : > { %v1563_v44 = vadd.f32 %v1531_v25, %v1530_v19  ;;  %v4807_v46 = vpack.c.bf16 %v1012_v20, %v1011_v30  ;;  %v3540_v13 = vsel %vm1408_vm3, 1.0, %v4154_v17  ;;  %v1503_v50 = vperm.slane %v3539_v63, 0 }
 0x354   : > { %v1577_v42 = vadd.f32 %v1576_v21, %v1544_v16  ;;  %v1533_v43 = vmul.f32 %v1501_v23, %v4801_v29  ;;  %v3541_v40 = vsel %vm1409_vm11, 1.0, %v4154_v17  ;;  %v1504_v57 = vperm.slane %v3540_v13, 0  ;;  %v1028_v13 = vld [vmem:[#allocation12 + $0xf8] sm:$0xff] }
 0x355   : > { %v1564_v54 = vadd.f32 %v1563_v44, %v1532_v55  ;;  %v1534_v58 = vmul.f32 %v1502_v1, %v4809_v47  ;;  %v1505_v60 = vperm.slane %v3541_v40, 0  ;;  %v1535_v61 = vmul.f32 %v1503_v50, %v4813_v56  ;;  %v4839_v55 = vld [vmem:[#allocation12 + $0xd8] sm:$0xff]  ;;  %v1027_v44 = vld [vmem:[#allocation12 + $0xf0] sm:$0xff] }
 0x356   : > { %v1578_v49 = vadd.f32 %v1577_v42, %v1545_v26  ;;  %v1536_v4 = vmul.f32 %v1504_v57, %v1011_v30  ;;  %v1391_v5 = vcvt.f32.s32 %v4687_v24  ;;  %v4827_v26 = vld [vmem:[#allocation12 + $0xc0] sm:$0xff]  ;;  %v4829_v30 = vld [vmem:[#allocation12 + $0xc8] sm:$0xff]  ;;  %vm1646_vm11 = vcmask 64512  }
 0x357   : > { %v1565_v41 = vadd.f32 %v1564_v54, %v1533_v43  ;;  %v1537_v8 = vmul.f32 %v1505_v60, %v1012_v20  ;;  %v4844_v54 = vpack.c.bf16 %v1028_v13, %v1027_v44  ;;  %v4850_v60 = vld [vmem:[#allocation12 + $0xe8] sm:$0xff] }
 0x358   : > { %1579 = vadd.xlane.f32.xlu0 %v1578_v49  ;;  %v1392_v16 = vshll.u32 %v1391_v5, 16 }
 0x359   : > { %v1566_v0 = vadd.f32 %v1565_v41, %v1534_v58 }
 0x35b   : > { %v1567_v6 = vadd.f32 %v1566_v0, %v1535_v61 }
 0x35d   : > { %v1568_v62 = vadd.f32 %v1567_v6, %v1536_v4 }
 0x35f   : > { %v1569_v11 = vadd.f32 %v1568_v62, %v1537_v8 }
 0x361   : > { %1570 = vadd.xlane.f32.xlu1 %v1569_v11 }
 0x3b2   : > { %v1389_v15 = vpop.xlane.xlu0 %1388 }
 0x3b3   : > { %v1390_v19 = vcvt.f32.s32 %v1389_v15 }
 0x3b5   : > { %v1393_v21 = vadd.s32 %v1392_v16, %v1390_v19 }
 0x3b7   : > { %vm1418_vm12 = vcmp.eq.s32.totalorder %v4568_v31, %v1393_v21  ;;  %vm1419_vm13 = vcmp.eq.s32.totalorder %v4571_v32, %v1393_v21  ;;  %vm1420_vm4 = vcmp.eq.s32.totalorder %v4574_v2, %v1393_v21  ;;  %vm1421_vm14 = vcmp.eq.s32.totalorder %v4577_v33, %v1393_v21  ;;  %v4833_v33 = vld [vmem:[#allocation12 + $0xd0] sm:$0xff] }
 0x3b8   : > { %vm1422_vm15 = vcmp.eq.s32.totalorder %v4580_v34, %v1393_v21  ;;  %v3550_v23 = vsel %vm1418_vm12, 1.0, %v4154_v17  ;;  %v3551_v25 = vsel %vm1419_vm13, 1.0, %v4154_v17  ;;  %v3552_v24 = vsel %vm1420_vm4, 1.0, %v4154_v17 }
 0x3b9   : > { %v3553_v31 = vsel %vm1421_vm14, 1.0, %v4154_v17  ;;  %vm1423_vm1 = vcmp.eq.s32.totalorder %v4583_v35, %v1393_v21  ;;  %v1514_v32 = vperm.slane %v3550_v23, 0  ;;  %v1515_v2 = vperm.slane %v3551_v25, 0 }
 0x3ba   : > { %v1516_v20 = vperm.slane %v3552_v24, 0  ;;  %v3554_v34 = vsel %vm1422_vm15, 1.0, %v4154_v17  ;;  %vm1424_vm2 = vcmp.eq.s32.totalorder %v4586_v36, %v1393_v21  ;;  %v1517_v63 = vperm.slane %v3553_v31, 0  ;;  %v4846_v36 = vld [vmem:[#allocation12 + $0xe0] sm:$0xff] }
 0x3bb   : > { %v1546_v1 = vmul.f32 %v1514_v32, %v4827_v26  ;;  %v1547_v42 = vmul.f32 %v1515_v2, %v4829_v30  ;;  %vm1425_vm3 = vcmp.eq.s32.totalorder %v4589_v37, %v1393_v21  ;;  %v3555_v35 = vsel %vm1423_vm1, 1.0, %v4154_v17 }
 0x3bc   : > { %v1518_v49 = vperm.slane %v3554_v34, 0  ;;  %v1548_v50 = vmul.f32 %v1516_v20, %v4833_v33  ;;  %v3556_v40 = vsel %vm1424_vm2, 1.0, %v4154_v17  ;;  %v1519_v57 = vperm.slane %v3555_v35, 0 }
 0x3bd   : > { %v1581_v43 = vadd.f32 %v1547_v42, %v1546_v1  ;;  %v1549_v58 = vmul.f32 %v1517_v63, %v4839_v55  ;;  %v3557_v37 = vsel %vm1425_vm3, 1.0, %v4154_v17  ;;  %v1520_v61 = vperm.slane %v3556_v40, 0 }
 0x3be   : > { %v1550_v0 = vmul.f32 %v1518_v49, %v4846_v36  ;;  %v1521_v6 = vperm.slane %v3557_v37, 0  ;;  %v1551_v8 = vmul.f32 %v1519_v57, %v4850_v60  ;;  %v1594_v32 = vpack.c.bf16 %v4695_v28, %v4693_v27 }
 0x3bf   : > { %v1582_v41 = vadd.f32 %v1581_v43, %v1548_v50  ;;  %v1552_v11 = vmul.f32 %v1520_v61, %v1027_v44  ;;  %v1595_v2 = vpack.c.bf16 %v4708_v45, %v4703_v39  ;;  %v1596_v39 = vpack.c.bf16 %v4719_v59, %v4715_v51 }
 0x3c0   : > { %v1553_v15 = vmul.f32 %v1521_v6, %v1028_v13  ;;  %v1630_v20 = vunpack.c.l.b16 %v1594_v32  ;;  %v1631_v34 = vunpack.c.h.b16 %v1594_v32  ;;  %v1597_v45 = vpack.c.bf16 %v4743_v12, %v4730_v7 }
 0x3c1   : > { %v1583_v4 = vadd.f32 %v1582_v41, %v1549_v58  ;;  %v1632_v63 = vunpack.c.l.b16 %v1595_v2  ;;  %v1633_v1 = vunpack.c.h.b16 %v1595_v2  ;;  %v1634_v57 = vunpack.c.l.b16 %v1596_v39 }
 0x3c2   : > { %v1562_v25 = vpop.xlane.xlu2 %1561  ;;  %v1638_v42 = vpack.c.b16 %v1630_v20, %v1630_v20  ;;  %v1639_v44 = vpack.c.b16 %v1631_v34, %v1631_v34  ;;  %v1635_v58 = vunpack.c.h.b16 %v1596_v39  ;;  %v1636_v41 = vunpack.c.l.b16 %v1597_v45 }
 0x3c3   : > { %v1584_v62 = vadd.f32 %v1583_v4, %v1550_v0  ;;  %v1590_v17 = vpack.c.bf16 %v1562_v25, %v1562_v25  ;;  %v1640_v13 = vpack.c.b16 %v1632_v63, %v1632_v63  ;;  %v1641_v35 = vpack.c.b16 %v1633_v1, %v1633_v1 }
 0x3c4   : > { %v1651_v49 = vsel %vm661_vm0, %v1638_v42, 0  ;;  %v1654_v50 = vsel %vm661_vm0, %v1639_v44, 0  ;;  %v1637_v37 = vunpack.c.h.b16 %v1597_v45  ;;  %v1642_v61 = vpack.c.b16 %v1634_v57, %v1634_v57 }
 0x3c5   : > { %v1585_v5 = vadd.f32 %v1584_v62, %v1551_v8  ;;  %v1657_v43 = vsel %vm661_vm0, %v1640_v13, 0  ;;  %v1660_v40 = vsel %vm661_vm0, %v1641_v35, 0  ;;  %1681 = vmatpush.bf16.msra.mxu0 %v1651_v49  ;;  %1694 = vmatpush.bf16.msra.mxu1 %v1654_v50  ;;  %v1643_v0 = vpack.c.b16 %v1635_v58, %v1635_v58 }
 0x3c6   : > { %1707 = vmatpush.bf16.msra.mxu2 %v1657_v43  ;;  %1720 = vmatpush.bf16.msra.mxu3 %v1660_v40  ;;  %v1644_v4 = vpack.c.b16 %v1636_v41, %v1636_v41  ;;  %v1645_v6 = vpack.c.b16 %v1637_v37, %v1637_v37  ;;  %v1663_v8 = vsel %vm661_vm0, %v1642_v61, 0  ;;  %v1598_v51 = vpack.c.bf16 %v4784_v53, %v4781_v3 }
 0x3c7   : > { %v1586_v16 = vadd.f32 %v1585_v5, %v1552_v11  ;;  %v1666_v62 = vsel %vm661_vm0, %v1643_v0, 0  ;;  %v1599_v59 = vpack.c.bf16 %v4801_v29, %v4794_v18  ;;  %v4886_v18 = vld [vmem:[%s5388_s8] sm:$0xf]  ;;  %vm3094_vm12 = vcmask 257024  }
 0x3c8   : > { %v1669_v11 = vsel %vm661_vm0, %v1644_v4, 0  ;;  %v1672_v5 = vsel %vm661_vm0, %v1645_v6, 0  ;;  %v1798_v7 = vunpack.c.l.b16 %v1598_v51  ;;  %v1799_v12 = vunpack.c.h.b16 %v1598_v51 }
 0x3c9   : > { %v1587_v19 = vadd.f32 %v1586_v16, %v1553_v15  ;;  %1733 = vmatpush.bf16.msrb.mxu0 %v1663_v8  ;;  %1746 = vmatpush.bf16.msrb.mxu1 %v1666_v62  ;;  %v1800_v15 = vunpack.c.l.b16 %v1599_v59  ;;  %v1801_v16 = vunpack.c.h.b16 %v1599_v59  ;;  %v3093_v29 = vmul.f32 %v4886_v18, %v4886_v18 }
 0x3ca   : > { %1759 = vmatpush.bf16.msrb.mxu2 %v1669_v11  ;;  %1772 = vmatpush.bf16.msrb.mxu3 %v1672_v5  ;;  %v1600_v32 = vpack.c.bf16 %v4813_v56, %v4809_v47  ;;  %v1804_v63 = vunpack.c.l.b16 %v4807_v46  ;;  %v1805_v1 = vunpack.c.h.b16 %v4807_v46  ;;  %v1602_v46 = vpack.c.bf16 %v4739_v10, %v4737_v9 }
 0x3cb   : > { %v1580_v21 = vpop.xlane.xlu0 %1579  ;;  %1588 = vadd.xlane.f32.xlu1 %v1587_v19  ;;  %v1806_v19 = vpack.c.b16 %v1798_v7, %v1798_v7  ;;  %v1809_v25 = vpack.c.b16 %v1801_v16, %v1801_v16  ;;  %v3095_v2 = vsel %vm3094_vm12, %v3093_v29, 0.0  ;;  %v1603_v43 = vpack.c.bf16 %v4756_v38, %v4749_v22 }
 0x3cc   : > { %v1592_v23 = vpack.c.bf16 %v1580_v21, %v1580_v21  ;;  %v1807_v21 = vpack.c.b16 %v1799_v12, %v1799_v12  ;;  %v1802_v20 = vunpack.c.l.b16 %v1600_v32  ;;  %v1803_v34 = vunpack.c.h.b16 %v1600_v32 }
 0x3cd   : > { %v1827_v53 = vsel %vm661_vm0, %v1809_v25, 0  ;;  %v1812_v13 = vpack.c.b16 %v1804_v63, %v1804_v63  ;;  %v1813_v35 = vpack.c.b16 %v1805_v1, %v1805_v1  ;;  %v1965_v40 = vunpack.c.l.b16 %v1602_v46 }
 0x3ce   : > { %1945 = vxpose.xlu0.c.b16.start.end [1/1] (short) (narrow) %v1592_v23, 16  ;;  %v1808_v23 = vpack.c.b16 %v1800_v15, %v1800_v15  ;;  %v1810_v42 = vpack.c.b16 %v1802_v20, %v1802_v20  ;;  %v1811_v44 = vpack.c.b16 %v1803_v34, %v1803_v34  ;;  %v1968_v39 = vunpack.c.h.b16 %v1603_v43 }
 0x3cf   : > { %v1836_v47 = vsel %vm661_vm0, %v1812_v13, 0  ;;  %v1839_v56 = vsel %vm661_vm0, %v1813_v35, 0  ;;  %v1973_v45 = vpack.c.b16 %v1965_v40, %v1965_v40  ;;  %v1604_v22 = vpack.c.bf16 %v4770_v52, %v4764_v48 }
 0x3d0   : > { %v1824_v3 = vsel %vm661_vm0, %v1808_v23, 0  ;;  %v1830_v49 = vsel %vm661_vm0, %v1810_v42, 0  ;;  %v1833_v50 = vsel %vm661_vm0, %v1811_v44, 0  ;;  %v1976_v41 = vpack.c.b16 %v1968_v39, %v1968_v39 }
 0x3d1   : > { %v1985_v61 = vsel %vm661_vm0, %v1973_v45, 0  ;;  %v1969_v38 = vunpack.c.l.b16 %v1604_v22  ;;  %v1970_v4 = vunpack.c.h.b16 %v1604_v22  ;;  %v1971_v6 = vunpack.c.l.b16 %v4676_v14 }
 0x3d2   : > { %v1994_v10 = vsel %vm661_vm0, %v1976_v41, 0  ;;  %v1972_v8 = vunpack.c.h.b16 %v4676_v14  ;;  %v4930_v14 = vld [vmem:[%s5389_s9] sm:$0xf]  ;;  %v1607_v15 = vpack.c.bf16 %v4839_v55, %v4833_v33  ;;  %v1608_v33 = vpack.c.bf16 %v4850_v60, %v4846_v36 }
 0x3d3   : > { %v1977_v62 = vpack.c.b16 %v1969_v38, %v1969_v38  ;;  %v1978_v11 = vpack.c.b16 %v1970_v4, %v1970_v4  ;;  %v1979_v5 = vpack.c.b16 %v1971_v6, %v1971_v6  ;;  %v3149_v12 = vmul.f32 %v4930_v14, %v4930_v14 }
 0x3d4   : > { %v1571_v24 = vpop.xlane.xlu1 %1570  ;;  %v1980_v51 = vpack.c.b16 %v1972_v8, %v1972_v8  ;;  %v2135_v23 = vunpack.c.h.b16 %v1607_v15  ;;  %v2138_v55 = vunpack.c.l.b16 %v4844_v54  ;;  %v2139_v20 = vunpack.c.h.b16 %v4844_v54 }
 0x3d5   : > { %v1591_v31 = vpack.c.bf16 %v1571_v24, %v1571_v24  ;;  %v1997_v59 = vsel %vm661_vm0, %v1977_v62, 0  ;;  %v2000_v7 = vsel %vm661_vm0, %v1978_v11, 0  ;;  %v2003_v48 = vsel %vm661_vm0, %v1979_v5, 0 }
 0x3d6   : > { %v2006_v52 = vsel %vm661_vm0, %v1980_v51, 0  ;;  %v3150_v16 = vsel %vm3094_vm12, %v3149_v12, 0.0  ;;  %v2136_v34 = vunpack.c.l.b16 %v1608_v33  ;;  %v2137_v63 = vunpack.c.h.b16 %v1608_v33 }
 0x3d7   : > { %3744 = vxpose.binary.xlu2.c.b16.start.end [1/2] (short) (narrow) %v1591_v31, %v1590_v17, 16  ;;  %v1818_v17 = vsel %vm661_vm0, %v1806_v19, 0  ;;  %v1821_v31 = vsel %vm661_vm0, %v1807_v21, 0  ;;  %v1606_v19 = vpack.c.bf16 %v4829_v30, %v4827_v26  ;;  %v2134_v21 = vunpack.c.l.b16 %v1607_v15 }
 0x3d8   : > { %v2146_v1 = vpack.c.b16 %v2138_v55, %v2138_v55  ;;  %v2147_v42 = vpack.c.b16 %v2139_v20, %v2139_v20  ;;  %v2144_v44 = vpack.c.b16 %v2136_v34, %v2136_v34  ;;  %v2145_v13 = vpack.c.b16 %v2137_v63, %v2137_v63 }
 0x3d9   : > { %v2132_v25 = vunpack.c.l.b16 %v1606_v19  ;;  %v3075_v54 = vpack.c.bf16 %v4886_v18, %v4886_v18  ;;  %vm3076_vm13 = vcmask 261120   ;;  %vm3098_vm4 = vcmask 7168  }
 0x3da   : > { %v2170_v35 = vsel %vm661_vm0, %v2146_v1, 0  ;;  %v2167_v36 = vsel %vm661_vm0, %v2145_v13, 0 }
 0x3db   : > { %v3078_v40 = vsel %vm3076_vm13, %v3075_v54, 0 }
 0x43e   : > { %v1589_v27 = vpop.xlane.xlu1 %1588 }
 0x43f   : > { %v1593_v28 = vpack.c.bf16 %v1589_v27, %v1589_v27  ;;  %v1966_v27 = vunpack.c.h.b16 %v1602_v46  ;;  %3151 = vadd.xlane.f32.xlu0 %v3150_v16 }
 0x441   : > { %2112 = vxpose.xlu1.c.b16.start.end [1/1] (short) (narrow) %v1593_v28, 16  ;;  %v1967_v28 = vunpack.c.l.b16 %v1603_v43  ;;  %v1974_v57 = vpack.c.b16 %v1966_v27, %v1966_v27 }
 0x443   : > { %v1975_v58 = vpack.c.b16 %v1967_v28, %v1967_v28  ;;  %v1988_v0 = vsel %vm661_vm0, %v1974_v57, 0 }
 0x445   : > { %v1991_v9 = vsel %vm661_vm0, %v1975_v58, 0 }
 0x448   : > { %3096 = vadd.xlane.f32.xlu2 %v3095_v2 }
 0x478   : > { %v3745_v24 = vpop.trf.xlu2 }
 0x479   : > { %3558 = vmatmul.msk.bf16.vlgmr.msra.gmra.mxu0 %vm1646_vm11, %v3745_v24  ;;  %3559 = vmatmul.msk.bf16.vlgmr.msra.gmra.mxu1 %vm1646_vm11, %v3745_v24 }
 0x47a   : > { %3560 = vmatmul.msk.bf16.vlgmr.msra.gmra.mxu2 %vm1646_vm11, %v3745_v24  ;;  %3561 = vmatmul.msk.bf16.vlgmr.msra.gmra.mxu3 %vm1646_vm11, %v3745_v24  ;;  %v1953_v29 = vpop.trf.xlu0 }
 0x47b   : > { %1848 = vmatpush.bf16.msra.mxu0 %v1818_v17  ;;  %1861 = vmatpush.bf16.msra.mxu1 %v1821_v31  ;;  %v2142_v17 = vpack.c.b16 %v2134_v21, %v2134_v21  ;;  %v2143_v31 = vpack.c.b16 %v2135_v23, %v2135_v23 }
 0x47c   : > { %1874 = vmatpush.bf16.msra.mxu2 %v1824_v3  ;;  %1887 = vmatpush.bf16.msra.mxu3 %v1827_v53  ;;  %v2140_v3 = vpack.c.b16 %v2132_v25, %v2132_v25 }
 0x47d   : > { %v2158_v32 = vsel %vm661_vm0, %v2142_v17, 0  ;;  %v2161_v2 = vsel %vm661_vm0, %v2143_v31, 0 }
 0x47e   : > { %v2152_v26 = vsel %vm661_vm0, %v2140_v3, 0 }
 0x480   : > { %v3746_v37 = vpop.trf.xlu2 }
 0x489   : > { %3562 = vmatmul.msk.bf16.vlgmr.msrb.gmra.mxu0 %vm1646_vm11, %v3745_v24  ;;  %3563 = vmatmul.msk.bf16.vlgmr.msrb.gmra.mxu1 %vm1646_vm11, %v3745_v24 }
 0x48a   : > { %3564 = vmatmul.msk.bf16.vlgmr.msrb.gmra.mxu2 %vm1646_vm11, %v3745_v24  ;;  %3565 = vmatmul.msk.bf16.vlgmr.msrb.gmra.mxu3 %vm1646_vm11, %v3745_v24  ;;  %v2133_v24 = vunpack.c.h.b16 %v1606_v19 }
 0x48b   : > { %1900 = vmatpush.bf16.msrb.mxu0 %v1830_v49  ;;  %1913 = vmatpush.bf16.msrb.mxu1 %v1833_v50  ;;  %v2173_v49 = vsel %vm661_vm0, %v2147_v42, 0  ;;  %v2164_v50 = vsel %vm661_vm0, %v2144_v44, 0 }
 0x48c   : > { %1926 = vmatpush.bf16.msrb.mxu2 %v1836_v47  ;;  %1939 = vmatpush.bf16.msrb.mxu3 %v1839_v56  ;;  %v2141_v53 = vpack.c.b16 %v2133_v24, %v2133_v24 }
 0x48e   : > { %v2155_v30 = vsel %vm661_vm0, %v2141_v53, 0 }
 0x499   : > { %3566 = vmatmul.msk.bf16.vlgmr.msra.gmra.mxu0 %vm1646_vm11, %v3746_v37  ;;  %3567 = vmatmul.msk.bf16.vlgmr.msra.gmra.mxu1 %vm1646_vm11, %v3746_v37 }
 0x49a   : > { %3568 = vmatmul.msk.bf16.vlgmr.msra.gmra.mxu2 %vm1646_vm11, %v3746_v37  ;;  %3569 = vmatmul.msk.bf16.vlgmr.msra.gmra.mxu3 %vm1646_vm11, %v3746_v37 }
 0x49b   : > { %2015 = vmatpush.bf16.msra.mxu0 %v1985_v61  ;;  %2028 = vmatpush.bf16.msra.mxu1 %v1988_v0 }
 0x49c   : > { %2041 = vmatpush.bf16.msra.mxu2 %v1991_v9  ;;  %2054 = vmatpush.bf16.msra.mxu3 %v1994_v10 }
 0x4a9   : > { %3570 = vmatmul.msk.bf16.vlgmr.msrb.gmra.mxu0 %vm1646_vm11, %v3746_v37  ;;  %3571 = vmatmul.msk.bf16.vlgmr.msrb.gmra.mxu1 %vm1646_vm11, %v3746_v37 }
 0x4aa   : > { %3572 = vmatmul.msk.bf16.vlgmr.msrb.gmra.mxu2 %vm1646_vm11, %v3746_v37  ;;  %3573 = vmatmul.msk.bf16.vlgmr.msrb.gmra.mxu3 %vm1646_vm11, %v3746_v37 }
 0x4ab   : > { %2067 = vmatpush.bf16.msrb.mxu0 %v1997_v59  ;;  %2080 = vmatpush.bf16.msrb.mxu1 %v2000_v7 }
 0x4ac   : > { %2093 = vmatpush.bf16.msrb.mxu2 %v2003_v48  ;;  %2106 = vmatpush.bf16.msrb.mxu3 %v2006_v52 }
 0x4b9   : > { %3574 = vmatmul.msk.bf16.vlgmr.msra.gmra.mxu0 %vm1646_vm11, %v1953_v29  ;;  %3575 = vmatmul.msk.bf16.vlgmr.msra.gmra.mxu1 %vm1646_vm11, %v1953_v29 }
 0x4ba   : > { %3576 = vmatmul.msk.bf16.vlgmr.msra.gmra.mxu2 %vm1646_vm11, %v1953_v29  ;;  %3577 = vmatmul.msk.bf16.vlgmr.msra.gmra.mxu3 %vm1646_vm11, %v1953_v29 }
 0x4bb   : > { %2208 = vmatpush.bf16.msra.mxu2 %v2158_v32  ;;  %2221 = vmatpush.bf16.msra.mxu3 %v2161_v2  ;;  %v4972_v39 = vpop.xlane.xlu2 %3096  ;;  %v4155_v2 = vmov 1.0  }
 0x4bc   : > { %2182 = vmatpush.bf16.msra.mxu0 %v2152_v26  ;;  %2195 = vmatpush.bf16.msra.mxu1 %v2155_v30 }
 0x4c9   : > { %3578 = vmatmul.msk.bf16.vlgmr.msrb.gmra.mxu0 %vm1646_vm11, %v1953_v29  ;;  %3579 = vmatmul.msk.bf16.vlgmr.msrb.gmra.mxu1 %vm1646_vm11, %v1953_v29 }
 0x4ca   : > { %3580 = vmatmul.msk.bf16.vlgmr.msrb.gmra.mxu2 %vm1646_vm11, %v1953_v29  ;;  %3581 = vmatmul.msk.bf16.vlgmr.msrb.gmra.mxu3 %vm1646_vm11, %v1953_v29 }
 0x4cb   : > { %2260 = vmatpush.bf16.msrb.mxu2 %v2170_v35  ;;  %2273 = vmatpush.bf16.msrb.mxu3 %v2173_v49 }
 0x4cc   : > { %2234 = vmatpush.bf16.msrb.mxu0 %v2164_v50  ;;  %2247 = vmatpush.bf16.msrb.mxu1 %v2167_v36 }
 0x4ed   : > { %v2120_v60 = vpop.trf.xlu1 }
 0x4ee   : > { %3582 = vmatmul.msk.bf16.vlgmr.msra.gmra.mxu0 %vm1646_vm11, %v2120_v60  ;;  %3583 = vmatmul.msk.bf16.vlgmr.msra.gmra.mxu1 %vm1646_vm11, %v2120_v60 }
 0x4ef   : > { %3584 = vmatmul.msk.bf16.vlgmr.msra.gmra.mxu2 %vm1646_vm11, %v2120_v60  ;;  %3585 = vmatmul.msk.bf16.vlgmr.msra.gmra.mxu3 %vm1646_vm11, %v2120_v60 }
 0x4f0   : > { %3087 = vmatpush.bf16.xpose.msra.mxu0 %v3078_v40  ;;  %3591 = vmatpush.xpose.msk.msra.mxu1 %vm3098_vm4, %v4972_v39 }
 0x4f6   : > { %v1683_v47 = vpop.f32.mrf.mxu0  ;;  %v1696_v56 = vpop.f32.mrf.mxu1 }
 0x4f7   : > { %v4965_v46 = vmul.f32 0.35355338, %v1683_v47  ;;  %v4967_v43 = vmul.f32 0.35355338, %v1696_v56 }
 0x4f9   : > { %v2343_v27 = vand.u32 2147483647, %v4965_v46  ;;  %v2344_v28 = vand.u32 2147483647, %v4967_v43  ;;  %v2311_v31 = vmax.f32 %v4965_v46, 0.0  ;;  %v2312_v30 = vmax.f32 %v4967_v43, 0.0 }
 0x4fb   : > { %v2375_v45 = vsub.f32 0.0, %v2343_v27  ;;  %v2376_v57 = vsub.f32 0.0, %v2344_v28 }
 0x4fd   : > { %v2407_v18 = vmul.f32 1.442695, %v2375_v45  ;;  %v2409_v58 = vmul.f32 1.442695, %v2376_v57  ;;  %v1709_v41 = vpop.f32.mrf.mxu2  ;;  %v1722_v37 = vpop.f32.mrf.mxu3 }
 0x4fe   : > { %3586 = vmatmul.msk.bf16.vlgmr.msrb.gmra.mxu0 %vm1646_vm11, %v2120_v60  ;;  %3587 = vmatmul.msk.bf16.vlgmr.msrb.gmra.mxu1 %vm1646_vm11, %v2120_v60  ;;  %v4978_v61 = vmul.f32 0.35355338, %v1709_v41  ;;  %v4980_v0 = vmul.f32 0.35355338, %v1722_v37  ;;  %v1685_v9 = vpop.f32.mrf.mxu0  ;;  %v1698_v10 = vpop.f32.mrf.mxu1 }
 0x4ff   : > { %3588 = vmatmul.msk.bf16.vlgmr.msrb.gmra.mxu2 %vm1646_vm11, %v2120_v60  ;;  %3589 = vmatmul.msk.bf16.vlgmr.msrb.gmra.mxu3 %vm1646_vm11, %v2120_v60  ;;  %3747 = vpow2.f32 %v2407_v18 }
 0x500   : > { %3749 = vpow2.f32 %v2409_v58  ;;  %v2345_v22 = vand.u32 2147483647, %v4978_v61  ;;  %v2346_v38 = vand.u32 2147483647, %v4980_v0  ;;  %v2313_v28 = vmax.f32 %v4978_v61, 0.0 }
 0x501   : > { %v2314_v41 = vmax.f32 %v4980_v0, 0.0 }
 0x502   : > { %v2377_v4 = vsub.f32 0.0, %v2345_v22  ;;  %v2378_v6 = vsub.f32 0.0, %v2346_v38 }
 0x504   : > { %v2411_v8 = vmul.f32 1.442695, %v2377_v4  ;;  %v2413_v11 = vmul.f32 1.442695, %v2378_v6 }
 0x505   : > { %v3748_v62 = vpop.eup %3747  ;;  %v1711_v5 = vpop.f32.mrf.mxu2 }
 0x506   : > { %v1724_v51 = vpop.f32.mrf.mxu3  ;;  %v3750_v59 = vpop.eup %3749  ;;  %v2471_v7 = vadd.f32 1.0, %v3748_v62  ;;  %3751 = vpow2.f32 %v2411_v8 }
 0x507   : > { %v1735_v48 = vpop.f32.mrf.mxu0  ;;  %v1748_v52 = vpop.f32.mrf.mxu1  ;;  %v2472_v12 = vadd.f32 1.0, %v3750_v59  ;;  %3753 = vpow2.f32 %v2413_v11 }
 0x508   : > { %v4986_v15 = vmul.f32 0.35355338, %v1735_v48  ;;  %v4988_v16 = vmul.f32 0.35355338, %v1748_v52  ;;  %3755 = vlog2.f32 %v2471_v7 }
 0x509   : > { %3757 = vlog2.f32 %v2472_v12 }
 0x50a   : > { %v2347_v19 = vand.u32 2147483647, %v4986_v15  ;;  %v2348_v21 = vand.u32 2147483647, %v4988_v16 }
 0x50c   : > { %v2379_v23 = vsub.f32 0.0, %v2347_v19  ;;  %v3752_v25 = vpop.eup %3751  ;;  %v2380_v24 = vsub.f32 0.0, %v2348_v21 }
 0x50d   : > { %v3754_v17 = vpop.eup %3753  ;;  %v2473_v3 = vadd.f32 1.0, %v3752_v25  ;;  %v1761_v29 = vpop.f32.mrf.mxu2 }
 0x50e   : > { %v2415_v53 = vmul.f32 1.442695, %v2379_v23  ;;  %v1774_v32 = vpop.f32.mrf.mxu3  ;;  %3592 = vmatmul.msk.f32.vlgmr.msra.gmra.mxu1 %vm3098_vm4, %v4155_v2  ;;  %3590 = vmatmul.msk.bf16.vlgmr.msra.gmra.mxu0 %vm3076_vm13, %v3075_v54  ;;  %v3756_v26 = vpop.eup %3755  ;;  %v2474_v33 = vadd.f32 1.0, %v3754_v17  ;;  %v2417_v55 = vmul.f32 1.442695, %v2380_v24 }
 0x50f   : > { %v4997_v20 = vmul.f32 0.35355338, %v1761_v29  ;;  %v1737_v34 = vpop.f32.mrf.mxu0  ;;  %v1750_v63 = vpop.f32.mrf.mxu1  ;;  %v2504_v42 = vmul.f32 0.6931472, %v3756_v26  ;;  %3759 = vlog2.f32 %v2473_v3  ;;  %v4999_v44 = vmul.f32 0.35355338, %v1774_v32 }
 0x510   : > { %v3758_v1 = vpop.eup %3757  ;;  %3761 = vlog2.f32 %v2474_v33 }
 0x511   : > { %v2506_v13 = vmul.f32 0.6931472, %v3758_v1  ;;  %v2349_v35 = vand.u32 2147483647, %v4997_v20  ;;  %v2567_v49 = vadd.f32 %v2504_v42, %v2311_v31  ;;  %3763 = vpow2.f32 %v2415_v53 }
 0x512   : > { %v2350_v50 = vand.u32 2147483647, %v4999_v44  ;;  %3765 = vpow2.f32 %v2417_v55 }
 0x513   : > { %v2568_v36 = vadd.f32 %v2506_v13, %v2312_v30  ;;  %v2381_v60 = vsub.f32 0.0, %v2349_v35  ;;  %v2599_v54 = vsub.f32 %v4965_v46, %v2567_v49  ;;  %v2663_v47 = vsub.f32 0.0, %v2567_v49 }
 0x514   : > { %v2382_v56 = vsub.f32 0.0, %v2350_v50 }
 0x515   : > { %v2600_v40 = vsub.f32 %v4967_v43, %v2568_v36  ;;  %v2664_v27 = vsub.f32 0.0, %v2568_v36  ;;  %v2419_v45 = vmul.f32 1.442695, %v2381_v60  ;;  %v3760_v57 = vpop.eup %3759  ;;  %v2631_v18 = vmax.f32 %v2599_v54, -100.0  ;;  %v1763_v9 = vpop.f32.mrf.mxu2 }
 0x516   : > { %v2695_v58 = vmax.f32 %v2663_v47, -100.0  ;;  %v2421_v37 = vmul.f32 1.442695, %v2382_v56  ;;  %v1776_v10 = vpop.f32.mrf.mxu3  ;;  %v3762_v22 = vpop.eup %3761  ;;  %v2508_v46 = vmul.f32 0.6931472, %v3760_v57  ;;  %v2316_v9 = vmax.f32 %v4988_v16, 0.0 }
 0x517   : > { %v2632_v38 = vmax.f32 %v2600_v40, -100.0  ;;  %v2696_v4 = vmax.f32 %v2664_v27, -100.0  ;;  %3767 = vpow2.f32 %v2419_v45  ;;  %v1850_v6 = vpop.f32.mrf.mxu0  ;;  %v1863_v8 = vpop.f32.mrf.mxu1  ;;  %v2510_v62 = vmul.f32 0.6931472, %v3762_v22 }
 0x518   : > { %v3764_v43 = vpop.eup %3763  ;;  %3769 = vpow2.f32 %v2421_v37  ;;  %v5007_v11 = vmul.f32 0.35355338, %v1850_v6  ;;  %v2569_v7 = vadd.f32 %v2508_v46, %v2313_v28  ;;  %v5010_v21 = vmul.f32 0.35355338, %v1863_v8 }
 0x519   : > { %v3766_v5 = vpop.eup %3765  ;;  %v2759_v51 = vrot.slane %v2632_v38, 7  ;;  %v2859_v59 = vrot.slane %v2696_v4, 7  ;;  %v2475_v48 = vadd.f32 1.0, %v3764_v43  ;;  %v2570_v52 = vadd.f32 %v2510_v62, %v2314_v41 }
 0x51a   : > { %v2476_v12 = vadd.f32 1.0, %v3766_v5  ;;  %v2351_v19 = vand.u32 2147483647, %v5007_v11  ;;  %v2601_v24 = vsub.f32 %v4978_v61, %v2569_v7  ;;  %v2665_v17 = vsub.f32 0.0, %v2569_v7 }
 0x51b   : > { %v2787_v23 = vsel %vm1101_vm5, %v2631_v18, %v2759_v51  ;;  %v2887_v25 = vsel %vm1101_vm5, %v2695_v58, %v2859_v59  ;;  %v2602_v31 = vsub.f32 %v4980_v0, %v2570_v52  ;;  %v2666_v3 = vsub.f32 0.0, %v2570_v52 }
 0x51c   : > { %3771 = vlog2.f32 %v2475_v48  ;;  %v2633_v29 = vmax.f32 %v2601_v24, -100.0  ;;  %v2697_v32 = vmax.f32 %v2665_v17, -100.0  ;;  %v2383_v26 = vsub.f32 0.0, %v2351_v19 }
 0x51d   : > { %v3768_v53 = vpop.eup %3767  ;;  %3773 = vlog2.f32 %v2476_v12  ;;  %v2634_v33 = vmax.f32 %v2602_v31, -100.0  ;;  %v2698_v55 = vmax.f32 %v2666_v3, -100.0  ;;  %v2352_v63 = vand.u32 2147483647, %v5010_v21  ;;  %v1876_v1 = vpop.f32.mrf.mxu2 }
 0x51e   : > { %v3770_v30 = vpop.eup %3769  ;;  %v2477_v34 = vadd.f32 1.0, %v3768_v53  ;;  %v1889_v42 = vpop.f32.mrf.mxu3  ;;  %v2760_v13 = vrot.slane %v2633_v29, 6  ;;  %v2860_v61 = vrot.slane %v2697_v32, 6  ;;  %v2423_v49 = vmul.f32 1.442695, %v2383_v26 }
 0x51f   : > { %v2478_v35 = vadd.f32 1.0, %v3770_v30  ;;  %v1852_v0 = vpop.f32.mrf.mxu0  ;;  %v1865_v50 = vpop.f32.mrf.mxu1  ;;  %v2761_v36 = vrot.slane %v2634_v33, 5  ;;  %v2861_v60 = vrot.slane %v2698_v55, 5  ;;  %v2384_v54 = vsub.f32 0.0, %v2352_v63 }
 0x520   : > { %3775 = vlog2.f32 %v2477_v34  ;;  %v5017_v47 = vmul.f32 0.35355338, %v1876_v1  ;;  %v5019_v56 = vmul.f32 0.35355338, %v1889_v42  ;;  %v2315_v41 = vmax.f32 %v4986_v15, 0.0 }
 0x521   : > { %3777 = vlog2.f32 %v2478_v35  ;;  %v2788_v27 = vsel %vm1203_vm6, %v2760_v13, %v2761_v36  ;;  %v2888_v28 = vsel %vm1203_vm6, %v2860_v61, %v2861_v60  ;;  %v2425_v45 = vmul.f32 1.442695, %v2384_v54 }
 0x522   : > { %v3772_v40 = vpop.eup %3771  ;;  %3779 = vpow2.f32 %v2423_v49  ;;  %v5024_v18 = vsel %vm1205_vm9, %v2787_v23, %v2788_v27  ;;  %v5027_v58 = vsel %vm1205_vm9, %v2887_v25, %v2888_v28  ;;  %v2353_v22 = vand.u32 2147483647, %v5017_v47 }
 0x523   : > { %v3774_v57 = vpop.eup %3773  ;;  %v2512_v37 = vmul.f32 0.6931472, %v3772_v40  ;;  %3781 = vpow2.f32 %v2425_v45  ;;  %v2354_v4 = vand.u32 2147483647, %v5019_v56  ;;  %v2317_v8 = vmax.f32 %v4997_v20, 0.0 }
 0x524   : > { %v2514_v10 = vmul.f32 0.6931472, %v3774_v57  ;;  %v2318_v43 = vmax.f32 %v4999_v44, 0.0  ;;  %v2385_v62 = vsub.f32 0.0, %v2353_v22 }
 0x525   : > { %v2571_v38 = vadd.f32 %v2512_v37, %v2315_v41  ;;  %v1878_v5 = vpop.f32.mrf.mxu2  ;;  %v2386_v12 = vsub.f32 0.0, %v2354_v4 }
 0x526   : > { %v3776_v46 = vpop.eup %3775  ;;  %v2572_v6 = vadd.f32 %v2514_v10, %v2316_v9  ;;  %v1891_v51 = vpop.f32.mrf.mxu3  ;;  %v2427_v3 = vmul.f32 1.442695, %v2385_v62 }
 0x527   : > { %v3778_v59 = vpop.eup %3777  ;;  %v2603_v7 = vsub.f32 %v4986_v15, %v2571_v38  ;;  %v2667_v48 = vsub.f32 0.0, %v2571_v38  ;;  %v2516_v52 = vmul.f32 0.6931472, %v3776_v46  ;;  %v1902_v19 = vpop.f32.mrf.mxu0  ;;  %v2429_v57 = vmul.f32 1.442695, %v2386_v12  ;;  %v3887_v38 = vld [vmem:[#allocation13] sm:$0xff] }
 0x528   : > { %v1915_v23 = vpop.f32.mrf.mxu1  ;;  %v3780_v25 = vpop.eup %3779  ;;  %v2604_v24 = vsub.f32 %v4988_v16, %v2572_v6  ;;  %v2668_v17 = vsub.f32 0.0, %v2572_v6  ;;  %v2518_v31 = vmul.f32 0.6931472, %v3778_v59  ;;  %3783 = vpow2.f32 %v2427_v3 }
 0x529   : > { %v2635_v53 = vmax.f32 %v2603_v7, -100.0  ;;  %v2699_v29 = vmax.f32 %v2667_v48, -100.0  ;;  %v2573_v32 = vadd.f32 %v2516_v52, %v2317_v8  ;;  %v2479_v26 = vadd.f32 1.0, %v3780_v25  ;;  %v3782_v30 = vpop.eup %3781 }
 0x52a   : > { %v2636_v33 = vmax.f32 %v2604_v24, -100.0  ;;  %v2700_v55 = vmax.f32 %v2668_v17, -100.0  ;;  %v2574_v34 = vadd.f32 %v2518_v31, %v2318_v43  ;;  %v2480_v50 = vadd.f32 1.0, %v3782_v30 }
 0x52b   : > { %v2762_v15 = vrot.slane %v2635_v53, 4  ;;  %v2862_v63 = vrot.slane %v2699_v29, 4  ;;  %v2605_v1 = vsub.f32 %v4997_v20, %v2573_v32  ;;  %v2669_v42 = vsub.f32 0.0, %v2573_v32 }
 0x52c   : > { %v2763_v13 = vrot.slane %v2636_v33, 3  ;;  %v2863_v61 = vrot.slane %v2700_v55, 3  ;;  %v2606_v16 = vsub.f32 %v4999_v44, %v2574_v34  ;;  %v2670_v35 = vsub.f32 0.0, %v2574_v34 }
 0x52d   : > { %v2637_v49 = vmax.f32 %v2605_v1, -100.0  ;;  %v2701_v0 = vmax.f32 %v2669_v42, -100.0  ;;  %3785 = vlog2.f32 %v2479_v26  ;;  %v1928_v27 = vpop.f32.mrf.mxu2  ;;  %v5041_v22 = vmul.f32 0.35355338, %v1902_v19 }
 0x52e   : > { %v2790_v36 = vsel %vm1207_vm7, %v2762_v15, %v2763_v13  ;;  %v2890_v60 = vsel %vm1207_vm7, %v2862_v63, %v2863_v61  ;;  %v2638_v54 = vmax.f32 %v2606_v16, -100.0  ;;  %v2702_v40 = vmax.f32 %v2670_v35, -100.0  ;;  %v1941_v28 = vpop.f32.mrf.mxu3  ;;  %v3784_v44 = vpop.eup %3783 }
 0x52f   : > { %v2764_v45 = vrot.slane %v2637_v49, 2  ;;  %v2864_v20 = vrot.slane %v2701_v0, 2  ;;  %3787 = vlog2.f32 %v2480_v50  ;;  %v1904_v41 = vpop.f32.mrf.mxu0  ;;  %v2823_v4 = vsub.f32 1.0, %v3887_v38 }
 0x530   : > { %v1917_v37 = vpop.f32.mrf.mxu1  ;;  %v2765_v9 = vrot.slane %v2638_v54, 1  ;;  %v2865_v10 = vrot.slane %v2702_v40, 1  ;;  %v2319_v46 = vmax.f32 %v5007_v11, 0.0  ;;  %v2481_v6 = vadd.f32 1.0, %v3784_v44 }
 0x531   : > { %v5044_v8 = vmul.f32 0.35355338, %v1915_v23  ;;  %3789 = vpow2.f32 %v2429_v57  ;;  %v2355_v5 = vand.u32 2147483647, %v5041_v22  ;;  %v2320_v48 = vmax.f32 %v5010_v21, 0.0 }
 0x532   : > { %v2791_v43 = vsel %vm1209_vm8, %v2764_v45, %v2765_v9  ;;  %v2891_v62 = vsel %vm1209_vm8, %v2864_v20, %v2865_v10  ;;  %v5052_v52 = vmul.f32 0.35355338, %v1928_v27  ;;  %3791 = vlog2.f32 %v2481_v6 }
 0x533   : > { %v3786_v51 = vpop.eup %3785  ;;  %v2792_v59 = vsel %vm1211_vm10, %v2790_v36, %v2791_v43  ;;  %v2892_v7 = vsel %vm1211_vm10, %v2890_v60, %v2891_v62  ;;  %v2387_v25 = vsub.f32 0.0, %v2355_v5  ;;  %v2356_v3 = vand.u32 2147483647, %v5044_v8 }
 0x534   : > { %v2793_v12 = vsel %vm661_vm0, %v5024_v18, %v2792_v59  ;;  %v2893_v19 = vsel %vm661_vm0, %v5027_v58, %v2892_v7  ;;  %v2520_v23 = vmul.f32 0.6931472, %v3786_v51  ;;  %v2357_v58 = vand.u32 2147483647, %v5052_v52 }
 0x535   : > { %v3788_v24 = vpop.eup %3787  ;;  %v2819_v17 = vmul.f32 %v3887_v38, %v2793_v12  ;;  %v2919_v31 = vmul.f32 %v2893_v19, %v2823_v4  ;;  %v2431_v32 = vmul.f32 1.442695, %v2387_v25  ;;  %v1930_v26 = vpop.f32.mrf.mxu2  ;;  %v2388_v63 = vsub.f32 0.0, %v2356_v3 }
 0x536   : > { %v2575_v53 = vadd.f32 %v2520_v23, %v2319_v46  ;;  %v2522_v29 = vmul.f32 0.6931472, %v3788_v24  ;;  %v1943_v30 = vpop.f32.mrf.mxu3  ;;  %v5062_v1 = vpack.c.bf16 %v4930_v14, %v4930_v14  ;;  %v5066_v13 = vmul.f32 0.35355338, %v1941_v28 }
 0x537   : > { %v2923_v33 = vadd.f32 %v2919_v31, %v2819_v17  ;;  %v2017_v55 = vpop.f32.mrf.mxu0  ;;  %v3790_v18 = vpop.eup %3789  ;;  %3793 = vpow2.f32 %v2431_v32  ;;  %v2321_v35 = vmax.f32 %v5017_v47, 0.0  ;;  %v2322_v49 = vmax.f32 %v5019_v56, 0.0 }
 0x538   : > { %v2030_v34 = vpop.f32.mrf.mxu1  ;;  %v2576_v15 = vadd.f32 %v2522_v29, %v2320_v48  ;;  %v2607_v61 = vsub.f32 %v5007_v11, %v2575_v53  ;;  %v2671_v16 = vsub.f32 0.0, %v2575_v53  ;;  %v2482_v60 = vadd.f32 1.0, %v3790_v18  ;;  %v3792_v14 = vpop.eup %3791 }
 0x539   : > { %v5064_v42 = vsub.f32 0.0, %v2923_v33  ;;  %v2323_v40 = vmax.f32 %v5041_v22, 0.0  ;;  %v2433_v27 = vmul.f32 1.442695, %v2388_v63  ;;  %v2389_v28 = vsub.f32 0.0, %v2357_v58 }
 0x53a   : > { %v2608_v50 = vsub.f32 %v5010_v21, %v2576_v15  ;;  %v2672_v36 = vsub.f32 0.0, %v2576_v15  ;;  %v2324_v11 = vmax.f32 %v5044_v8, 0.0  ;;  %v2325_v45 = vmax.f32 %v5052_v52, 0.0 }
 0x53b   : > { %v2935_v0 = vperm.slane %v5064_v42, 0  ;;  %v2936_v54 = vperm.slane %v5064_v42, 1  ;;  %v2326_v20 = vmax.f32 %v5066_v13, 0.0  ;;  %v2358_v57 = vand.u32 2147483647, %v5066_v13 }
 0x53c   : > { %v2937_v41 = vperm.slane %v5064_v42, 2  ;;  %v2639_v37 = vmax.f32 %v2607_v61, -100.0  ;;  %v2703_v44 = vmax.f32 %v2671_v16, -100.0  ;;  %v2640_v4 = vmax.f32 %v2608_v50, -100.0 }
 0x53d   : > { %v2999_v21 = vsel %vm1101_vm5, %v2935_v0, 0.0  ;;  %v2043_v9 = vpop.f32.mrf.mxu2  ;;  %v3794_v38 = vpop.eup %3793  ;;  %v2704_v46 = vmax.f32 %v2672_v36, -100.0  ;;  %v2524_v6 = vmul.f32 0.6931472, %v3792_v14  ;;  %3795 = vlog2.f32 %v2482_v60 }
 0x53e   : > { %v5081_v10 = vpop.f32.mrf.mxu3  ;;  %v3000_v5 = vsel %vm1101_vm5, %v2936_v54, 0.0  ;;  %v2483_v51 = vadd.f32 1.0, %v3794_v38  ;;  %3797 = vpow2.f32 %v2433_v27  ;;  %v2435_v59 = vmul.f32 1.442695, %v2389_v28 }
 0x53f   : > { %v2019_v43 = vpop.f32.mrf.mxu0  ;;  %v2766_v7 = vrot.slane %v2640_v4, 7  ;;  %v2866_v48 = vrot.slane %v2704_v46, 7  ;;  %v2577_v12 = vadd.f32 %v2524_v6, %v2321_v35  ;;  %v2390_v19 = vsub.f32 0.0, %v2358_v57 }
 0x540   : > { %v2032_v62 = vpop.f32.mrf.mxu1  ;;  %v2938_v23 = vperm.slane %v5064_v42, 3  ;;  %v2939_v25 = vperm.slane %v5064_v42, 4  ;;  %3799 = vlog2.f32 %v2483_v51  ;;  %v5086_v24 = vmul.f32 0.35355338, %v2017_v55 }
 0x541   : > { %v5089_v17 = vsel %vm1101_vm5, %v2639_v37, %v2766_v7  ;;  %v5092_v31 = vsel %vm1101_vm5, %v2703_v44, %v2866_v48  ;;  %v2609_v3 = vsub.f32 %v5017_v47, %v2577_v12  ;;  %v2673_v53 = vsub.f32 0.0, %v2577_v12 }
 0x542   : > { %v3001_v29 = vadd.f32 %v3000_v5, %v2999_v21  ;;  %3801 = vpow2.f32 %v2435_v59  ;;  %v2437_v32 = vmul.f32 1.442695, %v2390_v19  ;;  %v2359_v26 = vand.u32 2147483647, %v5086_v24 }
 0x543   : > { %v3796_v30 = vpop.eup %3795  ;;  %v2940_v33 = vperm.slane %v5064_v42, 5  ;;  %v2641_v18 = vmax.f32 %v2609_v3, -100.0  ;;  %v5097_v55 = vmul.f32 0.35355338, %v2030_v34  ;;  %v5099_v15 = vmul.f32 0.35355338, %v2043_v9 }
 0x544   : > { %v3798_v63 = vpop.eup %3797  ;;  %v2941_v58 = vperm.slane %v5064_v42, 6  ;;  %v2526_v61 = vmul.f32 0.6931472, %v3796_v30  ;;  %3803 = vpow2.f32 %v2437_v32  ;;  %v2391_v47 = vsub.f32 0.0, %v2359_v26 }
 0x545   : > { %v2045_v16 = vpop.f32.mrf.mxu2  ;;  %v3002_v0 = vsel %vm1101_vm5, %v2937_v41, 0.0  ;;  %v3004_v50 = vsel %vm1101_vm5, %v2938_v23, 0.0  ;;  %v2705_v36 = vmax.f32 %v2673_v53, -100.0  ;;  %v2484_v60 = vadd.f32 1.0, %v3798_v63 }
 0x546   : > { %v2058_v35 = vpop.f32.mrf.mxu3  ;;  %v3800_v34 = vpop.eup %3799  ;;  %v3003_v27 = vadd.f32 %v3002_v0, %v3001_v29  ;;  %v2578_v28 = vadd.f32 %v2526_v61, %v2322_v49  ;;  %v2439_v57 = vmul.f32 1.442695, %v2391_v47  ;;  %v2360_v21 = vand.u32 2147483647, %v5097_v55 }
 0x547   : > { %v2069_v14 = vpop.f32.mrf.mxu0  ;;  %v2767_v37 = vrot.slane %v2641_v18, 6  ;;  %v2528_v44 = vmul.f32 0.6931472, %v3800_v34  ;;  %3805 = vlog2.f32 %v2484_v60  ;;  %v2361_v41 = vand.u32 2147483647, %v5099_v15  ;;  %v5136_v34 = vld [vmem:[#allocation13 + $0x8] sm:$0xff] }
 0x548   : > { %v5104_v54 = vpop.f32.mrf.mxu1  ;;  %v3802_v9 = vpop.eup %3801  ;;  %v2610_v38 = vsub.f32 %v5019_v56, %v2578_v28  ;;  %v2674_v4 = vsub.f32 0.0, %v2578_v28  ;;  %3807 = vpow2.f32 %v2439_v57  ;;  %v2392_v46 = vsub.f32 0.0, %v2360_v21 }
 0x549   : > { %v2867_v6 = vrot.slane %v2705_v36, 6  ;;  %v2579_v43 = vadd.f32 %v2528_v44, %v2323_v40  ;;  %v2485_v62 = vadd.f32 1.0, %v3802_v9  ;;  %v2393_v49 = vsub.f32 0.0, %v2361_v41 }
 0x54a   : > { %v3804_v5 = vpop.eup %3803  ;;  %v2642_v51 = vmax.f32 %v2610_v38, -100.0  ;;  %v2706_v59 = vmax.f32 %v2674_v4, -100.0  ;;  %v2441_v7 = vmul.f32 1.442695, %v2392_v46  ;;  %v5114_v48 = vmul.f32 0.35355338, %v5081_v10 }
 0x54b   : > { %v2611_v12 = vsub.f32 %v5041_v22, %v2579_v43  ;;  %v2675_v19 = vsub.f32 0.0, %v2579_v43  ;;  %3809 = vlog2.f32 %v2485_v62  ;;  %v2486_v56 = vadd.f32 1.0, %v3804_v5 }
 0x54c   : > { %v2768_v23 = vrot.slane %v2642_v51, 5  ;;  %v2868_v3 = vrot.slane %v2706_v59, 5  ;;  %3811 = vpow2.f32 %v2441_v7  ;;  %v2443_v53 = vmul.f32 1.442695, %v2393_v49 }
 0x54d   : > { %v2095_v29 = vpop.f32.mrf.mxu2  ;;  %v3806_v32 = vpop.eup %3805  ;;  %v2643_v26 = vmax.f32 %v2611_v12, -100.0  ;;  %v2707_v30 = vmax.f32 %v2675_v19, -100.0  ;;  %3813 = vlog2.f32 %v2486_v56  ;;  %v5119_v18 = vmul.f32 0.35355338, %v2069_v14 }
 0x54e   : > { %v5117_v40 = vpop.f32.mrf.mxu3  ;;  %v3808_v61 = vpop.eup %3807  ;;  %v2795_v22 = vsel %vm1203_vm6, %v2767_v37, %v2768_v23  ;;  %v2895_v47 = vsel %vm1203_vm6, %v2867_v6, %v2868_v3  ;;  %v2530_v16 = vmul.f32 0.6931472, %v3806_v32  ;;  %3815 = vpow2.f32 %v2443_v53 }
 0x54f   : > { %v2071_v10 = vpop.f32.mrf.mxu0  ;;  %v3005_v35 = vadd.f32 %v3004_v50, %v3003_v27  ;;  %v3006_v0 = vsel %vm1101_vm5, %v2939_v25, 0.0  ;;  %v5128_v36 = vsel %vm1205_vm9, %v5089_v17, %v2795_v22  ;;  %v5132_v60 = vsel %vm1205_vm9, %v5092_v31, %v2895_v47 }
 0x550   : > { %v2084_v63 = vpop.f32.mrf.mxu1  ;;  %v2580_v14 = vadd.f32 %v2530_v16, %v2324_v11  ;;  %v2824_v28 = vsub.f32 1.0, %v5136_v34  ;;  %v2487_v50 = vadd.f32 1.0, %v3808_v61  ;;  %v2362_v27 = vand.u32 2147483647, %v5114_v48 }
 0x551   : > { %v3810_v57 = vpop.eup %3809  ;;  %v2769_v25 = vrot.slane %v2643_v26, 4  ;;  %v2869_v21 = vrot.slane %v2707_v30, 4  ;;  %v2327_v17 = vmax.f32 %v5086_v24, 0.0  ;;  %v2363_v37 = vand.u32 2147483647, %v5119_v18 }
 0x552   : > { %v3812_v44 = vpop.eup %3811  ;;  %v2612_v31 = vsub.f32 %v5044_v8, %v2580_v14  ;;  %v2676_v41 = vsub.f32 0.0, %v2580_v14  ;;  %v2532_v9 = vmul.f32 0.6931472, %v3810_v57  ;;  %3817 = vlog2.f32 %v2487_v50 }
 0x553   : > { %v3814_v11 = vpop.eup %3813  ;;  %v2488_v38 = vadd.f32 1.0, %v3812_v44  ;;  %v2394_v4 = vsub.f32 0.0, %v2362_v27  ;;  %v2395_v46 = vsub.f32 0.0, %v2363_v37  ;;  %v5144_v6 = vmul.f32 0.35355338, %v5104_v54 }
 0x554   : > { %v3816_v43 = vpop.eup %3815  ;;  %v2644_v62 = vmax.f32 %v2612_v31, -100.0  ;;  %v2708_v49 = vmax.f32 %v2676_v41, -100.0  ;;  %v2581_v5 = vadd.f32 %v2532_v9, %v2325_v45  ;;  %v2534_v51 = vmul.f32 0.6931472, %v3814_v11 }
 0x555   : > { %v2097_v59 = vpop.f32.mrf.mxu2  ;;  %3819 = vlog2.f32 %v2488_v38  ;;  %v2489_v8 = vadd.f32 1.0, %v3816_v43  ;;  %v2445_v12 = vmul.f32 1.442695, %v2394_v4  ;;  %v5148_v19 = vmul.f32 0.35355338, %v2095_v29 }
 0x556   : > { %v2110_v7 = vpop.f32.mrf.mxu3  ;;  %v2770_v56 = vrot.slane %v2644_v62, 3  ;;  %v2870_v23 = vrot.slane %v2708_v49, 3  ;;  %v2613_v3 = vsub.f32 %v5052_v52, %v2581_v5  ;;  %v2677_v54 = vsub.f32 0.0, %v2581_v5 }
 0x557   : > { %v2582_v53 = vadd.f32 %v2534_v51, %v2326_v20  ;;  %3821 = vlog2.f32 %v2489_v8  ;;  %v2447_v32 = vmul.f32 1.442695, %v2395_v46  ;;  %v2364_v45 = vand.u32 2147483647, %v5144_v6 }
 0x558   : > { %v3818_v26 = vpop.eup %3817  ;;  %v2797_v30 = vsel %vm1207_vm7, %v2769_v25, %v2770_v56  ;;  %v2897_v10 = vsel %vm1207_vm7, %v2869_v21, %v2870_v23  ;;  %v2645_v63 = vmax.f32 %v2613_v3, -100.0  ;;  %v2709_v29 = vmax.f32 %v2677_v54, -100.0 }
 0x559   : > { %v2614_v61 = vsub.f32 %v5066_v13, %v2582_v53  ;;  %v2678_v22 = vsub.f32 0.0, %v2582_v53  ;;  %v2536_v47 = vmul.f32 0.6931472, %v3818_v26  ;;  %3823 = vpow2.f32 %v2445_v12 }
 0x55a   : > { %v2771_v52 = vrot.slane %v2645_v63, 2  ;;  %v2871_v16 = vrot.slane %v2709_v29, 2  ;;  %v2328_v20 = vmax.f32 %v5097_v55, 0.0  ;;  %v2396_v14 = vsub.f32 0.0, %v2364_v45 }
 0x55b   : > { %v3820_v50 = vpop.eup %3819  ;;  %v2646_v27 = vmax.f32 %v2614_v61, -100.0  ;;  %v2710_v57 = vmax.f32 %v2678_v22, -100.0  ;;  %v2583_v37 = vadd.f32 %v2536_v47, %v2327_v17  ;;  %v2365_v25 = vand.u32 2147483647, %v5148_v19  ;;  %v5180_v61 = vpop.xlane.xlu0 %3151 }
 0x55c   : > { %v3007_v44 = vadd.f32 %v3006_v0, %v3005_v35  ;;  %v2538_v21 = vmul.f32 0.6931472, %v3820_v50  ;;  %3825 = vpow2.f32 %v2447_v32  ;;  %v2449_v31 = vmul.f32 1.442695, %v2396_v14  ;;  %3594 = vmatpush.xpose.msk.msra.mxu3 %vm3098_vm4, %v5180_v61 }
 0x55d   : > { %v3822_v41 = vpop.eup %3821  ;;  %v2772_v13 = vrot.slane %v2646_v27, 1  ;;  %v2872_v9 = vrot.slane %v2710_v57, 1  ;;  %v2615_v11 = vsub.f32 %v5086_v24, %v2583_v37  ;;  %v2679_v38 = vsub.f32 0.0, %v2583_v37 }
 0x55e   : > { %v2584_v4 = vadd.f32 %v2538_v21, %v2328_v20  ;;  %v2329_v46 = vmax.f32 %v5099_v15, 0.0  ;;  %v2540_v43 = vmul.f32 0.6931472, %v3822_v41  ;;  %3827 = vpow2.f32 %v2449_v31 }
 0x55f   : > { %v3824_v62 = vpop.eup %3823  ;;  %v2798_v17 = vsel %vm1209_vm8, %v2771_v52, %v2772_v13  ;;  %v2898_v49 = vsel %vm1209_vm8, %v2871_v16, %v2872_v9  ;;  %v2647_v35 = vmax.f32 %v2615_v11, -100.0  ;;  %v2397_v0 = vsub.f32 0.0, %v2365_v25  ;;  %3595 = vmatmul.msk.f32.vlgmr.msra.gmra.mxu3 %vm3098_vm4, %v4155_v2 }
 0x560   : > { %v2799_v5 = vsel %vm1211_vm10, %v2797_v30, %v2798_v17  ;;  %v2899_v51 = vsel %vm1211_vm10, %v2897_v10, %v2898_v49  ;;  %v2616_v59 = vsub.f32 %v5097_v55, %v2584_v4  ;;  %v2680_v24 = vsub.f32 0.0, %v2584_v4 }
 0x561   : > { %v2800_v7 = vsel %vm661_vm0, %v5128_v36, %v2799_v5  ;;  %v2900_v8 = vsel %vm661_vm0, %v5132_v60, %v2899_v51  ;;  %v2711_v12 = vmax.f32 %v2679_v38, -100.0  ;;  %v2490_v56 = vadd.f32 1.0, %v3824_v62 }
 0x562   : > { %v3826_v23 = vpop.eup %3825  ;;  %v2820_v3 = vmul.f32 %v5136_v34, %v2800_v7  ;;  %v2920_v54 = vmul.f32 %v2900_v8, %v2824_v28  ;;  %v2648_v53 = vmax.f32 %v2616_v59, -100.0  ;;  %v2712_v32 = vmax.f32 %v2680_v24, -100.0 }
 0x563   : > { %v3008_v55 = vsel %vm1101_vm5, %v2940_v33, 0.0  ;;  %v2585_v45 = vadd.f32 %v2540_v43, %v2329_v46  ;;  %3829 = vlog2.f32 %v2490_v56  ;;  %v5177_v36 = vmul.f32 0.35355338, %v5117_v40 }
 0x564   : > { %v3828_v60 = vpop.eup %3827  ;;  %v2924_v26 = vadd.f32 %v2920_v54, %v2820_v3  ;;  %v2773_v30 = vrot.slane %v2648_v53, 7  ;;  %v2873_v10 = vrot.slane %v2712_v32, 7  ;;  %v2451_v63 = vmul.f32 1.442695, %v2397_v0 }
 0x565   : > { %v2942_v29 = vperm.slane %v5064_v42, 7  ;;  %v3009_v34 = vadd.f32 %v3008_v55, %v3007_v44  ;;  %v2491_v28 = vadd.f32 1.0, %v3826_v23  ;;  %v3010_v40 = vsel %vm1101_vm5, %v2941_v58, 0.0 }
 0x566   : > { %v5182_v22 = vsub.f32 0.0, %v2924_v26  ;;  %v2801_v33 = vsel %vm1101_vm5, %v2647_v35, %v2773_v30  ;;  %v2901_v47 = vsel %vm1101_vm5, %v2711_v12, %v2873_v10  ;;  %3831 = vpow2.f32 %v2451_v63 }
 0x567   : > { %v2617_v52 = vsub.f32 %v5099_v15, %v2585_v45  ;;  %v2681_v16 = vsub.f32 0.0, %v2585_v45  ;;  %v2492_v20 = vadd.f32 1.0, %v3828_v60  ;;  %v2330_v50 = vmax.f32 %v5114_v48, 0.0 }
 0x568   : > { %v2943_v14 = vperm.slane %v5182_v22, 0  ;;  %v2366_v27 = vand.u32 2147483647, %v5177_v36  ;;  %v3134_v57 = vsel %vm3076_vm13, %v5062_v1, 0  ;;  %v3011_v42 = vadd.f32 %v3010_v40, %v3009_v34 }
 0x569   : > { %v3830_v37 = vpop.eup %3829  ;;  %3143 = vmatpush.bf16.xpose.msra.mxu2 %v3134_v57  ;;  %3833 = vlog2.f32 %v2491_v28  ;;  %v2649_v25 = vmax.f32 %v2617_v52, -100.0  ;;  %v2713_v44 = vmax.f32 %v2681_v16, -100.0  ;;  %v2944_v41 = vperm.slane %v5182_v22, 1 }
 0x56a   : > { %v2542_v58 = vmul.f32 0.6931472, %v3830_v37  ;;  %v2398_v15 = vsub.f32 0.0, %v2366_v27  ;;  %3835 = vlog2.f32 %v2492_v20  ;;  %v3012_v13 = vsel %vm1101_vm5, %v2942_v29, 0.0 }
 0x56b   : > { %v3014_v9 = vsel %vm1101_vm5, %v2943_v14, 0.0  ;;  %v3013_v4 = vadd.f32 %v3012_v13, %v3011_v42  ;;  %v2774_v43 = vrot.slane %v2649_v25, 6  ;;  %v2874_v49 = vrot.slane %v2713_v44, 6  ;;  %v2184_v8 = vpop.f32.mrf.mxu0 }
 0x56c   : > { %v3832_v21 = vpop.eup %3831  ;;  %v2586_v31 = vadd.f32 %v2542_v58, %v2330_v50  ;;  %v2453_v38 = vmul.f32 1.442695, %v2398_v15  ;;  %v3016_v5 = vsel %vm1101_vm5, %v2944_v41, 0.0  ;;  %v2945_v12 = vperm.slane %v5182_v22, 2 }
 0x56d   : > { %v2493_v11 = vadd.f32 1.0, %v3832_v21  ;;  %v3015_v62 = vadd.f32 %v3014_v9, %v3013_v4  ;;  %v2331_v56 = vmax.f32 %v5119_v18, 0.0  ;;  %v2332_v23 = vmax.f32 %v5144_v6, 0.0 }
 0x56e   : > { %v2618_v2 = vsub.f32 %v5114_v48, %v2586_v31  ;;  %v2682_v46 = vsub.f32 0.0, %v2586_v31  ;;  %v2197_v48 = vpop.f32.mrf.mxu1  ;;  %v5209_v3 = vmul.f32 0.35355338, %v2184_v8  ;;  %v2946_v55 = vperm.slane %v5182_v22, 3 }
 0x56f   : > { %3837 = vlog2.f32 %v2493_v11  ;;  %v3834_v17 = vpop.eup %3833  ;;  %v3017_v59 = vadd.f32 %v3016_v5, %v3015_v62  ;;  %v5211_v54 = vmul.f32 0.35355338, %v2197_v48  ;;  %v2333_v10 = vmax.f32 %v5148_v19, 0.0 }
 0x570   : > { %v2650_v35 = vmax.f32 %v2618_v2, -100.0  ;;  %v2714_v0 = vmax.f32 %v2682_v46, -100.0  ;;  %3593 = vmatmul.msk.bf16.vlgmr.msra.gmra.mxu2 %vm3076_vm13, %v5062_v1  ;;  %v3836_v51 = vpop.eup %3835  ;;  %3839 = vpow2.f32 %v2453_v38  ;;  %v2544_v32 = vmul.f32 0.6931472, %v3834_v17 }
 0x571   : > { %v2546_v30 = vmul.f32 0.6931472, %v3836_v51  ;;  %v2367_v29 = vand.u32 2147483647, %v5209_v3  ;;  %v2947_v34 = vperm.slane %v5182_v22, 4  ;;  %v3018_v28 = vsel %vm1101_vm5, %v2945_v12, 0.0 }
 0x572   : > { %v2775_v24 = vrot.slane %v2650_v35, 5  ;;  %v2875_v7 = vrot.slane %v2714_v0, 5  ;;  %v2368_v52 = vand.u32 2147483647, %v5211_v54  ;;  %v2210_v16 = vpop.f32.mrf.mxu2  ;;  %v2949_v20 = vperm.slane %v5182_v22, 6  ;;  %v2223_v15 = vpop.f32.mrf.mxu3 }
 0x573   : > { %v2587_v14 = vadd.f32 %v2544_v32, %v2331_v56  ;;  %v5229_v27 = vmul.f32 0.35355338, %v2210_v16  ;;  %v3020_v57 = vsel %vm1101_vm5, %v2946_v55, 0.0  ;;  %v2588_v37 = vadd.f32 %v2546_v30, %v2332_v23  ;;  %v2186_v21 = vpop.f32.mrf.mxu0 }
 0x574   : > { %v2802_v1 = vsel %vm1203_vm6, %v2774_v43, %v2775_v24  ;;  %v2902_v53 = vsel %vm1203_vm6, %v2874_v49, %v2875_v7  ;;  %v2399_v42 = vsub.f32 0.0, %v2367_v29  ;;  %v2400_v58 = vsub.f32 0.0, %v2368_v52 }
 0x575   : > { %v3838_v45 = vpop.eup %3837  ;;  %v5217_v60 = vsel %vm1205_vm9, %v2801_v33, %v2802_v1  ;;  %v5220_v26 = vsel %vm1205_vm9, %v2901_v47, %v2902_v53  ;;  %v2948_v33 = vperm.slane %v5182_v22, 5  ;;  %v3019_v47 = vadd.f32 %v3018_v28, %v3017_v59 }
 0x576   : > { %v2548_v63 = vmul.f32 0.6931472, %v3838_v45  ;;  %v3840_v40 = vpop.eup %3839  ;;  %v2199_v31 = vpop.f32.mrf.mxu1  ;;  %v2950_v41 = vperm.slane %v5182_v22, 7  ;;  %v3022_v13 = vsel %vm1101_vm5, %v2947_v34, 0.0  ;;  %v2457_v9 = vmul.f32 1.442695, %v2400_v58 }
 0x577   : > { %v2494_v50 = vadd.f32 1.0, %v3840_v40  ;;  %v3021_v25 = vadd.f32 %v3020_v57, %v3019_v47  ;;  %v2369_v11 = vand.u32 2147483647, %v5229_v27  ;;  %v3024_v4 = vsel %vm1101_vm5, %v2948_v33, 0.0 }
 0x578   : > { %v2589_v44 = vadd.f32 %v2548_v63, %v2333_v10  ;;  %v2619_v2 = vsub.f32 %v5119_v18, %v2587_v14  ;;  %v2683_v46 = vsub.f32 0.0, %v2587_v14  ;;  %v5237_v43 = vmul.f32 0.35355338, %v2223_v15 }
 0x579   : > { %3841 = vlog2.f32 %v2494_v50  ;;  %v3023_v38 = vadd.f32 %v3022_v13, %v3021_v25  ;;  %v3026_v62 = vsel %vm1101_vm5, %v2949_v20, 0.0  ;;  %v2620_v17 = vsub.f32 %v5144_v6, %v2588_v37 }
 0x57a   : > { %v2455_v49 = vmul.f32 1.442695, %v2399_v42  ;;  %v2401_v35 = vsub.f32 0.0, %v2369_v11  ;;  %v2684_v0 = vsub.f32 0.0, %v2588_v37  ;;  %v2621_v5 = vsub.f32 %v5148_v19, %v2589_v44  ;;  %v2212_v18 = vpop.f32.mrf.mxu2  ;;  %v2225_v32 = vpop.f32.mrf.mxu3  ;;  %v3889_v11 = vld [vmem:[#allocation13 + $0x10] sm:$0xff] }
 0x57b   : > { %v3025_v22 = vadd.f32 %v3024_v4, %v3023_v38  ;;  %3843 = vpow2.f32 %v2457_v9  ;;  %v2370_v51 = vand.u32 2147483647, %v5237_v43  ;;  %v2685_v59 = vsub.f32 0.0, %v2589_v44  ;;  %v2236_v30 = vpop.f32.mrf.mxu0 }
 0x57c   : > { %v2334_v24 = vmax.f32 %v5177_v36, 0.0  ;;  %v3028_v8 = vsel %vm1101_vm5, %v2950_v41, 0.0  ;;  %v2651_v12 = vmax.f32 %v2619_v2, -100.0  ;;  %v2715_v56 = vmax.f32 %v2683_v46, -100.0 }
 0x57d   : > { %v3027_v7 = vadd.f32 %v3026_v62, %v3025_v22  ;;  %v2459_v6 = vmul.f32 1.442695, %v2401_v35  ;;  %v2402_v23 = vsub.f32 0.0, %v2370_v51  ;;  %v2652_v1 = vmax.f32 %v2620_v17, -100.0 }
 0x57e   : > { %3845 = vpow2.f32 %v2455_v49  ;;  %v2716_v55 = vmax.f32 %v2684_v0, -100.0  ;;  %v2653_v45 = vmax.f32 %v2621_v5, -100.0  ;;  %v2717_v10 = vmax.f32 %v2685_v59, -100.0  ;;  %v2249_v34 = vpop.f32.mrf.mxu1 }
 0x57f   : > { %v3842_v48 = vpop.eup %3841  ;;  %v5245_v19 = vadd.f32 %v3028_v8, %v3027_v7  ;;  %v5247_v29 = vmul.f32 0.35355338, %v2236_v30  ;;  %v2776_v40 = vrot.slane %v2651_v12, 4  ;;  %3847 = vpow2.f32 %v2459_v6 }
 0x580   : > { %v2550_v53 = vmul.f32 0.6931472, %v3842_v48  ;;  %v2461_v52 = vmul.f32 1.442695, %v2402_v23  ;;  %v5249_v16 = vmul.f32 0.35355338, %v2249_v34 }
 0x581   : > { %v3844_v28 = vpop.eup %3843  ;;  %v2876_v33 = vrot.slane %v2715_v56, 4  ;;  %v2777_v20 = vrot.slane %v2652_v1, 3  ;;  %v2877_v50 = vrot.slane %v2716_v55, 3  ;;  %v2778_v57 = vrot.slane %v2653_v45, 2 }
 0x582   : > { %v2590_v63 = vadd.f32 %v2550_v53, %v2334_v24  ;;  %v2371_v37 = vand.u32 2147483647, %v5247_v29  ;;  %v2372_v42 = vand.u32 2147483647, %v5249_v16  ;;  %v2878_v15 = vrot.slane %v2717_v10, 2  ;;  %v2262_v4 = vpop.f32.mrf.mxu2  ;;  %v2275_v2 = vpop.f32.mrf.mxu3 }
 0x583   : > { %v2496_v21 = vadd.f32 1.0, %v3844_v28  ;;  %3849 = vpow2.f32 %v2461_v52  ;;  %v2804_v13 = vsel %vm1207_vm7, %v2776_v40, %v2777_v20  ;;  %v2904_v62 = vsel %vm1207_vm7, %v2876_v33, %v2877_v50  ;;  %v2238_v22 = vpop.f32.mrf.mxu0 }
 0x584   : > { %v2622_v47 = vsub.f32 %v5177_v36, %v2590_v63  ;;  %v2686_v14 = vsub.f32 0.0, %v2590_v63  ;;  %v3846_v58 = vpop.eup %3845  ;;  %v2403_v31 = vsub.f32 0.0, %v2371_v37  ;;  %v2404_v41 = vsub.f32 0.0, %v2372_v42 }
 0x585   : > { %v2825_v36 = vsub.f32 1.0, %v3889_v11  ;;  %v3848_v46 = vpop.eup %3847  ;;  %v2495_v17 = vadd.f32 1.0, %v3846_v58  ;;  %3851 = vlog2.f32 %v2496_v21  ;;  %v5258_v51 = vmul.f32 0.35355338, %v2262_v4 }
 0x586   : > { %v2654_v25 = vmax.f32 %v2622_v47, -100.0  ;;  %v2718_v44 = vmax.f32 %v2686_v14, -100.0  ;;  %v2463_v49 = vmul.f32 1.442695, %v2403_v31  ;;  %v2465_v35 = vmul.f32 1.442695, %v2404_v41  ;;  %v2251_v59 = vpop.f32.mrf.mxu1 }
 0x587   : > { %v5262_v7 = vmul.f32 0.35355338, %v2275_v2  ;;  %v2497_v12 = vadd.f32 1.0, %v3848_v46  ;;  %v2373_v1 = vand.u32 2147483647, %v5258_v51  ;;  %v2336_v37 = vmax.f32 %v5211_v54, 0.0 }
 0x588   : > { %v2779_v9 = vrot.slane %v2654_v25, 1  ;;  %v2879_v38 = vrot.slane %v2718_v44, 1  ;;  %3853 = vpow2.f32 %v2463_v49  ;;  %v2341_v49 = vmax.f32 %v5258_v51, 0.0 }
 0x589   : > { %v3850_v56 = vpop.eup %3849  ;;  %3855 = vpow2.f32 %v2465_v35  ;;  %v2374_v32 = vand.u32 2147483647, %v5262_v7  ;;  %v2405_v30 = vsub.f32 0.0, %v2373_v1  ;;  %v2342_v59 = vmax.f32 %v5262_v7, 0.0 }
 0x58a   : > { %v2805_v0 = vsel %vm1209_vm8, %v2778_v57, %v2779_v9  ;;  %v2905_v5 = vsel %vm1209_vm8, %v2878_v15, %v2879_v38  ;;  %3857 = vlog2.f32 %v2495_v17  ;;  %v2498_v45 = vadd.f32 1.0, %v3850_v56  ;;  %v2264_v10 = vpop.f32.mrf.mxu2 }
 0x58b   : > { %v2806_v24 = vsel %vm1211_vm10, %v2804_v13, %v2805_v0  ;;  %v2906_v18 = vsel %vm1211_vm10, %v2904_v62, %v2905_v5  ;;  %v3852_v55 = vpop.eup %3851  ;;  %3859 = vlog2.f32 %v2497_v12  ;;  %v2406_v34 = vsub.f32 0.0, %v2374_v32  ;;  %v5270_v20 = vpop.f32.mrf.mxu0 }
 0x58c   : > { %v2807_v8 = vsel %vm661_vm0, %v5217_v60, %v2806_v24  ;;  %v2907_v48 = vsel %vm661_vm0, %v5220_v26, %v2906_v18  ;;  %v2277_v60 = vpop.f32.mrf.mxu3  ;;  %v2554_v52 = vmul.f32 0.6931472, %v3852_v55  ;;  %3861 = vlog2.f32 %v2498_v45 }
 0x58d   : > { %v2821_v6 = vmul.f32 %v3889_v11, %v2807_v8  ;;  %v2921_v23 = vmul.f32 %v2907_v48, %v2825_v36  ;;  %v2467_v33 = vmul.f32 1.442695, %v2405_v30  ;;  %v2469_v14 = vmul.f32 1.442695, %v2406_v34 }
 0x58e   : > { %v3854_v63 = vpop.eup %3853  ;;  %v2592_v58 = vadd.f32 %v2554_v52, %v2336_v37  ;;  %v2335_v15 = vmax.f32 %v5209_v3, 0.0  ;;  %v2337_v13 = vmax.f32 %v5229_v27, 0.0  ;;  %v2338_v9 = vmax.f32 %v5237_v43, 0.0 }
 0x58f   : > { %v2925_v53 = vadd.f32 %v2921_v23, %v2821_v6  ;;  %v2499_v26 = vadd.f32 1.0, %v3854_v63  ;;  %v3856_v28 = vpop.eup %3855  ;;  %v2339_v36 = vmax.f32 %v5247_v29, 0.0  ;;  %v2340_v38 = vmax.f32 %v5249_v16, 0.0 }
 0x590   : > { %v3858_v40 = vpop.eup %3857  ;;  %v2500_v47 = vadd.f32 1.0, %v3856_v28  ;;  %v2624_v11 = vsub.f32 %v5211_v54, %v2592_v58  ;;  %v2688_v0 = vsub.f32 0.0, %v2592_v58 }
 0x591   : > { %3863 = vlog2.f32 %v2499_v26  ;;  %v3860_v50 = vpop.eup %3859  ;;  %v5272_v57 = vsub.f32 0.0, %v2925_v53  ;;  %v2552_v42 = vmul.f32 0.6931472, %v3858_v40 }
 0x592   : > { %3865 = vlog2.f32 %v2500_v47  ;;  %v2556_v25 = vmul.f32 0.6931472, %v3860_v50  ;;  %v3862_v44 = vpop.eup %3861  ;;  %v5292_v56 = vmax.f32 %v2624_v11, -100.0  ;;  %v5297_v45 = vmax.f32 %v2688_v0, -100.0 }
 0x593   : > { %3867 = vpow2.f32 %v2467_v33  ;;  %v2951_v21 = vperm.slane %v5272_v57, 0  ;;  %v5277_v41 = vadd.f32 %v2552_v42, %v2335_v15  ;;  %v3091_v4 = vpop.f32.mrf.mxu0  ;;  %v2952_v2 = vperm.slane %v5272_v57, 1 }
 0x594   : > { %3869 = vpow2.f32 %v2469_v14  ;;  %v2593_v62 = vadd.f32 %v2556_v25, %v2337_v13  ;;  %v2558_v17 = vmul.f32 0.6931472, %v3862_v44  ;;  %v2953_v54 = vperm.slane %v5272_v57, 2 }
 0x595   : > { %v3030_v35 = vsel %vm1101_vm5, %v2951_v21, 0.0  ;;  %v2623_v18 = vsub.f32 %v5209_v3, %v5277_v41  ;;  %v2954_v23 = vperm.slane %v5272_v57, 3  ;;  %v3032_v1 = vsel %vm1101_vm5, %v2952_v2, 0.0 }
 0x596   : > { %v3031_v12 = vadd.f32 %v3030_v35, %v5245_v19  ;;  %v2625_v53 = vsub.f32 %v5229_v27, %v2593_v62  ;;  %v2594_v32 = vadd.f32 %v2558_v17, %v2338_v9  ;;  %v2955_v10 = vperm.slane %v5272_v57, 4 }
 0x597   : > { %v3864_v31 = vpop.eup %3863  ;;  %v3034_v60 = vsel %vm1101_vm5, %v2953_v54, 0.0  ;;  %v2687_v19 = vsub.f32 0.0, %v5277_v41  ;;  %v2780_v26 = vrot.slane %v5292_v56, 7  ;;  %v2689_v28 = vsub.f32 0.0, %v2593_v62 }
 0x598   : > { %v3866_v46 = vpop.eup %3865  ;;  %v2560_v5 = vmul.f32 0.6931472, %v3864_v31  ;;  %v3033_v55 = vadd.f32 %v3032_v1, %v3031_v12  ;;  %v2956_v27 = vperm.slane %v5272_v57, 5  ;;  %v3036_v40 = vsel %vm1101_vm5, %v2954_v23, 0.0 }
 0x599   : > { %v3868_v22 = vpop.eup %3867  ;;  %v2562_v8 = vmul.f32 0.6931472, %v3866_v46  ;;  %v2657_v52 = vmax.f32 %v2625_v53, -100.0  ;;  %v2626_v33 = vsub.f32 %v5237_v43, %v2594_v32  ;;  %v2690_v47 = vsub.f32 0.0, %v2594_v32 }
 0x59a   : > { %v3870_v24 = vpop.eup %3869  ;;  %v2501_v48 = vadd.f32 1.0, %v3868_v22  ;;  %v2595_v30 = vadd.f32 %v2560_v5, %v2339_v36  ;;  %v3035_v34 = vadd.f32 %v3034_v60, %v3033_v55  ;;  %v2880_v50 = vrot.slane %v5297_v45, 7 }
 0x59b   : > { %v2502_v6 = vadd.f32 1.0, %v3870_v24  ;;  %v2596_v63 = vadd.f32 %v2562_v8, %v2340_v38  ;;  %v2957_v42 = vperm.slane %v5272_v57, 6  ;;  %v3038_v58 = vsel %vm1101_vm5, %v2955_v10, 0.0 }
 0x59c   : > { %3871 = vlog2.f32 %v2501_v48  ;;  %v3037_v14 = vadd.f32 %v3036_v40, %v3035_v34  ;;  %v2627_v37 = vsub.f32 %v5247_v29, %v2595_v30  ;;  %v2691_v25 = vsub.f32 0.0, %v2595_v30 }
 0x59d   : > { %3873 = vlog2.f32 %v2502_v6  ;;  %v2628_v44 = vsub.f32 %v5249_v16, %v2596_v63  ;;  %v2692_v21 = vsub.f32 0.0, %v2596_v63  ;;  %v2721_v13 = vmax.f32 %v2689_v28, -100.0 }
 0x59e   : > { %v3039_v31 = vadd.f32 %v3038_v58, %v3037_v14  ;;  %v2958_v43 = vperm.slane %v5272_v57, 7  ;;  %v3040_v11 = vsel %vm1101_vm5, %v2956_v27, 0.0  ;;  %v2781_v38 = vrot.slane %v2657_v52, 6 }
 0x59f   : > { %v2658_v4 = vmax.f32 %v2626_v33, -100.0  ;;  %v2722_v29 = vmax.f32 %v2690_v47, -100.0  ;;  %v2659_v46 = vmax.f32 %v2627_v37, -100.0  ;;  %v3042_v35 = vsel %vm1101_vm5, %v2957_v42, 0.0  ;;  %v3890_v42 = vld [vmem:[#allocation13 + $0x18] sm:$0xff] }
 0x5a0   : > { %v3041_v2 = vadd.f32 %v3040_v11, %v3039_v31  ;;  %v2723_v22 = vmax.f32 %v2691_v25, -100.0  ;;  %v2660_v16 = vmax.f32 %v2628_v44, -100.0  ;;  %v2724_v0 = vmax.f32 %v2692_v21, -100.0 }
 0x5a1   : > { %v3044_v8 = vsel %vm1101_vm5, %v2958_v43, 0.0  ;;  %v2881_v48 = vrot.slane %v2721_v13, 6  ;;  %v2782_v12 = vrot.slane %v2658_v4, 5  ;;  %v2882_v6 = vrot.slane %v2722_v29, 5  ;;  %v971_v4 = vld [vmem:[%s5418_s28] sm:$0xf] }
 0x5a2   : > { %v3872_v15 = vpop.eup %3871  ;;  %v3043_v5 = vadd.f32 %v3042_v35, %v3041_v2  ;;  %v2783_v55 = vrot.slane %v2659_v46, 4  ;;  %v2883_v45 = vrot.slane %v2723_v22, 4  ;;  %v2784_v30 = vrot.slane %v2660_v16, 3 }
 0x5a3   : > { %v2564_v9 = vmul.f32 0.6931472, %v3872_v15  ;;  %v3874_v36 = vpop.eup %3873  ;;  %v2884_v10 = vrot.slane %v2724_v0, 3  ;;  %v2655_v28 = vmax.f32 %v2623_v18, -100.0  ;;  %v2719_v27 = vmax.f32 %v2687_v19, -100.0 }
 0x5a4   : > { %v2566_v17 = vmul.f32 0.6931472, %v3874_v36  ;;  %v3045_v23 = vadd.f32 %v3044_v8, %v3043_v5  ;;  %v2809_v40 = vsel %vm1203_vm6, %v2781_v38, %v2782_v12  ;;  %v2909_v52 = vsel %vm1203_vm6, %v2881_v48, %v2882_v6 }
 0x5a5   : > { %v2597_v62 = vadd.f32 %v2564_v9, %v2341_v49  ;;  %v2808_v14 = vsel %vm1101_vm5, %v2655_v28, %v2780_v26  ;;  %v2908_v37 = vsel %vm1101_vm5, %v2719_v27, %v2880_v50  ;;  %v2826_v58 = vsub.f32 1.0, %v3890_v42  ;;  %v3122_v9 = vpop.f32.mrf.mxu1 }
 0x5a6   : > { %v2598_v57 = vadd.f32 %v2566_v17, %v2342_v59  ;;  %v970_v59 = vld [vmem:[%s5382_s2] sm:$0xf]  ;;  %v2811_v3 = vsel %vm1207_vm7, %v2783_v55, %v2784_v30  ;;  %v2911_v41 = vsel %vm1207_vm7, %v2883_v45, %v2884_v10  ;;  %v2810_v15 = vsel %vm1205_vm9, %v2808_v14, %v2809_v40 }
 0x5a7   : > { %v2629_v54 = vsub.f32 %v5258_v51, %v2597_v62  ;;  %v2693_v24 = vsub.f32 0.0, %v2597_v62  ;;  %3875 = vlog2.f32 %v970_v59  ;;  %v2910_v25 = vsel %vm1205_vm9, %v2908_v37, %v2909_v52 }
 0x5a8   : > { %v2630_v49 = vsub.f32 %v5262_v7, %v2598_v57  ;;  %v2694_v32 = vsub.f32 0.0, %v2598_v57  ;;  %v975_v7 = vsub.f32 1.0, %v970_v59  ;;  %v3125_v38 = vperm.slane %v3122_v9, 0 }
 0x5a9   : > { %v2661_v1 = vmax.f32 %v2629_v54, -100.0  ;;  %v2725_v53 = vmax.f32 %v2693_v24, -100.0  ;;  %v980_v22 = vsub.f32 1.0, %v971_v4  ;;  %v3127_v0 = vmul.f32 2.0, %v5270_v20 }
 0x5aa   : > { %v2662_v51 = vmax.f32 %v2630_v49, -100.0  ;;  %v2726_v34 = vmax.f32 %v2694_v32, -100.0  ;;  %3877 = vlog2.f32 %v975_v7  ;;  %v3126_v16 = vadd.f32 %v3125_v38, %v4972_v39 }
 0x5ab   : > { %v2785_v60 = vrot.slane %v2661_v1, 2  ;;  %v2885_v63 = vrot.slane %v2725_v53, 2  ;;  %vm5419_vm6 = vcmask 27648  }
 0x5ac   : > { %v2786_v33 = vrot.slane %v2662_v51, 1  ;;  %v2886_v47 = vrot.slane %v2726_v34, 1  ;;  %v3128_v6 = vsub.f32 %v3126_v16, %v3127_v0  ;;  %v4157_v0 = vmov 4.0  }
 0x5ad   : > { %v3876_v21 = vpop.eup %3875 }
 0x5ae   : > { %v2812_v18 = vsel %vm1209_vm8, %v2785_v60, %v2786_v33  ;;  %v2912_v19 = vsel %vm1209_vm8, %v2885_v63, %v2886_v47  ;;  %v973_v43 = vmul.f32 0.6931472, %v3876_v21  ;;  %v3129_v30 = vsub.f32 0.0, %v3128_v6  ;;  %vm5420_vm8 = vmmov %vm5419_vm6 }
 0x5af   : > { %v2813_v56 = vsel %vm1211_vm10, %v2811_v3, %v2812_v18  ;;  %v2913_v26 = vsel %vm1211_vm10, %v2911_v41, %v2912_v19  ;;  %v4156_v41 = vmov 16.0  }
 0x5b0   : > { %v2814_v50 = vsel %vm661_vm0, %v2810_v15, %v2813_v56  ;;  %v2914_v44 = vsel %vm661_vm0, %v2910_v25, %v2913_v26  ;;  %v3878_v11 = vpop.eup %3877  ;;  %v974_v46 = vmax.f32 %v973_v43, -100.0  ;;  %vm984_vm0 = vcmask 3072  }
 0x5b1   : > { %v2822_v31 = vmul.f32 %v3890_v42, %v2814_v50  ;;  %v2922_v13 = vmul.f32 %v2914_v44, %v2826_v58  ;;  %v977_v29 = vmul.f32 0.6931472, %v3878_v11  ;;  %v3130_v28 = vmul.f32 1.442695, %v3129_v30 }
 0x5b2   : > { %v979_v24 = vmul.f32 %v974_v46, %v971_v4 }
 0x5b3   : > { %v2926_v36 = vadd.f32 %v2922_v13, %v2822_v31  ;;  %v978_v35 = vmax.f32 %v977_v29, -100.0  ;;  %3879 = vpow2.f32 %v3130_v28 }
 0x5b4   : > { %3881 = vrcp.f32 %v4156_v41 }
 0x5b5   : > { %v2930_v2 = vsub.f32 0.0, %v2926_v36  ;;  %v981_v12 = vmul.f32 %v980_v22, %v978_v35  ;;  %3883 = vrcp.f32 %v4157_v0 }
 0x5b7   : > { %v2959_v62 = vperm.slane %v2930_v2, 0  ;;  %v2960_v17 = vperm.slane %v2930_v2, 1  ;;  %v2961_v5 = vperm.slane %v2930_v2, 2  ;;  %v2962_v8 = vperm.slane %v2930_v2, 3 }
 0x5b8   : > { %v2963_v53 = vperm.slane %v2930_v2, 4  ;;  %v982_v32 = vadd.f32 %v981_v12, %v979_v24  ;;  %v2964_v39 = vperm.slane %v2930_v2, 5  ;;  %v2965_v60 = vperm.slane %v2930_v2, 6 }
 0x5b9   : > { %v3046_v54 = vsel %vm1101_vm5, %v2959_v62, 0.0  ;;  %v3048_v48 = vsel %vm1101_vm5, %v2960_v17, 0.0  ;;  %v3050_v49 = vsel %vm1101_vm5, %v2961_v5, 0.0  ;;  %v3052_v20 = vsel %vm1101_vm5, %v2962_v8, 0.0  ;;  %v5352_v47 = vpop.eup %3879 }
 0x5ba   : > { %v3047_v57 = vadd.f32 %v3046_v54, %v3045_v23  ;;  %v983_v45 = vsub.f32 0.0, %v982_v32  ;;  %v3054_v23 = vsel %vm1101_vm5, %v2963_v53, 0.0  ;;  %v2966_v34 = vperm.slane %v2930_v2, 7  ;;  %v3882_v25 = vpop.eup %3881 }
 0x5bb   : > { %v3056_v59 = vsel %vm1101_vm5, %v2964_v39, 0.0  ;;  %v3058_v7 = vsel %vm1101_vm5, %v2965_v60, 0.0  ;;  %v3183_v14 = vsel %vm5419_vm6, %v5352_v47, 0.0  ;;  %v3209_v31 = vmul.f32 16.0, %v3882_v25  ;;  %v3884_v5 = vpop.eup %3883 }
 0x5bc   : > { %v3049_v1 = vadd.f32 %v3048_v48, %v3047_v57  ;;  %v985_v63 = vsel %vm984_vm0, %v983_v45, 0.0  ;;  %v3060_v52 = vsel %vm1101_vm5, %v2966_v34, 0.0  ;;  %vm3213_vm5 = vweird.f32 %v3882_v25 }
 0x5bd   : > { %986 = vadd.xlane.f32.xlu1 %v985_v63  ;;  %v3210_v43 = vsub.f32 1.0, %v3209_v31  ;;  %v3194_v54 = vrot.slane %v3183_v14, 4  ;;  %v3187_v57 = vmul.f32 4.0, %v3884_v5  ;;  %vm3191_vm7 = vweird.f32 %v3884_v5 }
 0x5be   : > { %v3051_v55 = vadd.f32 %v3050_v49, %v3049_v1 }
 0x5bf   : > { %v3211_v2 = vmul.f32 %v3882_v25, %v3210_v43  ;;  %v3195_v48 = vadd.f32 %v3194_v54, %v3183_v14  ;;  %v3188_v12 = vsub.f32 1.0, %v3187_v57 }
 0x5c0   : > { %v3053_v10 = vadd.f32 %v3052_v20, %v3051_v55 }
 0x5c1   : > { %v3212_v17 = vadd.f32 %v3882_v25, %v3211_v2  ;;  %v3196_v53 = vrot.slane %v3195_v48, 2  ;;  %v3189_v49 = vmul.f32 %v3884_v5, %v3188_v12 }
 0x5c2   : > { %v3055_v51 = vadd.f32 %v3054_v23, %v3053_v10 }
 0x5c3   : > { %v3214_v16 = vsel %vm3213_vm5, %v3882_v25, %v3212_v17  ;;  %v3197_v55 = vadd.f32 %v3196_v53, %v3195_v48  ;;  %v3190_v39 = vadd.f32 %v3884_v5, %v3189_v49 }
 0x5c4   : > { %v3057_v27 = vadd.f32 %v3056_v59, %v3055_v51 }
 0x5c5   : > { %v3198_v45 = vrot.slane %v3197_v55, 1  ;;  %v3192_v30 = vsel %vm3191_vm7, %v3884_v5, %v3190_v39 }
 0x5c6   : > { %v3059_v40 = vadd.f32 %v3058_v7, %v3057_v27 }
 0x5c7   : > { %v3199_v23 = vadd.f32 %v3198_v45, %v3197_v55 }
 0x5c8   : > { %v3061_v33 = vadd.f32 %v3060_v52, %v3059_v40 }
 0x5ca   : > { %3062 = vadd.xlane.f32.xlu2 %v3061_v33 }
 0x5d2   : > { %3184 = vadd.xlane.f32.xlu2 %v3183_v14 }
 0x5e2   : > { %v3173_v24 = vpop.f32.mrf.mxu3 }
 0x5e3   : > { %v3176_v8 = vperm.slane %v3173_v24, 0 }
 0x5e5   : > { %v3177_v6 = vadd.f32 %v3176_v8, %v5180_v61  ;;  %v3200_v61 = vmul.f32 %v3199_v23, %v3192_v30 }
 0x5f3   : > { %v3145_v37 = vpop.f32.mrf.mxu2 }
 0x5f4   : > { %v3178_v1 = vmul.f32 2.0, %v3145_v37 }
 0x5f6   : > { %v3179_v32 = vsub.f32 %v3177_v6, %v3178_v1 }
 0x5f8   : > { %v3180_v20 = vsub.f32 0.0, %v3179_v32 }
 0x5fa   : > { %v3181_v60 = vmul.f32 1.442695, %v3180_v20 }
 0x5fb   : > { %v3147_v42 = vpop.f32.mrf.mxu2 }
 0x5fc   : > { %3885 = vpow2.f32 %v3181_v60 }
 0x602   : > { %v3886_v28 = vpop.eup %3885 }
 0x630   : > { %v987_v58 = vpop.xlane.xlu1 %986 }
 0x631   : > { %v988_v3 = vrot.slane %v987_v58, 4 }
 0x633   : > { %v989_v18 = vadd.f32 %v988_v3, %v987_v58 }
 0x635   : > { %v990_v19 = vrot.slane %v989_v18, 2 }
 0x637   : > { %v991_v15 = vadd.f32 %v990_v19, %v989_v18 }
 0x639   : > { %v992_v50 = vrot.slane %v991_v15, 1 }
 0x63b   : > { %v993_v21 = vadd.f32 %v992_v50, %v991_v15 }
 0x63d   : > { %v3063_v56 = vpop.xlane.xlu2 %3062  ;;  %3624 = vpush %v993_v21 }
 0x63e   : > { %v3064_v26 = vrot.slane %v3063_v56, 4 }
 0x640   : > { %v3065_v44 = vadd.f32 %v3064_v26, %v3063_v56 }
 0x642   : > { %v3066_v13 = vrot.slane %v3065_v44, 2 }
 0x644   : > { %v3067_v9 = vadd.f32 %v3066_v13, %v3065_v44 }
 0x645   : > { %v3185_v11 = vpop.xlane.xlu2 %3184 }
 0x646   : > { %v3201_v36 = vrot.slane %v3185_v11, 4  ;;  %v3068_v38 = vrot.slane %v3067_v9, 1  ;;  %v3193_v10 = vmul.f32 %v3192_v30, %v3185_v11 }
 0x648   : > { %v3202_v4 = vadd.f32 %v3201_v36, %v3185_v11  ;;  %v3069_v29 = vadd.f32 %v3068_v38, %v3067_v9  ;;  %v3217_v63 = vsub.f32 %v5352_v47, %v3193_v10 }
 0x64a   : > { %v3203_v46 = vrot.slane %v3202_v4, 2  ;;  %3626 = vpush %v3069_v29  ;;  %v3218_v51 = vsub.f32 %v3217_v63, %v3200_v61 }
 0x64c   : > { %v3204_v62 = vadd.f32 %v3203_v46, %v3202_v4 }
 0x64e   : > { %v3205_v35 = vrot.slane %v3204_v62, 1 }
 0x650   : > { %v3206_v22 = vadd.f32 %v3205_v35, %v3204_v62 }
 0x652   : > { %3628 = vpush %v3206_v22 }
 0x653   : > { %3630 = vpush %v3214_v16 }
 0x66e   : > { %s3625_s3 = spop %3624 }
 0x66f   : > { %996 = sst [smem:[#allocation2 + $0x3]] %s3625_s3 }
 0x67b   : > { %s3627_s13 = spop %3626 }
 0x67c   : > { %3072 = sst [smem:[#allocation2 + $0x8]] %s3627_s13 }
 0x683   : > { %s3629_s7 = spop %3628 }
 0x684   : > { %s3631_s10 = spop %3630 }
 0x685   : > { %s3216_s6 = smul.f32 %s3631_s10, %s3629_s7 }
 0x687   : > { %v3219_v34 = vstv %s3216_s6 }
 0x688   : > { %v3220_v59 = vadd.f32 %v3219_v34, %v3218_v51 }
 0x68a   : > { %v3221_v27 = vmul.f32 %v3886_v28, %v3220_v59 }
 0x68c   : > { %v3222_v7 = vsel %vm5420_vm8, %v3221_v27, 0.0 }
 0x68d   : > { %3223 = vadd.xlane.f32.xlu0 %v3222_v7 }
 0x700   : > { %v3224_v40 = vpop.xlane.xlu0 %3223 }
 0x701   : > { %v3225_v52 = vrot.slane %v3224_v40, 4 }
 0x703   : > { %v3226_v33 = vadd.f32 %v3225_v52, %v3224_v40 }
 0x705   : > { %v3227_v14 = vrot.slane %v3226_v33, 2 }
 0x707   : > { %v3228_v37 = vadd.f32 %v3227_v14, %v3226_v33 }
 0x709   : > { %v3229_v42 = vrot.slane %v3228_v37, 1 }
 0x70b   : > { %v3230_v47 = vadd.f32 %v3229_v42, %v3228_v37 }
 0x70d   : > { %3632 = vpush %v3230_v47 }
 0x73e   : > { %s3633_s30 = spop %3632 }
 0x73f   : > { %s3232_s26 = smul.f32 0.11111111, %s3633_s30 }
 0x741   : > { %3234 = sst [smem:[#allocation2 + $0x9]] %s3232_s26 }
 0x742 PF: > { %p3596_p1 = scmp.ne.s32.totalorder %s4233_s17, 1 }
 0x743   : > { %s3317_s12 = sld [smem:[#allocation2]] (!%p3596_p1) }
 0x744   : > { %3238 = sbr.rel (%p3596_p1) target bundleno = 2220 (0x8ac), region = 96  ;;  %s3597_s21 = sld [smem:[#allocation2 + $0x1]] (!%p3596_p1) }
 0x745   : > { %s3598_s16 = sld [smem:[#allocation2 + $0x2]] (!%p3596_p1) }
 0x746   : > { %s3599_s25 = sld [smem:[#allocation2 + $0x3]] (!%p3596_p1) }
 0x747   : > { %s3602_s19 = sld [smem:[#allocation2 + $0x6]] (!%p3596_p1) }
 0x748   : > { %s3603_s23 = sld [smem:[#allocation2 + $0x7]] (!%p3596_p1) }
 0x749   : > { %v3240_v58 = vlaneseq  ;;  %v3239_v3 = vld [vmem:[#allocation3] sm:$0xf]  ;;  %vm5421_vm10 = vcmask 27648   ;;  %3319 = sst [smem:[#allocation15]] %s3317_s12 }
 0x74a   : > { %vm5422_vm5 = vmmov %vm5421_vm10  ;;  %3322 = sst [smem:[#allocation15 + $0x1]] %s3597_s21 }
 0x74b   : > { %v3241_v41 = vshrl.u32 %v3240_v58, 7  ;;  %v3243_v18 = vand.u32 127, %v3240_v58  ;;  %vm5423_vm7 = vmmov %vm5422_vm5  ;;  %3325 = sst [smem:[#allocation15 + $0x2]] %s3598_s16 }
 0x74c   : > { %3328 = sst [smem:[#allocation15 + $0x3]] %s3599_s25 }
 0x74d   : > { %vm3244_vm9 = vcmp.eq.s32.totalorder %v3241_v41, %v3243_v18  ;;  %vm3286_vm12 = vcmp.lt.s32.totalorder %v3241_v41, 2  ;;  %vm3289_vm13 = vcmp.ge.s32.totalorder %v3243_v18, 2  ;;  %vm3287_vm4 = vcmp.lt.s32.totalorder %v3243_v18, 2  ;;  %3337 = sst [smem:[#allocation15 + $0x6]] %s3602_s19 }
 0x74e   : > { %v3245_v19 = vsel %vm3244_vm9, %v3239_v3, 0.0  ;;  %vm3290_vm0 = vmand %vm3286_vm12, %vm3289_vm13  ;;  %3340 = sst [smem:[#allocation15 + $0x7]] %s3603_s23 }
 0x74f   : > { %v3246_v15 = vsel %vm5421_vm10, %v3245_v19, 0.0  ;;  %vm3288_vm6 = vmand %vm3286_vm12, %vm3287_vm4  ;;  %s3604_s1 = sld [smem:[#allocation2 + $0x8]] }
 0x750   : > { %3247 = vadd.xlane.f32.xlu0 %v3246_v15  ;;  %v3249_v25 = vrot.slane %v3246_v15, 4  ;;  %s3605_s20 = sld [smem:[#allocation2 + $0x9]] }
 0x752   : > { %v3250_v56 = vadd.f32 %v3249_v25, %v3246_v15 }
 0x754   : > { %v3251_v26 = vrot.slane %v3250_v56, 2 }
 0x755   : > { %3343 = sst [smem:[#allocation15 + $0x8]] %s3604_s1 }
 0x756   : > { %v3252_v50 = vadd.f32 %v3251_v26, %v3250_v56  ;;  %3346 = sst [smem:[#allocation15 + $0x9]] %s3605_s20 }
 0x758   : > { %v3253_v44 = vrot.slane %v3252_v50, 1 }
 0x75a   : > { %v3254_v21 = vadd.f32 %v3253_v44, %v3252_v50 }
 0x7c3   : > { %v3248_v31 = vpop.xlane.xlu0 %3247 }
 0x7c4   : > { %v3255_v13 = vmul.f32 %v3254_v21, %v3248_v31 }
 0x7c6   : > { %3891 = vrsqrt.f32 %v3255_v13  ;;  %vm3263_vm14 = vcmp.eq.f32.partialorder %v3255_v13, inf  ;;  %v3266_v2 = vand.u32 2147483648, %v3255_v13  ;;  %vm3265_vm15 = vcmp.eq.f32.partialorder %v3255_v13, 0.0 }
 0x7cc   : > { %v3892_v9 = vpop.eup %3891 }
 0x7cd   : > { %v3257_v43 = vmul.f32 %v3892_v9, %v3255_v13 }
 0x7cf   : > { %v3258_v11 = vmul.f32 %v3892_v9, %v3257_v43 }
 0x7d1   : > { %v3259_v36 = vmul.f32 0.5, %v3258_v11 }
 0x7d3   : > { %v3260_v38 = vsub.f32 1.5, %v3259_v36 }
 0x7d5   : > { %v3261_v4 = vmul.f32 %v3892_v9, %v3260_v38 }
 0x7d7   : > { %v3262_v29 = vmul.f32 %v3261_v4, %v3255_v13 }
 0x7d9   : > { %v3264_v46 = vsel %vm3263_vm14, %v3255_v13, %v3262_v29 }
 0x7da   : > { %v3267_v62 = vsel %vm3265_vm15, %v3266_v2, %v3264_v46 }
 0x7db   : > { %v3268_v17 = vmax.f32 %v3267_v62, 1e-06 }
 0x7dd   : > { %3893 = vrcp.f32 %v3268_v17  ;;  %v3280_v0 = vand.u32 2147483648, %v3268_v17  ;;  %v3278_v54 = vand.u32 2147483647, %v3268_v17  ;;  %vm3274_vm2 = vweird.f32 %v3268_v17 }
 0x7df   : > { %v3281_v57 = vor.u32 1.1754944e-38, %v3280_v0  ;;  %vm3279_vm11 = vcmp.eq.f32.partialorder %v3278_v54, 8.507059e+37 }
 0x7e3   : > { %v3894_v35 = vpop.eup %3893 }
 0x7e4   : > { %v3270_v22 = vmul.f32 %v3894_v35, %v3268_v17  ;;  %vm3275_vm1 = vweird.f32 %v3894_v35 }
 0x7e5   : > { %vm3276_vm3 = vmor %vm3274_vm2, %vm3275_vm1 }
 0x7e6   : > { %v3271_v16 = vsub.f32 1.0, %v3270_v22 }
 0x7e8   : > { %v3272_v5 = vmul.f32 %v3894_v35, %v3271_v16 }
 0x7ea   : > { %v3273_v24 = vadd.f32 %v3894_v35, %v3272_v5 }
 0x7ec   : > { %v3277_v8 = vsel %vm3276_vm3, %v3894_v35, %v3273_v24 }
 0x7ed   : > { %v3282_v48 = vsel %vm3279_vm11, %v3281_v57, %v3277_v8 }
 0x7ee   : > { %v3283_v12 = vmul.f32 %v3282_v48, %v3239_v3 }
 0x7f0   : > { %v3284_v6 = vsub.f32 1.0, %v3283_v12 }
 0x7f2   : > { %v3285_v1 = vmul.f32 0.5, %v3284_v6 }
 0x7f4   : > { %v3304_v53 = vsel %vm3290_vm0, %v3285_v1, 0.0  ;;  %v3291_v49 = vsel %vm3288_vm6, %v3285_v1, 0.0 }
 0x7f5   : > { %v3305_v32 = vsel %vm5422_vm5, %v3304_v53, 0.0  ;;  %v3292_v55 = vsel %vm5423_vm7, %v3291_v49, 0.0 }
 0x7f6   : > { %3306 = vadd.xlane.f32.xlu1 %v3305_v32  ;;  %3293 = vadd.xlane.f32.xlu0 %v3292_v55 }
 0x869   : > { %v3307_v39 = vpop.xlane.xlu1 %3306  ;;  %v3294_v20 = vpop.xlane.xlu0 %3293 }
 0x86a   : > { %v3308_v45 = vrot.slane %v3307_v39, 4  ;;  %v3295_v30 = vrot.slane %v3294_v20, 4 }
 0x86c   : > { %v3309_v10 = vadd.f32 %v3308_v45, %v3307_v39  ;;  %v3296_v60 = vadd.f32 %v3295_v30, %v3294_v20 }
 0x86e   : > { %v3310_v23 = vrot.slane %v3309_v10, 2  ;;  %v3297_v63 = vrot.slane %v3296_v60, 2 }
 0x870   : > { %v3311_v61 = vadd.f32 %v3310_v23, %v3309_v10  ;;  %v3298_v51 = vadd.f32 %v3297_v63, %v3296_v60 }
 0x872   : > { %v3299_v34 = vrot.slane %v3298_v51, 1  ;;  %v3312_v59 = vrot.slane %v3311_v61, 1 }
 0x874   : > { %v3300_v28 = vadd.f32 %v3299_v34, %v3298_v51  ;;  %v3313_v27 = vadd.f32 %v3312_v59, %v3311_v61 }
 0x876   : > { %3634 = vpush %v3300_v28 }
 0x877   : > { %3636 = vpush %v3313_v27 }
 0x8a7   : > { %s3635_s11 = spop %3634 }
 0x8a8   : > { %3303 = sst [smem:[#allocation2 + $0x4]] %s3635_s11  ;;  %s3637_s22 = spop %3636 }
 0x8a9   : > { %3331 = sst [smem:[#allocation15 + $0x4]] %s3635_s11 }
 0x8aa   : > { %3316 = sst [smem:[#allocation2 + $0x5]] %s3637_s22 }
 0x8ab   : > { %3334 = sst [smem:[#allocation15 + $0x5]] %s3637_s22 }
 0x8ac PF: > { %p3683_p4 = scmp.eq.s32.totalorder %s4233_s17, 1  ;;  %s5424_s27 = sld [smem:[#allocation29_spill]] }
 0x8ad   : > { %s4158_s18 = smov [#allocation15]  }
 0x8b2   : > { %s3353_s29 = sshll.u32 %s5424_s27, 4  ;;  %s3354_s29 = int_to_ptr.hbm [resolvable:$true] %s3353_s29 }
 0x8b3   : > { %3655 = dma.smem_to_hbm (%p3683_p4), %s4158_s18, 16, %s3354_s29, [#allocation6]  }
 0x8b4   : > { %4126 = dma.done.wait (%p3683_p4), [#allocation6], 16  }
 0x8b5   : > { %4128 = vsyncadd (%p3683_p4), [#allocation6], 4294967280 }
 0x8b6   : > { %3362 = sfence }
 0x8b7 PF: > { %s5425_s16 = sld [smem:[#allocation23_spill]]  ;;  %s5428_s13 = smov %s4135_s14 }
 0x8b8   : > { %s5426_s28 = sld [smem:[#allocation22_spill]] }
 0x8b9   : > { %s5427_s15 = sld [smem:[#allocation24_spill]] }
 0x8bd   : > { %p28_p5 = scmp.ge.s32.totalorder %s5425_s16, 4  }
 0x8be   : > { %s5429_s14 = smov %s5426_s28 }
 0x8bf   :  { %30 = sbr.rel (!%p28_p5) target bundleno = 15 (0xf), region = 194 }
 0x8c4   :  { %3368 = vsyncpa [#allocation5], 1 }
 0x8c5   :  { %3370 = vsyncpa [#allocation5 + $0x1], 1 }
 0x8c6   :  { %3371 = vsyncpa [#allocation8], 1 }
 0x8c7   :  { %3373 = vsyncpa [#allocation8 + $0x1], 1 }
 0x8c8   :  { %3374 = vsyncpa [#allocation11], 1 }
 0x8c9   :  { %3376 = vsyncpa [#allocation11 + $0x1], 1 }
 0x8ca   :  { %3377 = vsyncpa [#allocation14], 1 }
 0x8cb   :  { %3378 = vsyncpa [#allocation6], 1 }
 0x8cc   :  { %3380 = vsyncpa [#allocation6 + $0x1], 1 }

</bundles_post_ra>
